<compile_context>
chip_gen: v6e
topology: v6e:2x2x1
jax: 0.10.0
libtpu: 0.0.40
codegen_flags: <defaults>
</compile_context>

<pallas_src>
import jax
import jax.numpy as jnp
from jax.experimental import pallas as pl
from jax.experimental.pallas import tpu as pltpu

EPS = 1e-5        # nn.BatchNorm2d default eps
SUBLANE = 8       # f32 sublane tile
LANE = 128        # TPU lane width


def _make_basic_block_t_kernel(shifts, c_real, m_real):
    """Builds the fused BasicBlockT forward kernel.

    shifts: static flat-spatial shift (dh*W + dw) of each of the 9 conv taps
    c_real: real (unpadded) channel count
    m_real: N*H*W (flat batch*spatial size == lane-axis length)
    """
    inv_m = 1.0 / float(m_real)

    def kernel(x_ref, w2_ref, w1_ref, g2_ref, b2_ref, mask_ref, out_ref):
        cp, m = x_ref.shape          # (channels padded to 8, N*H*W)
        x = x_ref[...]               # f32; stays vreg/VMEM resident throughout

        def conv3x3(inp, w_ref):
            # 3x3 / stride 1 / pad 1 conv in the compact layout: for each tap,
            # shift the flat spatial axis with a static pltpu.roll (XLU), zero
            # the positions whose source pixel falls in the conv's zero padding
            # (precomputed per-tap mask), then accumulate per-input-channel
            # broadcast FMAs (VPU).  No im2col slab, no halo scratch, no VMEM
            # round trips between taps.
            wv = w_ref[...]                              # (cp, 9*c_real)
            acc = jnp.zeros((cp, m), jnp.float32)
            for t, s in enumerate(shifts):
                if s == 0:
                    sh = inp                             # center tap: mask == 1
                else:
                    sh = pltpu.roll(inp, (-s) % m, axis=1)
                    sh = sh * mask_ref[t:t + 1, :]
                for ci in range(c_real):
                    col = t * c_real + ci
                    acc = acc + wv[:, col:col + 1] * sh[ci:ci + 1, :]
            return acc

        def batch_norm(o, gamma=None, beta=None):
            # Per-channel (sublane) batch statistics over the lane axis.
            # Two-pass (mean, then centered variance): data is vreg-resident,
            # so the second pass costs no memory traffic and avoids the
            # E[x^2] - E[x]^2 cancellation of the previous version.
            mu = jnp.sum(o, axis=1, keepdims=True) * inv_m
            c = o - mu
            var = jnp.sum(c * c, axis=1, keepdims=True) * inv_m
            inv_std = jax.lax.rsqrt(var + EPS)
            if gamma is None:
                return c * inv_std                       # bn1: affine=False
            return c * (gamma * inv_std) + beta          # bn2: fused scale/shift

        # out = relu(bn2(conv2(x)))
        o = conv3x3(x, w2_ref)
        o = jnp.maximum(batch_norm(o, g2_ref[...], b2_ref[...]), 0.0)
        # out = bn1(conv1(out))
        o = conv3x3(o, w1_ref)
        o = batch_norm(o)
        # out = relu(out + identity)
        out_ref[...] = jnp.maximum(o + x, 0.0)

    return kernel


def basic_block_t_pallas(x_nchw, w1_t, w2_t, gamma2, beta2):
    """BasicBlockT forward (stride=1, upsample=None, inplanes == planes)."""
    N, C, H, W = x_nchw.shape
    M = N * H * W
    # TODO(synk): shapes whose N*H*W is not a multiple of 128 need a lane-padded
    # tail plus masked BN statistics; not required for CIFAR-style shapes.
    assert M % LANE == 0, "N*H*W must be a multiple of 128"
    CP = ((C + SUBLANE - 1) // SUBLANE) * SUBLANE   # channels -> sublane tile

    # Compact layout: channels on sublanes, flat batch*spatial on lanes.
    x_cm = jnp.transpose(x_nchw.astype(jnp.float32), (1, 0, 2, 3)).reshape(C, M)
    x_cm = jnp.pad(x_cm, ((0, CP - C), (0, 0)))

    def convT_weight_to_taps(w_t):
        # ConvTranspose2d weight (Cin, Cout, kH, kW) @ stride=1/pad=1 equals a
        # standard 3x3 conv with spatially flipped taps and swapped channels.
        # Lay the taps out as (Cout_padded, 9*Cin): column t*C+ci holds the
        # output-channel column for tap t / input channel ci, ready for the
        # kernel's broadcast FMAs.
        taps = jnp.transpose(w_t.astype(jnp.float32), (2, 3, 0, 1))[::-1, ::-1]
        taps = taps.reshape(9, C, C)                        # (tap, cin, cout)
        w2d = jnp.transpose(taps, (2, 0, 1)).reshape(C, 9 * C)
        return jnp.pad(w2d, ((0, CP - C), (0, 0)))          # (CP, 9*C)

    w2 = convT_weight_to_taps(w2_t)
    w1 = convT_weight_to_taps(w1_t)
    g2 = jnp.pad(gamma2.astype(jnp.float32), (0, CP - C)).reshape(CP, 1)
    b2 = jnp.pad(beta2.astype(jnp.float32), (0, CP - C)).reshape(CP, 1)

    # Per-tap validity masks (0 where a 3x3 tap reads the conv's zero padding)
    # and the matching static flat-spatial shifts dh*W + dw.
    p = jnp.arange(M)
    h = (p % (H * W)) // W
    w = p % W
    masks, shifts = [], []
    for dh in (-1, 0, 1):
        for dw in (-1, 0, 1):
            shifts.append(dh * W + dw)
            valid = (h + dh >= 0) & (h + dh < H) & (w + dw >= 0) & (w + dw < W)
            masks.append(valid.astype(jnp.float32))
    mask_arr = jnp.stack(masks)                             # (9, M)

    kernel = _make_basic_block_t_kernel(tuple(shifts), C, M)

    # Whole block in one grid step: the live footprint is ~100 KiB, far under
    # the (explicit) VMEM limit, which itself is kept well below v7x's 64 MiB
    # physical VMEM.
    # TODO(synk): large activations need an M-tiled grid with per-tile BN
    # partial sums (and a "parallel" axis to use v7x's second TensorCore).
    out_cm = pl.pallas_call(
        kernel,
        out_shape=jax.ShapeDtypeStruct((CP, M), jnp.float32),
        grid=(1,),
        in_specs=[
            pl.BlockSpec((CP, M), lambda i: (0, 0)),        # x (compact layout)
            pl.BlockSpec((CP, 9 * C), lambda i: (0, 0)),    # conv2 taps
            pl.BlockSpec((CP, 9 * C), lambda i: (0, 0)),    # conv1 taps
            pl.BlockSpec((CP, 1), lambda i: (0, 0)),        # bn2 gamma
            pl.BlockSpec((CP, 1), lambda i: (0, 0)),        # bn2 beta
            pl.BlockSpec((9, M), lambda i: (0, 0)),         # per-tap masks
        ],
        out_specs=pl.BlockSpec((CP, M), lambda i: (0, 0)),
        compiler_params=pltpu.CompilerParams(
            dimension_semantics=("arbitrary",),
            vmem_limit_bytes=8 * 1024 * 1024),
    )(x_cm, w2, w1, g2, b2, mask_arr)

    out = out_cm[:C].reshape(C, N, H, W)
    return jnp.transpose(out, (1, 0, 2, 3))                 # back to NCHW


def basic_block_t_reference(x, w1_t, w2_t, gamma2, beta2):
    """Pure-JAX f32 reference (NCHW, mirrors the PyTorch forward)."""
    def convT3x3_s1(inp, wt):
        # ConvTranspose2d(k=3, stride=1, padding=1, bias=False)
        return jax.lax.conv_general_dilated(
            inp, wt[:, :, ::-1, ::-1],
            window_strides=(1, 1), padding=[(1, 1), (1, 1)],
            dimension_numbers=("NCHW", "IOHW", "NCHW"),
            precision=jax.lax.Precision.HIGHEST)

    def bn(inp, gamma=None, beta=None):
        mu = jnp.mean(inp, axis=(0, 2, 3), keepdims=True)
        var = jnp.mean((inp - mu) ** 2, axis=(0, 2, 3), keepdims=True)
        y = (inp - mu) * jax.lax.rsqrt(var + EPS)
        if gamma is not None:
            y = y * gamma[None, :, None, None] + beta[None, :, None, None]
        return y

    out = convT3x3_s1(x, w2_t)
    out = jax.nn.relu(bn(out, gamma2, beta2))
    out = convT3x3_s1(out, w1_t)
    out = bn(out)
    return jax.nn.relu(out + x)


if __name__ == "__main__":
    key = jax.random.PRNGKey(0)
    k1, k2, k3, k4, k5 = jax.random.split(key, 5)

    # inplanes = planes = 4, stride = 1, upsample = None
    N, C, H, W = 2, 4, 16, 16
    x = jax.random.normal(k1, (N, C, H, W), jnp.float32)
    # ConvTranspose2d weights are (in_channels, out_channels, kH, kW)
    w1_t = 0.2 * jax.random.normal(k2, (C, C, 3, 3), jnp.float32)   # conv1
    w2_t = 0.2 * jax.random.normal(k3, (C, C, 3, 3), jnp.float32)   # conv2
    gamma2 = 1.0 + 0.1 * jax.random.normal(k4, (C,), jnp.float32)   # bn2 weight
    beta2 = 0.1 * jax.random.normal(k5, (C,), jnp.float32)          # bn2 bias

    out = jax.block_until_ready(basic_block_t_pallas(x, w1_t, w2_t, gamma2, beta2))
    assert out.shape == (N, C, H, W)

    # Kernel is full f32, so it is checked tightly against exact f32 semantics
    # (no bf16-matched secondary reference needed anymore).
    ref = basic_block_t_reference(x, w1_t, w2_t, gamma2, beta2)
    err = float(jnp.max(jnp.abs(out - ref)))
    assert jnp.allclose(out, ref, atol=5e-3, rtol=5e-3), err

    print("KERNEL_OK")
</pallas_src>

<mosaic_0001>
module attributes {stable_mosaic.version = 11 : i64} {
  func.func @kernel(%arg0: i32, %arg1: memref<8x512xf32, #tpu.memory_space<vmem>>, %arg2: memref<8x36xf32, #tpu.memory_space<vmem>>, %arg3: memref<8x36xf32, #tpu.memory_space<vmem>>, %arg4: memref<8x1xf32, #tpu.memory_space<vmem>>, %arg5: memref<8x1xf32, #tpu.memory_space<vmem>>, %arg6: memref<9x512xf32, #tpu.memory_space<vmem>>, %arg7: memref<8x512xf32, #tpu.memory_space<vmem>>) attributes {dimension_semantics = [#tpu.dimension_semantics<arbitrary>], iteration_bounds = array<i64: 1>, scalar_prefetch = 0 : i64, scratch_operands = 0 : i64, tpu.core_type = #tpu.core_type<tc>, window_params = [{pipeline_mode = #tpu.pipeline_mode<synchronous>, transform_indices = @transform_0, window_bounds = array<i64: 8, 512>}, {pipeline_mode = #tpu.pipeline_mode<synchronous>, transform_indices = @transform_1, window_bounds = array<i64: 8, 36>}, {pipeline_mode = #tpu.pipeline_mode<synchronous>, transform_indices = @transform_2, window_bounds = array<i64: 8, 36>}, {pipeline_mode = #tpu.pipeline_mode<synchronous>, transform_indices = @transform_3, window_bounds = array<i64: 8, 1>}, {pipeline_mode = #tpu.pipeline_mode<synchronous>, transform_indices = @transform_4, window_bounds = array<i64: 8, 1>}, {pipeline_mode = #tpu.pipeline_mode<synchronous>, transform_indices = @transform_5, window_bounds = array<i64: 9, 512>}, {pipeline_mode = #tpu.pipeline_mode<synchronous>, transform_indices = @transform_6, window_bounds = array<i64: 8, 512>}]} {
    %c0 = arith.constant 0 : index
    %c0_0 = arith.constant 0 : index
    %0 = vector.load %arg1[%c0, %c0_0] : memref<8x512xf32, #tpu.memory_space<vmem>>, vector<8x512xf32>
    %c0_1 = arith.constant 0 : index
    %c0_2 = arith.constant 0 : index
    %1 = vector.load %arg2[%c0_1, %c0_2] : memref<8x36xf32, #tpu.memory_space<vmem>>, vector<8x36xf32>
    %cst = arith.constant 0.000000e+00 : f32
    %2 = vector.broadcast %cst : f32 to vector<8x512xf32>
    %c17_i32 = arith.constant 17 : i32
    %3 = tpu.dynamic_rotate %0 by %c17_i32 dim 1 : vector<8x512xf32>, i32 -> vector<8x512xf32>
    %c0_3 = arith.constant 0 : index
    %c0_4 = arith.constant 0 : index
    %4 = vector.load %arg6[%c0_3, %c0_4] : memref<9x512xf32, #tpu.memory_space<vmem>>, vector<1x512xf32>
    %5 = vector.broadcast %4 : vector<1x512xf32> to vector<8x512xf32>
    %6 = arith.mulf %3, %5 : vector<8x512xf32>
    %7 = vector.extract_strided_slice %1 {offsets = [0, 0], sizes = [8, 1], strides = [1, 1]} : vector<8x36xf32> to vector<8x1xf32>
    %8 = vector.extract_strided_slice %6 {offsets = [0, 0], sizes = [1, 512], strides = [1, 1]} : vector<8x512xf32> to vector<1x512xf32>
    %9 = vector.broadcast %7 : vector<8x1xf32> to vector<8x512xf32>
    %10 = vector.broadcast %8 : vector<1x512xf32> to vector<8x512xf32>
    %11 = arith.mulf %9, %10 : vector<8x512xf32>
    %12 = arith.addf %2, %11 : vector<8x512xf32>
    %13 = vector.extract_strided_slice %1 {offsets = [0, 1], sizes = [8, 1], strides = [1, 1]} : vector<8x36xf32> to vector<8x1xf32>
    %14 = vector.extract_strided_slice %6 {offsets = [1, 0], sizes = [1, 512], strides = [1, 1]} : vector<8x512xf32> to vector<1x512xf32>
    %15 = vector.broadcast %13 : vector<8x1xf32> to vector<8x512xf32>
    %16 = vector.broadcast %14 : vector<1x512xf32> to vector<8x512xf32>
    %17 = arith.mulf %15, %16 : vector<8x512xf32>
    %18 = arith.addf %12, %17 : vector<8x512xf32>
    %19 = vector.extract_strided_slice %1 {offsets = [0, 2], sizes = [8, 1], strides = [1, 1]} : vector<8x36xf32> to vector<8x1xf32>
    %20 = vector.extract_strided_slice %6 {offsets = [2, 0], sizes = [1, 512], strides = [1, 1]} : vector<8x512xf32> to vector<1x512xf32>
    %21 = vector.broadcast %19 : vector<8x1xf32> to vector<8x512xf32>
    %22 = vector.broadcast %20 : vector<1x512xf32> to vector<8x512xf32>
    %23 = arith.mulf %21, %22 : vector<8x512xf32>
    %24 = arith.addf %18, %23 : vector<8x512xf32>
    %25 = vector.extract_strided_slice %1 {offsets = [0, 3], sizes = [8, 1], strides = [1, 1]} : vector<8x36xf32> to vector<8x1xf32>
    %26 = vector.extract_strided_slice %6 {offsets = [3, 0], sizes = [1, 512], strides = [1, 1]} : vector<8x512xf32> to vector<1x512xf32>
    %27 = vector.broadcast %25 : vector<8x1xf32> to vector<8x512xf32>
    %28 = vector.broadcast %26 : vector<1x512xf32> to vector<8x512xf32>
    %29 = arith.mulf %27, %28 : vector<8x512xf32>
    %30 = arith.addf %24, %29 : vector<8x512xf32>
    %c16_i32 = arith.constant 16 : i32
    %31 = tpu.dynamic_rotate %0 by %c16_i32 dim 1 : vector<8x512xf32>, i32 -> vector<8x512xf32>
    %c1 = arith.constant 1 : index
    %c0_5 = arith.constant 0 : index
    %32 = vector.load %arg6[%c1, %c0_5] : memref<9x512xf32, #tpu.memory_space<vmem>>, vector<1x512xf32>
    %33 = vector.broadcast %32 : vector<1x512xf32> to vector<8x512xf32>
    %34 = arith.mulf %31, %33 : vector<8x512xf32>
    %35 = vector.extract_strided_slice %1 {offsets = [0, 4], sizes = [8, 1], strides = [1, 1]} : vector<8x36xf32> to vector<8x1xf32>
    %36 = vector.extract_strided_slice %34 {offsets = [0, 0], sizes = [1, 512], strides = [1, 1]} : vector<8x512xf32> to vector<1x512xf32>
    %37 = vector.broadcast %35 : vector<8x1xf32> to vector<8x512xf32>
    %38 = vector.broadcast %36 : vector<1x512xf32> to vector<8x512xf32>
    %39 = arith.mulf %37, %38 : vector<8x512xf32>
    %40 = arith.addf %30, %39 : vector<8x512xf32>
    %41 = vector.extract_strided_slice %1 {offsets = [0, 5], sizes = [8, 1], strides = [1, 1]} : vector<8x36xf32> to vector<8x1xf32>
    %42 = vector.extract_strided_slice %34 {offsets = [1, 0], sizes = [1, 512], strides = [1, 1]} : vector<8x512xf32> to vector<1x512xf32>
    %43 = vector.broadcast %41 : vector<8x1xf32> to vector<8x512xf32>
    %44 = vector.broadcast %42 : vector<1x512xf32> to vector<8x512xf32>
    %45 = arith.mulf %43, %44 : vector<8x512xf32>
    %46 = arith.addf %40, %45 : vector<8x512xf32>
    %47 = vector.extract_strided_slice %1 {offsets = [0, 6], sizes = [8, 1], strides = [1, 1]} : vector<8x36xf32> to vector<8x1xf32>
    %48 = vector.extract_strided_slice %34 {offsets = [2, 0], sizes = [1, 512], strides = [1, 1]} : vector<8x512xf32> to vector<1x512xf32>
    %49 = vector.broadcast %47 : vector<8x1xf32> to vector<8x512xf32>
    %50 = vector.broadcast %48 : vector<1x512xf32> to vector<8x512xf32>
    %51 = arith.mulf %49, %50 : vector<8x512xf32>
    %52 = arith.addf %46, %51 : vector<8x512xf32>
    %53 = vector.extract_strided_slice %1 {offsets = [0, 7], sizes = [8, 1], strides = [1, 1]} : vector<8x36xf32> to vector<8x1xf32>
    %54 = vector.extract_strided_slice %34 {offsets = [3, 0], sizes = [1, 512], strides = [1, 1]} : vector<8x512xf32> to vector<1x512xf32>
    %55 = vector.broadcast %53 : vector<8x1xf32> to vector<8x512xf32>
    %56 = vector.broadcast %54 : vector<1x512xf32> to vector<8x512xf32>
    %57 = arith.mulf %55, %56 : vector<8x512xf32>
    %58 = arith.addf %52, %57 : vector<8x512xf32>
    %c15_i32 = arith.constant 15 : i32
    %59 = tpu.dynamic_rotate %0 by %c15_i32 dim 1 : vector<8x512xf32>, i32 -> vector<8x512xf32>
    %c2 = arith.constant 2 : index
    %c0_6 = arith.constant 0 : index
    %60 = vector.load %arg6[%c2, %c0_6] : memref<9x512xf32, #tpu.memory_space<vmem>>, vector<1x512xf32>
    %61 = vector.broadcast %60 : vector<1x512xf32> to vector<8x512xf32>
    %62 = arith.mulf %59, %61 : vector<8x512xf32>
    %63 = vector.extract_strided_slice %1 {offsets = [0, 8], sizes = [8, 1], strides = [1, 1]} : vector<8x36xf32> to vector<8x1xf32>
    %64 = vector.extract_strided_slice %62 {offsets = [0, 0], sizes = [1, 512], strides = [1, 1]} : vector<8x512xf32> to vector<1x512xf32>
    %65 = vector.broadcast %63 : vector<8x1xf32> to vector<8x512xf32>
    %66 = vector.broadcast %64 : vector<1x512xf32> to vector<8x512xf32>
    %67 = arith.mulf %65, %66 : vector<8x512xf32>
    %68 = arith.addf %58, %67 : vector<8x512xf32>
    %69 = vector.extract_strided_slice %1 {offsets = [0, 9], sizes = [8, 1], strides = [1, 1]} : vector<8x36xf32> to vector<8x1xf32>
    %70 = vector.extract_strided_slice %62 {offsets = [1, 0], sizes = [1, 512], strides = [1, 1]} : vector<8x512xf32> to vector<1x512xf32>
    %71 = vector.broadcast %69 : vector<8x1xf32> to vector<8x512xf32>
    %72 = vector.broadcast %70 : vector<1x512xf32> to vector<8x512xf32>
    %73 = arith.mulf %71, %72 : vector<8x512xf32>
    %74 = arith.addf %68, %73 : vector<8x512xf32>
    %75 = vector.extract_strided_slice %1 {offsets = [0, 10], sizes = [8, 1], strides = [1, 1]} : vector<8x36xf32> to vector<8x1xf32>
    %76 = vector.extract_strided_slice %62 {offsets = [2, 0], sizes = [1, 512], strides = [1, 1]} : vector<8x512xf32> to vector<1x512xf32>
    %77 = vector.broadcast %75 : vector<8x1xf32> to vector<8x512xf32>
    %78 = vector.broadcast %76 : vector<1x512xf32> to vector<8x512xf32>
    %79 = arith.mulf %77, %78 : vector<8x512xf32>
    %80 = arith.addf %74, %79 : vector<8x512xf32>
    %81 = vector.extract_strided_slice %1 {offsets = [0, 11], sizes = [8, 1], strides = [1, 1]} : vector<8x36xf32> to vector<8x1xf32>
    %82 = vector.extract_strided_slice %62 {offsets = [3, 0], sizes = [1, 512], strides = [1, 1]} : vector<8x512xf32> to vector<1x512xf32>
    %83 = vector.broadcast %81 : vector<8x1xf32> to vector<8x512xf32>
    %84 = vector.broadcast %82 : vector<1x512xf32> to vector<8x512xf32>
    %85 = arith.mulf %83, %84 : vector<8x512xf32>
    %86 = arith.addf %80, %85 : vector<8x512xf32>
    %c1_i32 = arith.constant 1 : i32
    %87 = tpu.dynamic_rotate %0 by %c1_i32 dim 1 : vector<8x512xf32>, i32 -> vector<8x512xf32>
    %c3 = arith.constant 3 : index
    %c0_7 = arith.constant 0 : index
    %88 = vector.load %arg6[%c3, %c0_7] : memref<9x512xf32, #tpu.memory_space<vmem>>, vector<1x512xf32>
    %89 = vector.broadcast %88 : vector<1x512xf32> to vector<8x512xf32>
    %90 = arith.mulf %87, %89 : vector<8x512xf32>
    %91 = vector.extract_strided_slice %1 {offsets = [0, 12], sizes = [8, 1], strides = [1, 1]} : vector<8x36xf32> to vector<8x1xf32>
    %92 = vector.extract_strided_slice %90 {offsets = [0, 0], sizes = [1, 512], strides = [1, 1]} : vector<8x512xf32> to vector<1x512xf32>
    %93 = vector.broadcast %91 : vector<8x1xf32> to vector<8x512xf32>
    %94 = vector.broadcast %92 : vector<1x512xf32> to vector<8x512xf32>
    %95 = arith.mulf %93, %94 : vector<8x512xf32>
    %96 = arith.addf %86, %95 : vector<8x512xf32>
    %97 = vector.extract_strided_slice %1 {offsets = [0, 13], sizes = [8, 1], strides = [1, 1]} : vector<8x36xf32> to vector<8x1xf32>
    %98 = vector.extract_strided_slice %90 {offsets = [1, 0], sizes = [1, 512], strides = [1, 1]} : vector<8x512xf32> to vector<1x512xf32>
    %99 = vector.broadcast %97 : vector<8x1xf32> to vector<8x512xf32>
    %100 = vector.broadcast %98 : vector<1x512xf32> to vector<8x512xf32>
    %101 = arith.mulf %99, %100 : vector<8x512xf32>
    %102 = arith.addf %96, %101 : vector<8x512xf32>
    %103 = vector.extract_strided_slice %1 {offsets = [0, 14], sizes = [8, 1], strides = [1, 1]} : vector<8x36xf32> to vector<8x1xf32>
    %104 = vector.extract_strided_slice %90 {offsets = [2, 0], sizes = [1, 512], strides = [1, 1]} : vector<8x512xf32> to vector<1x512xf32>
    %105 = vector.broadcast %103 : vector<8x1xf32> to vector<8x512xf32>
    %106 = vector.broadcast %104 : vector<1x512xf32> to vector<8x512xf32>
    %107 = arith.mulf %105, %106 : vector<8x512xf32>
    %108 = arith.addf %102, %107 : vector<8x512xf32>
    %109 = vector.extract_strided_slice %1 {offsets = [0, 15], sizes = [8, 1], strides = [1, 1]} : vector<8x36xf32> to vector<8x1xf32>
    %110 = vector.extract_strided_slice %90 {offsets = [3, 0], sizes = [1, 512], strides = [1, 1]} : vector<8x512xf32> to vector<1x512xf32>
    %111 = vector.broadcast %109 : vector<8x1xf32> to vector<8x512xf32>
    %112 = vector.broadcast %110 : vector<1x512xf32> to vector<8x512xf32>
    %113 = arith.mulf %111, %112 : vector<8x512xf32>
    %114 = arith.addf %108, %113 : vector<8x512xf32>
    %115 = vector.extract_strided_slice %1 {offsets = [0, 16], sizes = [8, 1], strides = [1, 1]} : vector<8x36xf32> to vector<8x1xf32>
    %116 = vector.extract_strided_slice %0 {offsets = [0, 0], sizes = [1, 512], strides = [1, 1]} : vector<8x512xf32> to vector<1x512xf32>
    %117 = vector.broadcast %115 : vector<8x1xf32> to vector<8x512xf32>
    %118 = vector.broadcast %116 : vector<1x512xf32> to vector<8x512xf32>
    %119 = arith.mulf %117, %118 : vector<8x512xf32>
    %120 = arith.addf %114, %119 : vector<8x512xf32>
    %121 = vector.extract_strided_slice %1 {offsets = [0, 17], sizes = [8, 1], strides = [1, 1]} : vector<8x36xf32> to vector<8x1xf32>
    %122 = vector.extract_strided_slice %0 {offsets = [1, 0], sizes = [1, 512], strides = [1, 1]} : vector<8x512xf32> to vector<1x512xf32>
    %123 = vector.broadcast %121 : vector<8x1xf32> to vector<8x512xf32>
    %124 = vector.broadcast %122 : vector<1x512xf32> to vector<8x512xf32>
    %125 = arith.mulf %123, %124 : vector<8x512xf32>
    %126 = arith.addf %120, %125 : vector<8x512xf32>
    %127 = vector.extract_strided_slice %1 {offsets = [0, 18], sizes = [8, 1], strides = [1, 1]} : vector<8x36xf32> to vector<8x1xf32>
    %128 = vector.extract_strided_slice %0 {offsets = [2, 0], sizes = [1, 512], strides = [1, 1]} : vector<8x512xf32> to vector<1x512xf32>
    %129 = vector.broadcast %127 : vector<8x1xf32> to vector<8x512xf32>
    %130 = vector.broadcast %128 : vector<1x512xf32> to vector<8x512xf32>
    %131 = arith.mulf %129, %130 : vector<8x512xf32>
    %132 = arith.addf %126, %131 : vector<8x512xf32>
    %133 = vector.extract_strided_slice %1 {offsets = [0, 19], sizes = [8, 1], strides = [1, 1]} : vector<8x36xf32> to vector<8x1xf32>
    %134 = vector.extract_strided_slice %0 {offsets = [3, 0], sizes = [1, 512], strides = [1, 1]} : vector<8x512xf32> to vector<1x512xf32>
    %135 = vector.broadcast %133 : vector<8x1xf32> to vector<8x512xf32>
    %136 = vector.broadcast %134 : vector<1x512xf32> to vector<8x512xf32>
    %137 = arith.mulf %135, %136 : vector<8x512xf32>
    %138 = arith.addf %132, %137 : vector<8x512xf32>
    %c511_i32 = arith.constant 511 : i32
    %139 = tpu.dynamic_rotate %0 by %c511_i32 dim 1 : vector<8x512xf32>, i32 -> vector<8x512xf32>
    %c5 = arith.constant 5 : index
    %c0_8 = arith.constant 0 : index
    %140 = vector.load %arg6[%c5, %c0_8] : memref<9x512xf32, #tpu.memory_space<vmem>>, vector<1x512xf32>
    %141 = vector.broadcast %140 : vector<1x512xf32> to vector<8x512xf32>
    %142 = arith.mulf %139, %141 : vector<8x512xf32>
    %143 = vector.extract_strided_slice %1 {offsets = [0, 20], sizes = [8, 1], strides = [1, 1]} : vector<8x36xf32> to vector<8x1xf32>
    %144 = vector.extract_strided_slice %142 {offsets = [0, 0], sizes = [1, 512], strides = [1, 1]} : vector<8x512xf32> to vector<1x512xf32>
    %145 = vector.broadcast %143 : vector<8x1xf32> to vector<8x512xf32>
    %146 = vector.broadcast %144 : vector<1x512xf32> to vector<8x512xf32>
    %147 = arith.mulf %145, %146 : vector<8x512xf32>
    %148 = arith.addf %138, %147 : vector<8x512xf32>
    %149 = vector.extract_strided_slice %1 {offsets = [0, 21], sizes = [8, 1], strides = [1, 1]} : vector<8x36xf32> to vector<8x1xf32>
    %150 = vector.extract_strided_slice %142 {offsets = [1, 0], sizes = [1, 512], strides = [1, 1]} : vector<8x512xf32> to vector<1x512xf32>
    %151 = vector.broadcast %149 : vector<8x1xf32> to vector<8x512xf32>
    %152 = vector.broadcast %150 : vector<1x512xf32> to vector<8x512xf32>
    %153 = arith.mulf %151, %152 : vector<8x512xf32>
    %154 = arith.addf %148, %153 : vector<8x512xf32>
    %155 = vector.extract_strided_slice %1 {offsets = [0, 22], sizes = [8, 1], strides = [1, 1]} : vector<8x36xf32> to vector<8x1xf32>
    %156 = vector.extract_strided_slice %142 {offsets = [2, 0], sizes = [1, 512], strides = [1, 1]} : vector<8x512xf32> to vector<1x512xf32>
    %157 = vector.broadcast %155 : vector<8x1xf32> to vector<8x512xf32>
    %158 = vector.broadcast %156 : vector<1x512xf32> to vector<8x512xf32>
    %159 = arith.mulf %157, %158 : vector<8x512xf32>
    %160 = arith.addf %154, %159 : vector<8x512xf32>
    %161 = vector.extract_strided_slice %1 {offsets = [0, 23], sizes = [8, 1], strides = [1, 1]} : vector<8x36xf32> to vector<8x1xf32>
    %162 = vector.extract_strided_slice %142 {offsets = [3, 0], sizes = [1, 512], strides = [1, 1]} : vector<8x512xf32> to vector<1x512xf32>
    %163 = vector.broadcast %161 : vector<8x1xf32> to vector<8x512xf32>
    %164 = vector.broadcast %162 : vector<1x512xf32> to vector<8x512xf32>
    %165 = arith.mulf %163, %164 : vector<8x512xf32>
    %166 = arith.addf %160, %165 : vector<8x512xf32>
    %c497_i32 = arith.constant 497 : i32
    %167 = tpu.dynamic_rotate %0 by %c497_i32 dim 1 : vector<8x512xf32>, i32 -> vector<8x512xf32>
    %c6 = arith.constant 6 : index
    %c0_9 = arith.constant 0 : index
    %168 = vector.load %arg6[%c6, %c0_9] : memref<9x512xf32, #tpu.memory_space<vmem>>, vector<1x512xf32>
    %169 = vector.broadcast %168 : vector<1x512xf32> to vector<8x512xf32>
    %170 = arith.mulf %167, %169 : vector<8x512xf32>
    %171 = vector.extract_strided_slice %1 {offsets = [0, 24], sizes = [8, 1], strides = [1, 1]} : vector<8x36xf32> to vector<8x1xf32>
    %172 = vector.extract_strided_slice %170 {offsets = [0, 0], sizes = [1, 512], strides = [1, 1]} : vector<8x512xf32> to vector<1x512xf32>
    %173 = vector.broadcast %171 : vector<8x1xf32> to vector<8x512xf32>
    %174 = vector.broadcast %172 : vector<1x512xf32> to vector<8x512xf32>
    %175 = arith.mulf %173, %174 : vector<8x512xf32>
    %176 = arith.addf %166, %175 : vector<8x512xf32>
    %177 = vector.extract_strided_slice %1 {offsets = [0, 25], sizes = [8, 1], strides = [1, 1]} : vector<8x36xf32> to vector<8x1xf32>
    %178 = vector.extract_strided_slice %170 {offsets = [1, 0], sizes = [1, 512], strides = [1, 1]} : vector<8x512xf32> to vector<1x512xf32>
    %179 = vector.broadcast %177 : vector<8x1xf32> to vector<8x512xf32>
    %180 = vector.broadcast %178 : vector<1x512xf32> to vector<8x512xf32>
    %181 = arith.mulf %179, %180 : vector<8x512xf32>
    %182 = arith.addf %176, %181 : vector<8x512xf32>
    %183 = vector.extract_strided_slice %1 {offsets = [0, 26], sizes = [8, 1], strides = [1, 1]} : vector<8x36xf32> to vector<8x1xf32>
    %184 = vector.extract_strided_slice %170 {offsets = [2, 0], sizes = [1, 512], strides = [1, 1]} : vector<8x512xf32> to vector<1x512xf32>
    %185 = vector.broadcast %183 : vector<8x1xf32> to vector<8x512xf32>
    %186 = vector.broadcast %184 : vector<1x512xf32> to vector<8x512xf32>
    %187 = arith.mulf %185, %186 : vector<8x512xf32>
    %188 = arith.addf %182, %187 : vector<8x512xf32>
    %189 = vector.extract_strided_slice %1 {offsets = [0, 27], sizes = [8, 1], strides = [1, 1]} : vector<8x36xf32> to vector<8x1xf32>
    %190 = vector.extract_strided_slice %170 {offsets = [3, 0], sizes = [1, 512], strides = [1, 1]} : vector<8x512xf32> to vector<1x512xf32>
    %191 = vector.broadcast %189 : vector<8x1xf32> to vector<8x512xf32>
    %192 = vector.broadcast %190 : vector<1x512xf32> to vector<8x512xf32>
    %193 = arith.mulf %191, %192 : vector<8x512xf32>
    %194 = arith.addf %188, %193 : vector<8x512xf32>
    %c496_i32 = arith.constant 496 : i32
    %195 = tpu.dynamic_rotate %0 by %c496_i32 dim 1 : vector<8x512xf32>, i32 -> vector<8x512xf32>
    %c7 = arith.constant 7 : index
    %c0_10 = arith.constant 0 : index
    %196 = vector.load %arg6[%c7, %c0_10] : memref<9x512xf32, #tpu.memory_space<vmem>>, vector<1x512xf32>
    %197 = vector.broadcast %196 : vector<1x512xf32> to vector<8x512xf32>
    %198 = arith.mulf %195, %197 : vector<8x512xf32>
    %199 = vector.extract_strided_slice %1 {offsets = [0, 28], sizes = [8, 1], strides = [1, 1]} : vector<8x36xf32> to vector<8x1xf32>
    %200 = vector.extract_strided_slice %198 {offsets = [0, 0], sizes = [1, 512], strides = [1, 1]} : vector<8x512xf32> to vector<1x512xf32>
    %201 = vector.broadcast %199 : vector<8x1xf32> to vector<8x512xf32>
    %202 = vector.broadcast %200 : vector<1x512xf32> to vector<8x512xf32>
    %203 = arith.mulf %201, %202 : vector<8x512xf32>
    %204 = arith.addf %194, %203 : vector<8x512xf32>
    %205 = vector.extract_strided_slice %1 {offsets = [0, 29], sizes = [8, 1], strides = [1, 1]} : vector<8x36xf32> to vector<8x1xf32>
    %206 = vector.extract_strided_slice %198 {offsets = [1, 0], sizes = [1, 512], strides = [1, 1]} : vector<8x512xf32> to vector<1x512xf32>
    %207 = vector.broadcast %205 : vector<8x1xf32> to vector<8x512xf32>
    %208 = vector.broadcast %206 : vector<1x512xf32> to vector<8x512xf32>
    %209 = arith.mulf %207, %208 : vector<8x512xf32>
    %210 = arith.addf %204, %209 : vector<8x512xf32>
    %211 = vector.extract_strided_slice %1 {offsets = [0, 30], sizes = [8, 1], strides = [1, 1]} : vector<8x36xf32> to vector<8x1xf32>
    %212 = vector.extract_strided_slice %198 {offsets = [2, 0], sizes = [1, 512], strides = [1, 1]} : vector<8x512xf32> to vector<1x512xf32>
    %213 = vector.broadcast %211 : vector<8x1xf32> to vector<8x512xf32>
    %214 = vector.broadcast %212 : vector<1x512xf32> to vector<8x512xf32>
    %215 = arith.mulf %213, %214 : vector<8x512xf32>
    %216 = arith.addf %210, %215 : vector<8x512xf32>
    %217 = vector.extract_strided_slice %1 {offsets = [0, 31], sizes = [8, 1], strides = [1, 1]} : vector<8x36xf32> to vector<8x1xf32>
    %218 = vector.extract_strided_slice %198 {offsets = [3, 0], sizes = [1, 512], strides = [1, 1]} : vector<8x512xf32> to vector<1x512xf32>
    %219 = vector.broadcast %217 : vector<8x1xf32> to vector<8x512xf32>
    %220 = vector.broadcast %218 : vector<1x512xf32> to vector<8x512xf32>
    %221 = arith.mulf %219, %220 : vector<8x512xf32>
    %222 = arith.addf %216, %221 : vector<8x512xf32>
    %c495_i32 = arith.constant 495 : i32
    %223 = tpu.dynamic_rotate %0 by %c495_i32 dim 1 : vector<8x512xf32>, i32 -> vector<8x512xf32>
    %c8 = arith.constant 8 : index
    %c0_11 = arith.constant 0 : index
    %224 = vector.load %arg6[%c8, %c0_11] : memref<9x512xf32, #tpu.memory_space<vmem>>, vector<1x512xf32>
    %225 = vector.broadcast %224 : vector<1x512xf32> to vector<8x512xf32>
    %226 = arith.mulf %223, %225 : vector<8x512xf32>
    %227 = vector.extract_strided_slice %1 {offsets = [0, 32], sizes = [8, 1], strides = [1, 1]} : vector<8x36xf32> to vector<8x1xf32>
    %228 = vector.extract_strided_slice %226 {offsets = [0, 0], sizes = [1, 512], strides = [1, 1]} : vector<8x512xf32> to vector<1x512xf32>
    %229 = vector.broadcast %227 : vector<8x1xf32> to vector<8x512xf32>
    %230 = vector.broadcast %228 : vector<1x512xf32> to vector<8x512xf32>
    %231 = arith.mulf %229, %230 : vector<8x512xf32>
    %232 = arith.addf %222, %231 : vector<8x512xf32>
    %233 = vector.extract_strided_slice %1 {offsets = [0, 33], sizes = [8, 1], strides = [1, 1]} : vector<8x36xf32> to vector<8x1xf32>
    %234 = vector.extract_strided_slice %226 {offsets = [1, 0], sizes = [1, 512], strides = [1, 1]} : vector<8x512xf32> to vector<1x512xf32>
    %235 = vector.broadcast %233 : vector<8x1xf32> to vector<8x512xf32>
    %236 = vector.broadcast %234 : vector<1x512xf32> to vector<8x512xf32>
    %237 = arith.mulf %235, %236 : vector<8x512xf32>
    %238 = arith.addf %232, %237 : vector<8x512xf32>
    %239 = vector.extract_strided_slice %1 {offsets = [0, 34], sizes = [8, 1], strides = [1, 1]} : vector<8x36xf32> to vector<8x1xf32>
    %240 = vector.extract_strided_slice %226 {offsets = [2, 0], sizes = [1, 512], strides = [1, 1]} : vector<8x512xf32> to vector<1x512xf32>
    %241 = vector.broadcast %239 : vector<8x1xf32> to vector<8x512xf32>
    %242 = vector.broadcast %240 : vector<1x512xf32> to vector<8x512xf32>
    %243 = arith.mulf %241, %242 : vector<8x512xf32>
    %244 = arith.addf %238, %243 : vector<8x512xf32>
    %245 = vector.extract_strided_slice %1 {offsets = [0, 35], sizes = [8, 1], strides = [1, 1]} : vector<8x36xf32> to vector<8x1xf32>
    %246 = vector.extract_strided_slice %226 {offsets = [3, 0], sizes = [1, 512], strides = [1, 1]} : vector<8x512xf32> to vector<1x512xf32>
    %247 = vector.broadcast %245 : vector<8x1xf32> to vector<8x512xf32>
    %248 = vector.broadcast %246 : vector<1x512xf32> to vector<8x512xf32>
    %249 = arith.mulf %247, %248 : vector<8x512xf32>
    %250 = arith.addf %244, %249 : vector<8x512xf32>
    %c0_12 = arith.constant 0 : index
    %c0_13 = arith.constant 0 : index
    %251 = vector.load %arg4[%c0_12, %c0_13] : memref<8x1xf32, #tpu.memory_space<vmem>>, vector<8x1xf32>
    %c0_14 = arith.constant 0 : index
    %c0_15 = arith.constant 0 : index
    %252 = vector.load %arg5[%c0_14, %c0_15] : memref<8x1xf32, #tpu.memory_space<vmem>>, vector<8x1xf32>
    %cst_16 = arith.constant dense<0.000000e+00> : vector<8xf32>
    %253 = vector.multi_reduction <add>, %250, %cst_16 [1] : vector<8x512xf32> to vector<8xf32>
    %254 = vector.shape_cast %253 : vector<8xf32> to vector<8x1xf32>
    %cst_17 = arith.constant 0.001953125 : f32
    %255 = vector.broadcast %cst_17 : f32 to vector<8x1xf32>
    %256 = arith.mulf %254, %255 : vector<8x1xf32>
    %257 = vector.broadcast %256 : vector<8x1xf32> to vector<8x512xf32>
    %258 = arith.subf %250, %257 : vector<8x512xf32>
    %259 = arith.mulf %258, %258 : vector<8x512xf32>
    %cst_18 = arith.constant dense<0.000000e+00> : vector<8xf32>
    %260 = vector.multi_reduction <add>, %259, %cst_18 [1] : vector<8x512xf32> to vector<8xf32>
    %261 = vector.shape_cast %260 : vector<8xf32> to vector<8x1xf32>
    %cst_19 = arith.constant 0.001953125 : f32
    %262 = vector.broadcast %cst_19 : f32 to vector<8x1xf32>
    %263 = arith.mulf %261, %262 : vector<8x1xf32>
    %cst_20 = arith.constant 9.99999974E-6 : f32
    %264 = vector.broadcast %cst_20 : f32 to vector<8x1xf32>
    %265 = arith.addf %263, %264 : vector<8x1xf32>
    %266 = math.rsqrt %265 : vector<8x1xf32>
    %267 = arith.mulf %251, %266 : vector<8x1xf32>
    %268 = vector.broadcast %267 : vector<8x1xf32> to vector<8x512xf32>
    %269 = arith.mulf %258, %268 : vector<8x512xf32>
    %270 = vector.broadcast %252 : vector<8x1xf32> to vector<8x512xf32>
    %271 = arith.addf %269, %270 : vector<8x512xf32>
    %cst_21 = arith.constant 0.000000e+00 : f32
    %272 = vector.broadcast %cst_21 : f32 to vector<8x512xf32>
    %273 = arith.maximumf %271, %272 : vector<8x512xf32>
    %c0_22 = arith.constant 0 : index
    %c0_23 = arith.constant 0 : index
    %274 = vector.load %arg3[%c0_22, %c0_23] : memref<8x36xf32, #tpu.memory_space<vmem>>, vector<8x36xf32>
    %cst_24 = arith.constant 0.000000e+00 : f32
    %275 = vector.broadcast %cst_24 : f32 to vector<8x512xf32>
    %c17_i32_25 = arith.constant 17 : i32
    %276 = tpu.dynamic_rotate %273 by %c17_i32_25 dim 1 : vector<8x512xf32>, i32 -> vector<8x512xf32>
    %c0_26 = arith.constant 0 : index
    %c0_27 = arith.constant 0 : index
    %277 = vector.load %arg6[%c0_26, %c0_27] : memref<9x512xf32, #tpu.memory_space<vmem>>, vector<1x512xf32>
    %278 = vector.broadcast %277 : vector<1x512xf32> to vector<8x512xf32>
    %279 = arith.mulf %276, %278 : vector<8x512xf32>
    %280 = vector.extract_strided_slice %274 {offsets = [0, 0], sizes = [8, 1], strides = [1, 1]} : vector<8x36xf32> to vector<8x1xf32>
    %281 = vector.extract_strided_slice %279 {offsets = [0, 0], sizes = [1, 512], strides = [1, 1]} : vector<8x512xf32> to vector<1x512xf32>
    %282 = vector.broadcast %280 : vector<8x1xf32> to vector<8x512xf32>
    %283 = vector.broadcast %281 : vector<1x512xf32> to vector<8x512xf32>
    %284 = arith.mulf %282, %283 : vector<8x512xf32>
    %285 = arith.addf %275, %284 : vector<8x512xf32>
    %286 = vector.extract_strided_slice %274 {offsets = [0, 1], sizes = [8, 1], strides = [1, 1]} : vector<8x36xf32> to vector<8x1xf32>
    %287 = vector.extract_strided_slice %279 {offsets = [1, 0], sizes = [1, 512], strides = [1, 1]} : vector<8x512xf32> to vector<1x512xf32>
    %288 = vector.broadcast %286 : vector<8x1xf32> to vector<8x512xf32>
    %289 = vector.broadcast %287 : vector<1x512xf32> to vector<8x512xf32>
    %290 = arith.mulf %288, %289 : vector<8x512xf32>
    %291 = arith.addf %285, %290 : vector<8x512xf32>
    %292 = vector.extract_strided_slice %274 {offsets = [0, 2], sizes = [8, 1], strides = [1, 1]} : vector<8x36xf32> to vector<8x1xf32>
    %293 = vector.extract_strided_slice %279 {offsets = [2, 0], sizes = [1, 512], strides = [1, 1]} : vector<8x512xf32> to vector<1x512xf32>
    %294 = vector.broadcast %292 : vector<8x1xf32> to vector<8x512xf32>
    %295 = vector.broadcast %293 : vector<1x512xf32> to vector<8x512xf32>
    %296 = arith.mulf %294, %295 : vector<8x512xf32>
    %297 = arith.addf %291, %296 : vector<8x512xf32>
    %298 = vector.extract_strided_slice %274 {offsets = [0, 3], sizes = [8, 1], strides = [1, 1]} : vector<8x36xf32> to vector<8x1xf32>
    %299 = vector.extract_strided_slice %279 {offsets = [3, 0], sizes = [1, 512], strides = [1, 1]} : vector<8x512xf32> to vector<1x512xf32>
    %300 = vector.broadcast %298 : vector<8x1xf32> to vector<8x512xf32>
    %301 = vector.broadcast %299 : vector<1x512xf32> to vector<8x512xf32>
    %302 = arith.mulf %300, %301 : vector<8x512xf32>
    %303 = arith.addf %297, %302 : vector<8x512xf32>
    %c16_i32_28 = arith.constant 16 : i32
    %304 = tpu.dynamic_rotate %273 by %c16_i32_28 dim 1 : vector<8x512xf32>, i32 -> vector<8x512xf32>
    %c1_29 = arith.constant 1 : index
    %c0_30 = arith.constant 0 : index
    %305 = vector.load %arg6[%c1_29, %c0_30] : memref<9x512xf32, #tpu.memory_space<vmem>>, vector<1x512xf32>
    %306 = vector.broadcast %305 : vector<1x512xf32> to vector<8x512xf32>
    %307 = arith.mulf %304, %306 : vector<8x512xf32>
    %308 = vector.extract_strided_slice %274 {offsets = [0, 4], sizes = [8, 1], strides = [1, 1]} : vector<8x36xf32> to vector<8x1xf32>
    %309 = vector.extract_strided_slice %307 {offsets = [0, 0], sizes = [1, 512], strides = [1, 1]} : vector<8x512xf32> to vector<1x512xf32>
    %310 = vector.broadcast %308 : vector<8x1xf32> to vector<8x512xf32>
    %311 = vector.broadcast %309 : vector<1x512xf32> to vector<8x512xf32>
    %312 = arith.mulf %310, %311 : vector<8x512xf32>
    %313 = arith.addf %303, %312 : vector<8x512xf32>
    %314 = vector.extract_strided_slice %274 {offsets = [0, 5], sizes = [8, 1], strides = [1, 1]} : vector<8x36xf32> to vector<8x1xf32>
    %315 = vector.extract_strided_slice %307 {offsets = [1, 0], sizes = [1, 512], strides = [1, 1]} : vector<8x512xf32> to vector<1x512xf32>
    %316 = vector.broadcast %314 : vector<8x1xf32> to vector<8x512xf32>
    %317 = vector.broadcast %315 : vector<1x512xf32> to vector<8x512xf32>
    %318 = arith.mulf %316, %317 : vector<8x512xf32>
    %319 = arith.addf %313, %318 : vector<8x512xf32>
    %320 = vector.extract_strided_slice %274 {offsets = [0, 6], sizes = [8, 1], strides = [1, 1]} : vector<8x36xf32> to vector<8x1xf32>
    %321 = vector.extract_strided_slice %307 {offsets = [2, 0], sizes = [1, 512], strides = [1, 1]} : vector<8x512xf32> to vector<1x512xf32>
    %322 = vector.broadcast %320 : vector<8x1xf32> to vector<8x512xf32>
    %323 = vector.broadcast %321 : vector<1x512xf32> to vector<8x512xf32>
    %324 = arith.mulf %322, %323 : vector<8x512xf32>
    %325 = arith.addf %319, %324 : vector<8x512xf32>
    %326 = vector.extract_strided_slice %274 {offsets = [0, 7], sizes = [8, 1], strides = [1, 1]} : vector<8x36xf32> to vector<8x1xf32>
    %327 = vector.extract_strided_slice %307 {offsets = [3, 0], sizes = [1, 512], strides = [1, 1]} : vector<8x512xf32> to vector<1x512xf32>
    %328 = vector.broadcast %326 : vector<8x1xf32> to vector<8x512xf32>
    %329 = vector.broadcast %327 : vector<1x512xf32> to vector<8x512xf32>
    %330 = arith.mulf %328, %329 : vector<8x512xf32>
    %331 = arith.addf %325, %330 : vector<8x512xf32>
    %c15_i32_31 = arith.constant 15 : i32
    %332 = tpu.dynamic_rotate %273 by %c15_i32_31 dim 1 : vector<8x512xf32>, i32 -> vector<8x512xf32>
    %c2_32 = arith.constant 2 : index
    %c0_33 = arith.constant 0 : index
    %333 = vector.load %arg6[%c2_32, %c0_33] : memref<9x512xf32, #tpu.memory_space<vmem>>, vector<1x512xf32>
    %334 = vector.broadcast %333 : vector<1x512xf32> to vector<8x512xf32>
    %335 = arith.mulf %332, %334 : vector<8x512xf32>
    %336 = vector.extract_strided_slice %274 {offsets = [0, 8], sizes = [8, 1], strides = [1, 1]} : vector<8x36xf32> to vector<8x1xf32>
    %337 = vector.extract_strided_slice %335 {offsets = [0, 0], sizes = [1, 512], strides = [1, 1]} : vector<8x512xf32> to vector<1x512xf32>
    %338 = vector.broadcast %336 : vector<8x1xf32> to vector<8x512xf32>
    %339 = vector.broadcast %337 : vector<1x512xf32> to vector<8x512xf32>
    %340 = arith.mulf %338, %339 : vector<8x512xf32>
    %341 = arith.addf %331, %340 : vector<8x512xf32>
    %342 = vector.extract_strided_slice %274 {offsets = [0, 9], sizes = [8, 1], strides = [1, 1]} : vector<8x36xf32> to vector<8x1xf32>
    %343 = vector.extract_strided_slice %335 {offsets = [1, 0], sizes = [1, 512], strides = [1, 1]} : vector<8x512xf32> to vector<1x512xf32>
    %344 = vector.broadcast %342 : vector<8x1xf32> to vector<8x512xf32>
    %345 = vector.broadcast %343 : vector<1x512xf32> to vector<8x512xf32>
    %346 = arith.mulf %344, %345 : vector<8x512xf32>
    %347 = arith.addf %341, %346 : vector<8x512xf32>
    %348 = vector.extract_strided_slice %274 {offsets = [0, 10], sizes = [8, 1], strides = [1, 1]} : vector<8x36xf32> to vector<8x1xf32>
    %349 = vector.extract_strided_slice %335 {offsets = [2, 0], sizes = [1, 512], strides = [1, 1]} : vector<8x512xf32> to vector<1x512xf32>
    %350 = vector.broadcast %348 : vector<8x1xf32> to vector<8x512xf32>
    %351 = vector.broadcast %349 : vector<1x512xf32> to vector<8x512xf32>
    %352 = arith.mulf %350, %351 : vector<8x512xf32>
    %353 = arith.addf %347, %352 : vector<8x512xf32>
    %354 = vector.extract_strided_slice %274 {offsets = [0, 11], sizes = [8, 1], strides = [1, 1]} : vector<8x36xf32> to vector<8x1xf32>
    %355 = vector.extract_strided_slice %335 {offsets = [3, 0], sizes = [1, 512], strides = [1, 1]} : vector<8x512xf32> to vector<1x512xf32>
    %356 = vector.broadcast %354 : vector<8x1xf32> to vector<8x512xf32>
    %357 = vector.broadcast %355 : vector<1x512xf32> to vector<8x512xf32>
    %358 = arith.mulf %356, %357 : vector<8x512xf32>
    %359 = arith.addf %353, %358 : vector<8x512xf32>
    %c1_i32_34 = arith.constant 1 : i32
    %360 = tpu.dynamic_rotate %273 by %c1_i32_34 dim 1 : vector<8x512xf32>, i32 -> vector<8x512xf32>
    %c3_35 = arith.constant 3 : index
    %c0_36 = arith.constant 0 : index
    %361 = vector.load %arg6[%c3_35, %c0_36] : memref<9x512xf32, #tpu.memory_space<vmem>>, vector<1x512xf32>
    %362 = vector.broadcast %361 : vector<1x512xf32> to vector<8x512xf32>
    %363 = arith.mulf %360, %362 : vector<8x512xf32>
    %364 = vector.extract_strided_slice %274 {offsets = [0, 12], sizes = [8, 1], strides = [1, 1]} : vector<8x36xf32> to vector<8x1xf32>
    %365 = vector.extract_strided_slice %363 {offsets = [0, 0], sizes = [1, 512], strides = [1, 1]} : vector<8x512xf32> to vector<1x512xf32>
    %366 = vector.broadcast %364 : vector<8x1xf32> to vector<8x512xf32>
    %367 = vector.broadcast %365 : vector<1x512xf32> to vector<8x512xf32>
    %368 = arith.mulf %366, %367 : vector<8x512xf32>
    %369 = arith.addf %359, %368 : vector<8x512xf32>
    %370 = vector.extract_strided_slice %274 {offsets = [0, 13], sizes = [8, 1], strides = [1, 1]} : vector<8x36xf32> to vector<8x1xf32>
    %371 = vector.extract_strided_slice %363 {offsets = [1, 0], sizes = [1, 512], strides = [1, 1]} : vector<8x512xf32> to vector<1x512xf32>
    %372 = vector.broadcast %370 : vector<8x1xf32> to vector<8x512xf32>
    %373 = vector.broadcast %371 : vector<1x512xf32> to vector<8x512xf32>
    %374 = arith.mulf %372, %373 : vector<8x512xf32>
    %375 = arith.addf %369, %374 : vector<8x512xf32>
    %376 = vector.extract_strided_slice %274 {offsets = [0, 14], sizes = [8, 1], strides = [1, 1]} : vector<8x36xf32> to vector<8x1xf32>
    %377 = vector.extract_strided_slice %363 {offsets = [2, 0], sizes = [1, 512], strides = [1, 1]} : vector<8x512xf32> to vector<1x512xf32>
    %378 = vector.broadcast %376 : vector<8x1xf32> to vector<8x512xf32>
    %379 = vector.broadcast %377 : vector<1x512xf32> to vector<8x512xf32>
    %380 = arith.mulf %378, %379 : vector<8x512xf32>
    %381 = arith.addf %375, %380 : vector<8x512xf32>
    %382 = vector.extract_strided_slice %274 {offsets = [0, 15], sizes = [8, 1], strides = [1, 1]} : vector<8x36xf32> to vector<8x1xf32>
    %383 = vector.extract_strided_slice %363 {offsets = [3, 0], sizes = [1, 512], strides = [1, 1]} : vector<8x512xf32> to vector<1x512xf32>
    %384 = vector.broadcast %382 : vector<8x1xf32> to vector<8x512xf32>
    %385 = vector.broadcast %383 : vector<1x512xf32> to vector<8x512xf32>
    %386 = arith.mulf %384, %385 : vector<8x512xf32>
    %387 = arith.addf %381, %386 : vector<8x512xf32>
    %388 = vector.extract_strided_slice %274 {offsets = [0, 16], sizes = [8, 1], strides = [1, 1]} : vector<8x36xf32> to vector<8x1xf32>
    %389 = vector.extract_strided_slice %273 {offsets = [0, 0], sizes = [1, 512], strides = [1, 1]} : vector<8x512xf32> to vector<1x512xf32>
    %390 = vector.broadcast %388 : vector<8x1xf32> to vector<8x512xf32>
    %391 = vector.broadcast %389 : vector<1x512xf32> to vector<8x512xf32>
    %392 = arith.mulf %390, %391 : vector<8x512xf32>
    %393 = arith.addf %387, %392 : vector<8x512xf32>
    %394 = vector.extract_strided_slice %274 {offsets = [0, 17], sizes = [8, 1], strides = [1, 1]} : vector<8x36xf32> to vector<8x1xf32>
    %395 = vector.extract_strided_slice %273 {offsets = [1, 0], sizes = [1, 512], strides = [1, 1]} : vector<8x512xf32> to vector<1x512xf32>
    %396 = vector.broadcast %394 : vector<8x1xf32> to vector<8x512xf32>
    %397 = vector.broadcast %395 : vector<1x512xf32> to vector<8x512xf32>
    %398 = arith.mulf %396, %397 : vector<8x512xf32>
    %399 = arith.addf %393, %398 : vector<8x512xf32>
    %400 = vector.extract_strided_slice %274 {offsets = [0, 18], sizes = [8, 1], strides = [1, 1]} : vector<8x36xf32> to vector<8x1xf32>
    %401 = vector.extract_strided_slice %273 {offsets = [2, 0], sizes = [1, 512], strides = [1, 1]} : vector<8x512xf32> to vector<1x512xf32>
    %402 = vector.broadcast %400 : vector<8x1xf32> to vector<8x512xf32>
    %403 = vector.broadcast %401 : vector<1x512xf32> to vector<8x512xf32>
    %404 = arith.mulf %402, %403 : vector<8x512xf32>
    %405 = arith.addf %399, %404 : vector<8x512xf32>
    %406 = vector.extract_strided_slice %274 {offsets = [0, 19], sizes = [8, 1], strides = [1, 1]} : vector<8x36xf32> to vector<8x1xf32>
    %407 = vector.extract_strided_slice %273 {offsets = [3, 0], sizes = [1, 512], strides = [1, 1]} : vector<8x512xf32> to vector<1x512xf32>
    %408 = vector.broadcast %406 : vector<8x1xf32> to vector<8x512xf32>
    %409 = vector.broadcast %407 : vector<1x512xf32> to vector<8x512xf32>
    %410 = arith.mulf %408, %409 : vector<8x512xf32>
    %411 = arith.addf %405, %410 : vector<8x512xf32>
    %c511_i32_37 = arith.constant 511 : i32
    %412 = tpu.dynamic_rotate %273 by %c511_i32_37 dim 1 : vector<8x512xf32>, i32 -> vector<8x512xf32>
    %c5_38 = arith.constant 5 : index
    %c0_39 = arith.constant 0 : index
    %413 = vector.load %arg6[%c5_38, %c0_39] : memref<9x512xf32, #tpu.memory_space<vmem>>, vector<1x512xf32>
    %414 = vector.broadcast %413 : vector<1x512xf32> to vector<8x512xf32>
    %415 = arith.mulf %412, %414 : vector<8x512xf32>
    %416 = vector.extract_strided_slice %274 {offsets = [0, 20], sizes = [8, 1], strides = [1, 1]} : vector<8x36xf32> to vector<8x1xf32>
    %417 = vector.extract_strided_slice %415 {offsets = [0, 0], sizes = [1, 512], strides = [1, 1]} : vector<8x512xf32> to vector<1x512xf32>
    %418 = vector.broadcast %416 : vector<8x1xf32> to vector<8x512xf32>
    %419 = vector.broadcast %417 : vector<1x512xf32> to vector<8x512xf32>
    %420 = arith.mulf %418, %419 : vector<8x512xf32>
    %421 = arith.addf %411, %420 : vector<8x512xf32>
    %422 = vector.extract_strided_slice %274 {offsets = [0, 21], sizes = [8, 1], strides = [1, 1]} : vector<8x36xf32> to vector<8x1xf32>
    %423 = vector.extract_strided_slice %415 {offsets = [1, 0], sizes = [1, 512], strides = [1, 1]} : vector<8x512xf32> to vector<1x512xf32>
    %424 = vector.broadcast %422 : vector<8x1xf32> to vector<8x512xf32>
    %425 = vector.broadcast %423 : vector<1x512xf32> to vector<8x512xf32>
    %426 = arith.mulf %424, %425 : vector<8x512xf32>
    %427 = arith.addf %421, %426 : vector<8x512xf32>
    %428 = vector.extract_strided_slice %274 {offsets = [0, 22], sizes = [8, 1], strides = [1, 1]} : vector<8x36xf32> to vector<8x1xf32>
    %429 = vector.extract_strided_slice %415 {offsets = [2, 0], sizes = [1, 512], strides = [1, 1]} : vector<8x512xf32> to vector<1x512xf32>
    %430 = vector.broadcast %428 : vector<8x1xf32> to vector<8x512xf32>
    %431 = vector.broadcast %429 : vector<1x512xf32> to vector<8x512xf32>
    %432 = arith.mulf %430, %431 : vector<8x512xf32>
    %433 = arith.addf %427, %432 : vector<8x512xf32>
    %434 = vector.extract_strided_slice %274 {offsets = [0, 23], sizes = [8, 1], strides = [1, 1]} : vector<8x36xf32> to vector<8x1xf32>
    %435 = vector.extract_strided_slice %415 {offsets = [3, 0], sizes = [1, 512], strides = [1, 1]} : vector<8x512xf32> to vector<1x512xf32>
    %436 = vector.broadcast %434 : vector<8x1xf32> to vector<8x512xf32>
    %437 = vector.broadcast %435 : vector<1x512xf32> to vector<8x512xf32>
    %438 = arith.mulf %436, %437 : vector<8x512xf32>
    %439 = arith.addf %433, %438 : vector<8x512xf32>
    %c497_i32_40 = arith.constant 497 : i32
    %440 = tpu.dynamic_rotate %273 by %c497_i32_40 dim 1 : vector<8x512xf32>, i32 -> vector<8x512xf32>
    %c6_41 = arith.constant 6 : index
    %c0_42 = arith.constant 0 : index
    %441 = vector.load %arg6[%c6_41, %c0_42] : memref<9x512xf32, #tpu.memory_space<vmem>>, vector<1x512xf32>
    %442 = vector.broadcast %441 : vector<1x512xf32> to vector<8x512xf32>
    %443 = arith.mulf %440, %442 : vector<8x512xf32>
    %444 = vector.extract_strided_slice %274 {offsets = [0, 24], sizes = [8, 1], strides = [1, 1]} : vector<8x36xf32> to vector<8x1xf32>
    %445 = vector.extract_strided_slice %443 {offsets = [0, 0], sizes = [1, 512], strides = [1, 1]} : vector<8x512xf32> to vector<1x512xf32>
    %446 = vector.broadcast %444 : vector<8x1xf32> to vector<8x512xf32>
    %447 = vector.broadcast %445 : vector<1x512xf32> to vector<8x512xf32>
    %448 = arith.mulf %446, %447 : vector<8x512xf32>
    %449 = arith.addf %439, %448 : vector<8x512xf32>
    %450 = vector.extract_strided_slice %274 {offsets = [0, 25], sizes = [8, 1], strides = [1, 1]} : vector<8x36xf32> to vector<8x1xf32>
    %451 = vector.extract_strided_slice %443 {offsets = [1, 0], sizes = [1, 512], strides = [1, 1]} : vector<8x512xf32> to vector<1x512xf32>
    %452 = vector.broadcast %450 : vector<8x1xf32> to vector<8x512xf32>
    %453 = vector.broadcast %451 : vector<1x512xf32> to vector<8x512xf32>
    %454 = arith.mulf %452, %453 : vector<8x512xf32>
    %455 = arith.addf %449, %454 : vector<8x512xf32>
    %456 = vector.extract_strided_slice %274 {offsets = [0, 26], sizes = [8, 1], strides = [1, 1]} : vector<8x36xf32> to vector<8x1xf32>
    %457 = vector.extract_strided_slice %443 {offsets = [2, 0], sizes = [1, 512], strides = [1, 1]} : vector<8x512xf32> to vector<1x512xf32>
    %458 = vector.broadcast %456 : vector<8x1xf32> to vector<8x512xf32>
    %459 = vector.broadcast %457 : vector<1x512xf32> to vector<8x512xf32>
    %460 = arith.mulf %458, %459 : vector<8x512xf32>
    %461 = arith.addf %455, %460 : vector<8x512xf32>
    %462 = vector.extract_strided_slice %274 {offsets = [0, 27], sizes = [8, 1], strides = [1, 1]} : vector<8x36xf32> to vector<8x1xf32>
    %463 = vector.extract_strided_slice %443 {offsets = [3, 0], sizes = [1, 512], strides = [1, 1]} : vector<8x512xf32> to vector<1x512xf32>
    %464 = vector.broadcast %462 : vector<8x1xf32> to vector<8x512xf32>
    %465 = vector.broadcast %463 : vector<1x512xf32> to vector<8x512xf32>
    %466 = arith.mulf %464, %465 : vector<8x512xf32>
    %467 = arith.addf %461, %466 : vector<8x512xf32>
    %c496_i32_43 = arith.constant 496 : i32
    %468 = tpu.dynamic_rotate %273 by %c496_i32_43 dim 1 : vector<8x512xf32>, i32 -> vector<8x512xf32>
    %c7_44 = arith.constant 7 : index
    %c0_45 = arith.constant 0 : index
    %469 = vector.load %arg6[%c7_44, %c0_45] : memref<9x512xf32, #tpu.memory_space<vmem>>, vector<1x512xf32>
    %470 = vector.broadcast %469 : vector<1x512xf32> to vector<8x512xf32>
    %471 = arith.mulf %468, %470 : vector<8x512xf32>
    %472 = vector.extract_strided_slice %274 {offsets = [0, 28], sizes = [8, 1], strides = [1, 1]} : vector<8x36xf32> to vector<8x1xf32>
    %473 = vector.extract_strided_slice %471 {offsets = [0, 0], sizes = [1, 512], strides = [1, 1]} : vector<8x512xf32> to vector<1x512xf32>
    %474 = vector.broadcast %472 : vector<8x1xf32> to vector<8x512xf32>
    %475 = vector.broadcast %473 : vector<1x512xf32> to vector<8x512xf32>
    %476 = arith.mulf %474, %475 : vector<8x512xf32>
    %477 = arith.addf %467, %476 : vector<8x512xf32>
    %478 = vector.extract_strided_slice %274 {offsets = [0, 29], sizes = [8, 1], strides = [1, 1]} : vector<8x36xf32> to vector<8x1xf32>
    %479 = vector.extract_strided_slice %471 {offsets = [1, 0], sizes = [1, 512], strides = [1, 1]} : vector<8x512xf32> to vector<1x512xf32>
    %480 = vector.broadcast %478 : vector<8x1xf32> to vector<8x512xf32>
    %481 = vector.broadcast %479 : vector<1x512xf32> to vector<8x512xf32>
    %482 = arith.mulf %480, %481 : vector<8x512xf32>
    %483 = arith.addf %477, %482 : vector<8x512xf32>
    %484 = vector.extract_strided_slice %274 {offsets = [0, 30], sizes = [8, 1], strides = [1, 1]} : vector<8x36xf32> to vector<8x1xf32>
    %485 = vector.extract_strided_slice %471 {offsets = [2, 0], sizes = [1, 512], strides = [1, 1]} : vector<8x512xf32> to vector<1x512xf32>
    %486 = vector.broadcast %484 : vector<8x1xf32> to vector<8x512xf32>
    %487 = vector.broadcast %485 : vector<1x512xf32> to vector<8x512xf32>
    %488 = arith.mulf %486, %487 : vector<8x512xf32>
    %489 = arith.addf %483, %488 : vector<8x512xf32>
    %490 = vector.extract_strided_slice %274 {offsets = [0, 31], sizes = [8, 1], strides = [1, 1]} : vector<8x36xf32> to vector<8x1xf32>
    %491 = vector.extract_strided_slice %471 {offsets = [3, 0], sizes = [1, 512], strides = [1, 1]} : vector<8x512xf32> to vector<1x512xf32>
    %492 = vector.broadcast %490 : vector<8x1xf32> to vector<8x512xf32>
    %493 = vector.broadcast %491 : vector<1x512xf32> to vector<8x512xf32>
    %494 = arith.mulf %492, %493 : vector<8x512xf32>
    %495 = arith.addf %489, %494 : vector<8x512xf32>
    %c495_i32_46 = arith.constant 495 : i32
    %496 = tpu.dynamic_rotate %273 by %c495_i32_46 dim 1 : vector<8x512xf32>, i32 -> vector<8x512xf32>
    %c8_47 = arith.constant 8 : index
    %c0_48 = arith.constant 0 : index
    %497 = vector.load %arg6[%c8_47, %c0_48] : memref<9x512xf32, #tpu.memory_space<vmem>>, vector<1x512xf32>
    %498 = vector.broadcast %497 : vector<1x512xf32> to vector<8x512xf32>
    %499 = arith.mulf %496, %498 : vector<8x512xf32>
    %500 = vector.extract_strided_slice %274 {offsets = [0, 32], sizes = [8, 1], strides = [1, 1]} : vector<8x36xf32> to vector<8x1xf32>
    %501 = vector.extract_strided_slice %499 {offsets = [0, 0], sizes = [1, 512], strides = [1, 1]} : vector<8x512xf32> to vector<1x512xf32>
    %502 = vector.broadcast %500 : vector<8x1xf32> to vector<8x512xf32>
    %503 = vector.broadcast %501 : vector<1x512xf32> to vector<8x512xf32>
    %504 = arith.mulf %502, %503 : vector<8x512xf32>
    %505 = arith.addf %495, %504 : vector<8x512xf32>
    %506 = vector.extract_strided_slice %274 {offsets = [0, 33], sizes = [8, 1], strides = [1, 1]} : vector<8x36xf32> to vector<8x1xf32>
    %507 = vector.extract_strided_slice %499 {offsets = [1, 0], sizes = [1, 512], strides = [1, 1]} : vector<8x512xf32> to vector<1x512xf32>
    %508 = vector.broadcast %506 : vector<8x1xf32> to vector<8x512xf32>
    %509 = vector.broadcast %507 : vector<1x512xf32> to vector<8x512xf32>
    %510 = arith.mulf %508, %509 : vector<8x512xf32>
    %511 = arith.addf %505, %510 : vector<8x512xf32>
    %512 = vector.extract_strided_slice %274 {offsets = [0, 34], sizes = [8, 1], strides = [1, 1]} : vector<8x36xf32> to vector<8x1xf32>
    %513 = vector.extract_strided_slice %499 {offsets = [2, 0], sizes = [1, 512], strides = [1, 1]} : vector<8x512xf32> to vector<1x512xf32>
    %514 = vector.broadcast %512 : vector<8x1xf32> to vector<8x512xf32>
    %515 = vector.broadcast %513 : vector<1x512xf32> to vector<8x512xf32>
    %516 = arith.mulf %514, %515 : vector<8x512xf32>
    %517 = arith.addf %511, %516 : vector<8x512xf32>
    %518 = vector.extract_strided_slice %274 {offsets = [0, 35], sizes = [8, 1], strides = [1, 1]} : vector<8x36xf32> to vector<8x1xf32>
    %519 = vector.extract_strided_slice %499 {offsets = [3, 0], sizes = [1, 512], strides = [1, 1]} : vector<8x512xf32> to vector<1x512xf32>
    %520 = vector.broadcast %518 : vector<8x1xf32> to vector<8x512xf32>
    %521 = vector.broadcast %519 : vector<1x512xf32> to vector<8x512xf32>
    %522 = arith.mulf %520, %521 : vector<8x512xf32>
    %523 = arith.addf %517, %522 : vector<8x512xf32>
    %cst_49 = arith.constant dense<0.000000e+00> : vector<8xf32>
    %524 = vector.multi_reduction <add>, %523, %cst_49 [1] : vector<8x512xf32> to vector<8xf32>
    %525 = vector.shape_cast %524 : vector<8xf32> to vector<8x1xf32>
    %cst_50 = arith.constant 0.001953125 : f32
    %526 = vector.broadcast %cst_50 : f32 to vector<8x1xf32>
    %527 = arith.mulf %525, %526 : vector<8x1xf32>
    %528 = vector.broadcast %527 : vector<8x1xf32> to vector<8x512xf32>
    %529 = arith.subf %523, %528 : vector<8x512xf32>
    %530 = arith.mulf %529, %529 : vector<8x512xf32>
    %cst_51 = arith.constant dense<0.000000e+00> : vector<8xf32>
    %531 = vector.multi_reduction <add>, %530, %cst_51 [1] : vector<8x512xf32> to vector<8xf32>
    %532 = vector.shape_cast %531 : vector<8xf32> to vector<8x1xf32>
    %cst_52 = arith.constant 0.001953125 : f32
    %533 = vector.broadcast %cst_52 : f32 to vector<8x1xf32>
    %534 = arith.mulf %532, %533 : vector<8x1xf32>
    %cst_53 = arith.constant 9.99999974E-6 : f32
    %535 = vector.broadcast %cst_53 : f32 to vector<8x1xf32>
    %536 = arith.addf %534, %535 : vector<8x1xf32>
    %537 = math.rsqrt %536 : vector<8x1xf32>
    %538 = vector.broadcast %537 : vector<8x1xf32> to vector<8x512xf32>
    %539 = arith.mulf %529, %538 : vector<8x512xf32>
    %540 = arith.addf %539, %0 : vector<8x512xf32>
    %cst_54 = arith.constant 0.000000e+00 : f32
    %541 = vector.broadcast %cst_54 : f32 to vector<8x512xf32>
    %542 = arith.maximumf %540, %541 : vector<8x512xf32>
    %c0_55 = arith.constant 0 : index
    %c0_56 = arith.constant 0 : index
    %543 = vector.load %arg7[%c0_55, %c0_56] : memref<8x512xf32, #tpu.memory_space<vmem>>, vector<8x512xf32>
    tpu.vector_store %arg7[%c0_55, %c0_56], %542 {strides = array<i32>} : memref<8x512xf32, #tpu.memory_space<vmem>>, vector<8x512xf32>,
    return
  }
  func.func @transform_0(%arg0: i32) -> (i32, i32) {
    %c0_i32 = arith.constant 0 : i32
    %c0_i32_0 = arith.constant 0 : i32
    %c0_i32_1 = arith.constant 0 : i32
    return %c0_i32, %c0_i32_0 : i32, i32
  }
  func.func @transform_1(%arg0: i32) -> (i32, i32) {
    %c0_i32 = arith.constant 0 : i32
    %c0_i32_0 = arith.constant 0 : i32
    %c0_i32_1 = arith.constant 0 : i32
    return %c0_i32, %c0_i32_0 : i32, i32
  }
  func.func @transform_2(%arg0: i32) -> (i32, i32) {
    %c0_i32 = arith.constant 0 : i32
    %c0_i32_0 = arith.constant 0 : i32
    %c0_i32_1 = arith.constant 0 : i32
    return %c0_i32, %c0_i32_0 : i32, i32
  }
  func.func @transform_3(%arg0: i32) -> (i32, i32) {
    %c0_i32 = arith.constant 0 : i32
    %c0_i32_0 = arith.constant 0 : i32
    %c0_i32_1 = arith.constant 0 : i32
    return %c0_i32, %c0_i32_0 : i32, i32
  }
  func.func @transform_4(%arg0: i32) -> (i32, i32) {
    %c0_i32 = arith.constant 0 : i32
    %c0_i32_0 = arith.constant 0 : i32
    %c0_i32_1 = arith.constant 0 : i32
    return %c0_i32, %c0_i32_0 : i32, i32
  }
  func.func @transform_5(%arg0: i32) -> (i32, i32) {
    %c0_i32 = arith.constant 0 : i32
    %c0_i32_0 = arith.constant 0 : i32
    %c0_i32_1 = arith.constant 0 : i32
    return %c0_i32, %c0_i32_0 : i32, i32
  }
  func.func @transform_6(%arg0: i32) -> (i32, i32) {
    %c0_i32 = arith.constant 0 : i32
    %c0_i32_0 = arith.constant 0 : i32
    %c0_i32_1 = arith.constant 0 : i32
    return %c0_i32, %c0_i32_0 : i32, i32
  }
}

</mosaic_0001>

<bundles_post_ra>
// kernel: tpu_custom_call.1
= control target key start
LH: loop header
LB: loop body
LE: loop exit
PB: predicated region body
PF: predicated region fallthrough
CT: control target
= control target key end

     0   :  { %11 = vsyncpa [#allocation3], 0  ;;  %s4592_s0 = inlined_call_operand.hbm [shape: f32[8,512], index: 0, kind: input, shape index: {}]   ;;  %s4593_s1 = inlined_call_operand.vmem [shape: f32[8,36], index: 1, kind: input, shape index: {}]   ;;  %s4594_s2 = inlined_call_operand.vmem [shape: f32[8,36], index: 2, kind: input, shape index: {}]   ;;  %s4595_s3 = inlined_call_operand.vmem [shape: f32[8,1], index: 3, kind: input, shape index: {}]   ;;  %s4596_s4 = inlined_call_operand.vmem [shape: f32[8,1], index: 4, kind: input, shape index: {}]   ;;  %s4597_s5 = inlined_call_operand.hbm [shape: f32[9,512], index: 5, kind: input, shape index: {}]   ;;  %s4598_s6 = inlined_call_operand.hbm [shape: f32[8,512], index: 6, kind: output, shape index: {}]  }
   0x1   :  { %12 = vsyncpa [#allocation6], 0 }
   0x2   :  { %13 = vsyncpa [#allocation4], 0  ;;  %s2821_s21 = smov [#allocation2]   ;;  %s2822_s23 = smov [#allocation5]  }
   0x3   :  { %s20_s22 = sshll.u32 %s2821_s21, 4  ;;  %s37_s24 = sshll.u32 %s2822_s23, 4  ;;  %s21_s22 = int_to_ptr.vmem [resolvable:$true] %s20_s22  ;;  %s38_s24 = int_to_ptr.vmem [resolvable:$true] %s37_s24 }
   0x4   :  { %s2763_s25 = scalar_lea.vmem %s21_s22, 512  ;;  %p2768_p1 = scmp.lt.s32.totalorder %s21_s22, %s21_s22 }
   0x5   :  { %p2764_p0 = scmp.ne.s32.totalorder %s21_s22, %s2763_s25  ;;  %p2769_p2 = scmp.lt.s32.totalorder %s2763_s25, %s2763_s25 }
   0x7   :  { %p2770_p3 = por %p2769_p2, %p2768_p1 }
   0x9   :  { %p2771_p4 = pnand %p2770_p3, %p2764_p0 }
   0xb   :  { %2774 = shalt.err (!%p2771_p4)
}
   0xc   :  { %23 = dma.hbm_to_vmem [thread:$0]  %s4592_s0, 512, %s21_s22, [#allocation3]  }
   0xd   :  { %s2783_s28 = scalar_lea.vmem %s38_s24, 1024  ;;  %p2788_p6 = scmp.lt.s32.totalorder %s38_s24, %s38_s24 }
   0xe   :  { %p2784_p5 = scmp.ne.s32.totalorder %s38_s24, %s2783_s28  ;;  %p2789_p7 = scmp.lt.s32.totalorder %s2783_s28, %s2783_s28 }
  0x10   :  { %p2790_p8 = por %p2789_p7, %p2788_p6 }
  0x12   :  { %p2791_p9 = pnand %p2790_p8, %p2784_p5 }
  0x14   :  { %2794 = shalt.err (!%p2791_p9)
}
  0x15   :  { %s2823_s29 = smov 512   ;;  %s2824_s30 = smov 32  }
  0x16   :  { %43 = dma.hbm_to_vmem [thread:$0]  %s4597_s5, 1024, %s38_s24, [#allocation6], %s2823_s29, %s2823_s29, %s2824_s30  }
  0x17   :  { %2815 = dma.done.wait [#allocation3], 512  }
  0x18   :  { %2816 = vsyncadd [#allocation3], 4294966784 }
  0x19   :  { %2817 = dma.done.wait [#allocation6], 1024  }
  0x1a   :  { %2818 = vsyncadd [#allocation6], 4294966272  ;;  %v4630_v0 = vmov 0   ;;  %v4634_v1 = vmov 1   ;;  %v2913_v2 = vld [vmem:[#allocation2 + $0x18] sm:$0xff]  ;;  %v2915_v3 = vld [vmem:[#allocation2] sm:$0xff]  ;;  %v63_v49 = vlaneseq }
  0x1b   :  { %2673 = vset.pattern.permute.xlu1 %v4630_v0  ;;  %2674 = vset.pattern.permute.xlu0 %v4634_v1  ;;  %s2827_s0 = smov 17   ;;  %v2924_v4 = vld [vmem:[%s4593_s1] sm:$0xff]  ;;  %v2926_v5 = vld [vmem:[#allocation2 + $0x8] sm:$0xff]  ;;  %v2931_v6 = vld [vmem:[#allocation2 + $0x10] sm:$0xff]  ;;  %v4633_v7 = vmov 2   ;;  %v2829_v8 = vmov 3  }
  0x1c   :  { %61 = vrot.lane.b32.xlu1 %v2913_v2, %s2827_s0  ;;  %55 = vrot.lane.b32.xlu0 %v2915_v3, %s2827_s0  ;;  %s2830_s1 = smov 16   ;;  %v4632_v9 = vmov 4   ;;  %v4613_v10 = vmov 6   ;;  %v4631_v11 = vmov 5   ;;  %s2834_s10 = smov 15   ;;  %v4612_v12 = vmov 8  }
  0x1d   :  { %v4629_v13 = vmov 7   ;;  %v4611_v14 = vmov 10   ;;  %v4628_v15 = vmov 9   ;;  %s2839_s11 = smov 1   ;;  %v4610_v16 = vmov 12   ;;  %s2845_s12 = smov 127  }
  0x1e   :  { %v4609_v17 = vmov 14   ;;  %v4627_v18 = vmov 11   ;;  %v4608_v19 = vmov 17   ;;  %v4626_v20 = vmov 13   ;;  %s2848_s13 = smov 113   ;;  %s2853_s14 = smov 112  }
  0x1f   :  { %v4607_v21 = vmov 22   ;;  %v4625_v22 = vmov 15   ;;  %v4606_v23 = vmov 24   ;;  %v4624_v24 = vmov 16   ;;  %s2858_s15 = smov 111  }
  0x20   :  { %98 = vperm.xlu1 %2673, %v2924_v4   ;;  %57 = vrot.lane.b32.xlu0 %v2926_v5, %s2827_s0  ;;  %v4605_v25 = vmov 26   ;;  %v4623_v26 = vmov 18   ;;  %v4620_v27 = vmov 19   ;;  %v4604_v28 = vmov 28  }
  0x21   :  { %v4619_v29 = vmov 20   ;;  %v4603_v30 = vmov 30   ;;  %v4618_v31 = vmov 21   ;;  %v4601_v32 = vmov 32  }
  0x22   :  { %v4617_v33 = vmov 23   ;;  %v4600_v34 = vmov 34   ;;  %v4616_v35 = vmov 25   ;;  %v4615_v38 = vmov 27  }
  0x23   :  { %v4614_v41 = vmov 29   ;;  %v4602_v48 = vmov 31   ;;  %v73_v52 = vshrl.u32 %v63_v49, 7  ;;  %v3069_v53 = vand.u32 127, %v63_v49 }
  0x24   :  { %59 = vrot.lane.b32.xlu1 %v2931_v6, %s2827_s0  ;;  %126 = vperm.xlu0 %2674, %v2924_v4   ;;  %v4599_v54 = vmov 33   ;;  %v70_v57 = vld [vmem:[#allocation5] ss:$8 sm:$0xf] }
  0x25   :  { %2675 = vset.pattern.permute.xlu1 %v4633_v7  ;;  %v3074_v56 = vsub.s32 2, %v73_v52  ;;  %v3076_v58 = vsub.s32 0, %v73_v52  ;;  %vm65_vm0 = vcmp.lt.s32.totalorder %v3069_v53, 17  ;;  %v3081_v59 = vsub.s32 3, %v73_v52 }
  0x26   :  { %vm217_vm1 = vcmp.lt.s32.totalorder %v3069_v53, 16  ;;  %vm369_vm2 = vcmp.lt.s32.totalorder %v3069_v53, 15  ;;  %vm521_vm3 = vcmp.lt.s32.totalorder %v3069_v53, 1  ;;  %vm785_vm4 = vcmp.lt.s32.totalorder %v3069_v53, 127 }
  0x27   :  { %v3084_v60 = vrot.slane %v70_v57, %v3074_v56  ;;  %v3093_v49 = vrot.slane %v70_v57, %v3081_v59  ;;  %vm937_vm5 = vcmp.lt.s32.totalorder %v3069_v53, 113  ;;  %vm1089_vm6 = vcmp.lt.s32.totalorder %v3069_v53, 112 }
  0x28   :  { %154 = vperm.xlu1 %2675, %v2924_v4   ;;  %2676 = vset.pattern.permute.xlu0 %v2829_v8  ;;  %vm1241_vm7 = vcmp.lt.s32.totalorder %v3069_v53, 111 }
  0x29   :  { %182 = vperm.xlu0 %2676, %v2924_v4  }
  0x2c   :  { %209 = vrot.lane.b32.xlu1 %v2915_v3, %s2830_s1 }
  0x2d   :  { %215 = vrot.lane.b32.xlu0 %v2913_v2, %s2830_s1  ;;  %2677 = vset.pattern.permute.xlu1 %v4632_v9 }
  0x2e   :  { %2679 = vset.pattern.permute.xlu0 %v4613_v10 }
  0x30   :  { %211 = vrot.lane.b32.xlu1 %v2926_v5, %s2830_s1 }
  0x31   :  { %213 = vrot.lane.b32.xlu0 %v2931_v6, %s2830_s1 }
  0x34   :  { %250 = vperm.xlu1 %2677, %v2924_v4  }
  0x35   :  { %306 = vperm.xlu0 %2679, %v2924_v4  }
  0x38   :  { %2678 = vset.pattern.permute.xlu1 %v4631_v11 }
  0x39   :  { %278 = vperm.xlu1 %2678, %v2924_v4   ;;  %363 = vrot.lane.b32.xlu0 %v2926_v5, %s2834_s10 }
  0x3a   :  { %2681 = vset.pattern.permute.xlu0 %v4612_v12 }
  0x3d   :  { %2680 = vset.pattern.permute.xlu1 %v4629_v13  ;;  %402 = vperm.xlu0 %2681, %v2924_v4  }
  0x3e   :  { %334 = vperm.xlu1 %2680, %v2924_v4  }
  0x41   :  { %2683 = vset.pattern.permute.xlu0 %v4611_v14 }
  0x42   :  { %361 = vrot.lane.b32.xlu1 %v2915_v3, %s2834_s10  ;;  %458 = vperm.xlu0 %2683, %v2924_v4  }
  0x43   :  { %2682 = vset.pattern.permute.xlu1 %v4628_v15 }
  0x46   :  { %367 = vrot.lane.b32.xlu1 %v2913_v2, %s2834_s10  ;;  %515 = vrot.lane.b32.xlu0 %v2926_v5, %s2839_s11 }
  0x47   :  { %2685 = vset.pattern.permute.xlu0 %v4610_v16 }
  0x4a   :  { %365 = vrot.lane.b32.xlu1 %v2931_v6, %s2834_s10  ;;  %554 = vperm.xlu0 %2685, %v2924_v4  }
  0x4e   :  { %430 = vperm.xlu1 %2682, %v2924_v4   ;;  %2687 = vset.pattern.permute.xlu0 %v4609_v17 }
  0x4f   :  { %610 = vperm.xlu0 %2687, %v2924_v4  }
  0x52   :  { %2684 = vset.pattern.permute.xlu1 %v4627_v18 }
  0x53   :  { %486 = vperm.xlu1 %2684, %v2924_v4   ;;  %2690 = vset.pattern.permute.xlu0 %v4608_v19 }
  0x54   :  { %694 = vperm.xlu0 %2690, %v2924_v4  }
  0x57   :  { %513 = vrot.lane.b32.xlu1 %v2915_v3, %s2839_s11 }
  0x58   :  { %2686 = vset.pattern.permute.xlu1 %v4626_v20  ;;  %777 = vrot.lane.b32.xlu0 %v2915_v3, %s2845_s12 }
  0x59   :  { %2695 = vset.pattern.permute.xlu0 %v4607_v21 }
  0x5b   :  { %519 = vrot.lane.b32.xlu1 %v2913_v2, %s2839_s11 }
  0x5c   :  { %781 = vrot.lane.b32.xlu0 %v2931_v6, %s2845_s12 }
  0x5f   :  { %517 = vrot.lane.b32.xlu1 %v2931_v6, %s2839_s11 }
  0x60   :  { %783 = vrot.lane.b32.xlu0 %v2913_v2, %s2845_s12 }
  0x63   :  { %582 = vperm.xlu1 %2686, %v2924_v4  }
  0x64   :  { %874 = vperm.xlu0 %2695, %v2924_v4  }
  0x67   :  { %2688 = vset.pattern.permute.xlu1 %v4625_v22 }
  0x68   :  { %638 = vperm.xlu1 %2688, %v2924_v4   ;;  %931 = vrot.lane.b32.xlu0 %v2926_v5, %s2848_s13 }
  0x69   :  { %2697 = vset.pattern.permute.xlu0 %v4606_v23 }
  0x6c   :  { %2689 = vset.pattern.permute.xlu1 %v4624_v24  ;;  %970 = vperm.xlu0 %2697, %v2924_v4  }
  0x6d   :  { %666 = vperm.xlu1 %2689, %v2924_v4  }
  0x70   :  { %2699 = vset.pattern.permute.xlu0 %v4605_v25 }
  0x71   :  { %2691 = vset.pattern.permute.xlu1 %v4623_v26  ;;  %1026 = vperm.xlu0 %2699, %v2924_v4  }
  0x72   :  { %722 = vperm.xlu1 %2691, %v2924_v4  }
  0x75   :  { %1083 = vrot.lane.b32.xlu0 %v2926_v5, %s2853_s14 }
  0x76   :  { %2692 = vset.pattern.permute.xlu1 %v4620_v27  ;;  %2701 = vset.pattern.permute.xlu0 %v4604_v28 }
  0x77   :  { %750 = vperm.xlu1 %2692, %v2924_v4  }
  0x79   :  { %1122 = vperm.xlu0 %2701, %v2924_v4  }
  0x7b   :  { %779 = vrot.lane.b32.xlu1 %v2926_v5, %s2845_s12 }
  0x7c   :  { %2693 = vset.pattern.permute.xlu1 %v4619_v29 }
  0x7d   :  { %2703 = vset.pattern.permute.xlu0 %v4603_v30 }
  0x7e   :  { %1178 = vperm.xlu0 %2703, %v2924_v4  }
  0x7f   :  { %818 = vperm.xlu1 %2693, %v2924_v4  }
  0x82   :  { %1235 = vrot.lane.b32.xlu0 %v2926_v5, %s2858_s15 }
  0x83   :  { %2694 = vset.pattern.permute.xlu1 %v4618_v31  ;;  %2705 = vset.pattern.permute.xlu0 %v4601_v32 }
  0x84   :  { %846 = vperm.xlu1 %2694, %v2924_v4  }
  0x86   :  { %1274 = vperm.xlu0 %2705, %v2924_v4  }
  0x88   :  { %2696 = vset.pattern.permute.xlu1 %v4617_v33 }
  0x89   :  { %902 = vperm.xlu1 %2696, %v2924_v4  }
  0x8a   :  { %2707 = vset.pattern.permute.xlu0 %v4600_v34 }
  0x8b   :  { %1330 = vperm.xlu0 %2707, %v2924_v4  }
  0x8d   :  { %929 = vrot.lane.b32.xlu1 %v2915_v3, %s2848_s13 }
  0x8e   :  { %2698 = vset.pattern.permute.xlu1 %v4616_v35  ;;  %v62_v36 = vpop.permute.xlu1 %61  ;;  %v56_v43 = vpop.permute.xlu0 %55 }
  0x8f   :  { %2712 = vset.pattern.permute.xlu0 %v2829_v8  ;;  %v3090_v8 = vsub.s32 1, %v73_v52  ;;  %v69_v32 = vsel %vm65_vm0, %v62_v36, %v56_v43 }
  0x91   :  { %933 = vrot.lane.b32.xlu1 %v2931_v6, %s2848_s13 }
  0x92   :  { %v58_v45 = vpop.permute.xlu0 %57 }
  0x93   :  { %v68_v30 = vsel %vm65_vm0, %v56_v43, %v58_v45 }
  0x95   :  { %935 = vrot.lane.b32.xlu1 %v2913_v2, %s2848_s13 }
  0x99   :  { %998 = vperm.xlu1 %2698, %v2924_v4  }
  0x9b   :  { %v3039_v37 = vpop.permute.xlu1 %98 }
  0x9d   :  { %2700 = vset.pattern.permute.xlu1 %v4615_v38  ;;  %v4621_v38 = vmov 35  }
  0x9e   :  { %1054 = vperm.xlu1 %2700, %v2924_v4  }
  0x9f   :  { %v60_v39 = vpop.permute.xlu1 %59  ;;  %v3059_v47 = vpop.permute.xlu0 %126 }
  0xa0   :  { %v67_v62 = vsel %vm65_vm0, %v58_v45, %v60_v39  ;;  %v66_v34 = vsel %vm65_vm0, %v60_v39, %v62_v36  ;;  %v223_v39 = vld [vmem:[#allocation5 + $0x1] ss:$8 sm:$0xf] }
  0xa1   :  { %v3108_v52 = vmul.f32 %v3084_v60, %v67_v62  ;;  %v3115_v25 = vmul.f32 %v3093_v49, %v66_v34  ;;  %v3126_v43 = vrot.slane %v223_v39, %v3076_v58  ;;  %v3129_v34 = vrot.slane %v223_v39, %v3090_v8 }
  0xa2   :  { %1081 = vrot.lane.b32.xlu1 %v2915_v3, %s2853_s14  ;;  %v3142_v16 = vrot.slane %v223_v39, %v3081_v59 }
  0xa3   :  { %v3045_v40 = vpop.permute.xlu1 %154  ;;  %2702 = vset.pattern.permute.xlu1 %v4614_v41  ;;  %v140_v62 = vrot.slane %v3108_v52, %v3090_v8  ;;  %v144_v17 = vrot.slane %v3115_v25, %v3090_v8  ;;  %v168_v26 = vrot.slane %v3108_v52, %v3074_v56 }
  0xa4   :  { %v3065_v51 = vpop.permute.xlu0 %182 }
  0xa5   :  { %v147_v31 = vmul.f32 %v140_v62, %v3059_v47  ;;  %v148_v22 = vmul.f32 %v144_v17, %v3059_v47  ;;  %v175_v13 = vmul.f32 %v168_v26, %v3045_v40 }
  0xa6   :  { %1085 = vrot.lane.b32.xlu1 %v2931_v6, %s2853_s14 }
  0xa7   :  { %v3050_v42 = vpop.permute.xlu1 %209 }
  0xa8   :  { %v216_v61 = vpop.permute.xlu0 %215 }
  0xaa   :  { %1087 = vrot.lane.b32.xlu1 %v2913_v2, %s2853_s14 }
  0xab   :  { %v3054_v44 = vpop.permute.xlu1 %211 }
  0xac   :  { %v214_v23 = vpop.permute.xlu0 %213  ;;  %v220_v20 = vsel %vm217_vm1, %v3050_v42, %v3054_v44 }
  0xae   :  { %1150 = vperm.xlu1 %2702, %v2924_v4  }
  0xaf   :  { %v3057_v46 = vpop.permute.xlu1 %250 }
  0xb0   :  { %v3155_v29 = vpop.permute.xlu0 %306 }
  0xb2   :  { %2704 = vset.pattern.permute.xlu1 %v4602_v48  ;;  %v3105_v48 = vrot.slane %v70_v57, %v3090_v8 }
  0xb3   :  { %1206 = vperm.xlu1 %2704, %v2924_v4  }
  0xb4   :  { %v3063_v50 = vpop.permute.xlu1 %278  ;;  %v93_v36 = vmul.f32 %v3105_v48, %v68_v30  ;;  %v116_v30 = vrot.slane %v3115_v25, %v3076_v58  ;;  %v3185_v18 = vpop.permute.xlu0 %363 }
  0xb6   :  { %v136_v19 = vrot.slane %v93_v36, %v3090_v8  ;;  %v108_v35 = vrot.slane %v93_v36, %v3076_v58  ;;  %v120_v62 = vmul.f32 %v116_v30, %v3039_v37 }
  0xb7   :  { %1233 = vrot.lane.b32.xlu1 %v2915_v3, %s2858_s15 }
  0xb8   :  { %2706 = vset.pattern.permute.xlu1 %v4599_v54  ;;  %v3096_v54 = vrot.slane %v70_v57, %v3076_v58  ;;  %v112_v57 = vrot.slane %v3108_v52, %v3076_v58  ;;  %v146_v24 = vmul.f32 %v136_v19, %v3059_v47  ;;  %v118_v17 = vmul.f32 %v108_v35, %v3039_v37 }
  0xb9   :  { %v3072_v55 = vpop.permute.xlu1 %334 }
  0xba   :  { %v92_v21 = vmul.f32 %v3096_v54, %v69_v32  ;;  %v3132_v32 = vrot.slane %v223_v39, %v3074_v56  ;;  %v119_v33 = vmul.f32 %v112_v57, %v3039_v37  ;;  %v219_v39 = vsel %vm217_vm1, %v3054_v44, %v214_v23 }
  0xbb   :  { %1237 = vrot.lane.b32.xlu1 %v2931_v6, %s2858_s15  ;;  %v152_v44 = vadd.f32 %v148_v22, %v120_v62  ;;  %v200_v22 = vrot.slane %v3115_v25, %v3081_v59 }
  0xbc   :  { %v104_v14 = vrot.slane %v92_v21, %v3076_v58  ;;  %v132_v12 = vrot.slane %v92_v21, %v3090_v8  ;;  %v160_v10 = vrot.slane %v92_v21, %v3074_v56  ;;  %v188_v41 = vrot.slane %v92_v21, %v3081_v59 }
  0xbd   :  { %v3088_v63 = vpop.permute.xlu1 %361  ;;  %v3180_v30 = vmul.f32 %v3132_v32, %v219_v39  ;;  %v151_v19 = vadd.f32 %v147_v31, %v119_v33  ;;  %v196_v31 = vrot.slane %v3108_v52, %v3081_v59  ;;  %v3199_v33 = vmul.f32 %v3129_v34, %v220_v20 }
  0xbe   :  { %v117_v27 = vmul.f32 %v104_v14, %v3039_v37  ;;  %v145_v21 = vmul.f32 %v132_v12, %v3059_v47  ;;  %v172_v14 = vrot.slane %v3115_v25, %v3074_v56  ;;  %v221_v12 = vsel %vm217_vm1, %v216_v61, %v3050_v42  ;;  %v375_v25 = vld [vmem:[#allocation5 + $0x2] ss:$8 sm:$0xf] }
  0xbf   :  { %1239 = vrot.lane.b32.xlu1 %v2913_v2, %s2858_s15  ;;  %v192_v47 = vrot.slane %v93_v36, %v3081_v59  ;;  %v264_v26 = vrot.slane %v3180_v30, %v3076_v58  ;;  %v201_v52 = vmul.f32 %v188_v41, %v3065_v51  ;;  %v260_v62 = vrot.slane %v3199_v33, %v3076_v58 }
  0xc0   :  { %v176_v37 = vmul.f32 %v172_v14, %v3045_v40  ;;  %v3224_v14 = vrot.slane %v375_v25, %v3076_v58 }
  0xc1   :  { %v3112_v28 = vpop.permute.xlu1 %367  ;;  %v271_v41 = vmul.f32 %v264_v26, %v3057_v46  ;;  %v270_v11 = vmul.f32 %v260_v62, %v3057_v46 }
  0xc3   :  { %1302 = vperm.xlu1 %2706, %v2924_v4  }
  0xc5   :  { %v3134_v45 = vpop.permute.xlu1 %365 }
  0xc7   :  { %2708 = vset.pattern.permute.xlu1 %v4621_v38  ;;  %v164_v38 = vrot.slane %v93_v36, %v3074_v56  ;;  %v179_v36 = vadd.f32 %v175_v13, %v151_v19  ;;  %v204_v19 = vmul.f32 %v200_v22, %v3065_v51  ;;  %v320_v22 = vrot.slane %v3180_v30, %v3074_v56 }
  0xc8   :  { %1358 = vperm.xlu1 %2708, %v2924_v4   ;;  %v218_v4 = vsel %vm217_vm1, %v214_v23, %v216_v61  ;;  %v173_v23 = vmul.f32 %v160_v10, %v3045_v40  ;;  %v149_v61 = vadd.f32 %v145_v21, %v117_v27  ;;  %v3196_v10 = vmul.f32 %v3126_v43, %v221_v12 }
  0xc9   :  { %v3163_v57 = vpop.permute.xlu1 %430  ;;  %v174_v15 = vmul.f32 %v164_v38, %v3045_v40  ;;  %v3191_v42 = vmul.f32 %v3142_v16, %v218_v4  ;;  %v150_v27 = vadd.f32 %v146_v24, %v118_v17  ;;  %v202_v21 = vmul.f32 %v192_v47, %v3065_v51  ;;  %v3218_v4 = vpop.permute.xlu0 %402 }
  0xca   :  { %v177_v38 = vadd.f32 %v173_v23, %v149_v61  ;;  %v180_v24 = vadd.f32 %v176_v37, %v152_v44  ;;  %v203_v40 = vmul.f32 %v196_v31, %v3065_v51  ;;  %v256_v13 = vrot.slane %v3196_v10, %v3076_v58 }
  0xcb   :  { %v178_v39 = vadd.f32 %v174_v15, %v150_v27  ;;  %v268_v20 = vrot.slane %v3191_v42, %v3076_v58  ;;  %v3227_v12 = vrot.slane %v375_v25, %v3074_v56  ;;  %v3230_v17 = vrot.slane %v375_v25, %v3081_v59 }
  0xcc   :  { %2709 = vset.pattern.permute.xlu1 %v4630_v0  ;;  %v205_v23 = vadd.f32 %v201_v52, %v177_v38  ;;  %v207_v47 = vadd.f32 %v203_v40, %v179_v36  ;;  %v269_v61 = vmul.f32 %v256_v13, %v3057_v46  ;;  %v284_v31 = vrot.slane %v3196_v10, %v3090_v8 }
  0xcd   :  { %v272_v44 = vmul.f32 %v268_v20, %v3057_v46  ;;  %v292_v27 = vrot.slane %v3180_v30, %v3090_v8  ;;  %v296_v37 = vrot.slane %v3191_v42, %v3090_v8  ;;  %v206_v26 = vadd.f32 %v202_v21, %v178_v39  ;;  %v3256_v21 = vpop.permute.xlu0 %458 }
  0xce   :  { %v3201_v35 = vpop.permute.xlu1 %486  ;;  %v208_v0 = vadd.f32 %v204_v19, %v180_v24  ;;  %v288_v51 = vrot.slane %v3199_v33, %v3090_v8  ;;  %v275_v36 = vadd.f32 %v271_v41, %v207_v47  ;;  %v297_v52 = vmul.f32 %v284_v31, %v3063_v50 }
  0xcf   :  { %v299_v20 = vmul.f32 %v292_v27, %v3063_v50  ;;  %v273_v40 = vadd.f32 %v269_v61, %v205_v23  ;;  %v324_v39 = vrot.slane %v3191_v42, %v3074_v56  ;;  %v373_v46 = vsel %vm369_vm2, %v3112_v28, %v3088_v63 }
  0xd0   :  { %v371_v24 = vsel %vm369_vm2, %v3185_v18, %v3134_v45  ;;  %v276_v62 = vadd.f32 %v272_v44, %v208_v0  ;;  %v298_v13 = vmul.f32 %v288_v51, %v3063_v50  ;;  %v300_v41 = vmul.f32 %v296_v37, %v3063_v50 }
  0xd1   :  { %v370_v19 = vsel %vm369_vm2, %v3134_v45, %v3112_v28  ;;  %v274_v23 = vadd.f32 %v270_v11, %v206_v26  ;;  %v312_v47 = vrot.slane %v3196_v10, %v3074_v56  ;;  %v316_v61 = vrot.slane %v3199_v33, %v3074_v56 }
  0xd2   :  { %v3220_v15 = vpop.permute.xlu1 %513  ;;  %v3273_v31 = vrot.slane %v375_v25, %v3090_v8  ;;  %v301_v44 = vadd.f32 %v297_v52, %v273_v40  ;;  %v303_v27 = vadd.f32 %v299_v20, %v275_v36  ;;  %v3276_v50 = vmul.f32 %v3224_v14, %v373_v46  ;;  %v516_v25 = vpop.permute.xlu0 %515 }
  0xd3   :  { %v3279_v37 = vmul.f32 %v3227_v12, %v371_v24  ;;  %v325_v11 = vmul.f32 %v312_v47, %v3155_v29  ;;  %v327_v28 = vmul.f32 %v320_v22, %v3155_v29  ;;  %v328_v45 = vmul.f32 %v324_v39, %v3155_v29 }
  0xd4   :  { %v3285_v26 = vmul.f32 %v3230_v17, %v370_v19  ;;  %v302_v51 = vadd.f32 %v298_v13, %v274_v23  ;;  %v304_v9 = vadd.f32 %v300_v41, %v276_v62  ;;  %v352_v36 = vrot.slane %v3191_v42, %v3081_v59 }
  0xd5   :  { %v372_v52 = vsel %vm369_vm2, %v3088_v63, %v3185_v18  ;;  %v326_v22 = vmul.f32 %v316_v61, %v3155_v29  ;;  %v344_v20 = vrot.slane %v3199_v33, %v3081_v59  ;;  %v340_v40 = vrot.slane %v3196_v10, %v3081_v59  ;;  %v527_v29 = vld [vmem:[#allocation5 + $0x3] ss:$8 sm:$0xf] }
  0xd6   :  { %v3244_v38 = vpop.permute.xlu1 %519  ;;  %v348_v39 = vrot.slane %v3180_v30, %v3081_v59  ;;  %v329_v42 = vadd.f32 %v325_v11, %v301_v44  ;;  %v331_v24 = vadd.f32 %v327_v28, %v303_v27  ;;  %v408_v18 = vrot.slane %v3276_v50, %v3076_v58  ;;  %v3319_v61 = vpop.permute.xlu0 %554 }
  0xd7   :  { %v416_v63 = vrot.slane %v3279_v37, %v3076_v58  ;;  %v353_v62 = vmul.f32 %v340_v40, %v3072_v55  ;;  %v3310_v10 = vmul.f32 %v3273_v31, %v372_v52  ;;  %v420_v30 = vrot.slane %v3285_v26, %v3076_v58 }
  0xd8   :  { %v355_v33 = vmul.f32 %v348_v39, %v3072_v55  ;;  %v332_v13 = vadd.f32 %v328_v45, %v304_v9  ;;  %v354_v41 = vmul.f32 %v344_v20, %v3072_v55  ;;  %v356_v19 = vmul.f32 %v352_v36, %v3072_v55 }
  0xd9   :  { %v330_v23 = vadd.f32 %v326_v22, %v302_v51  ;;  %v3317_v47 = vrot.slane %v527_v29, %v3090_v8  ;;  %v3322_v44 = vrot.slane %v527_v29, %v3076_v58  ;;  %v3325_v27 = vrot.slane %v527_v29, %v3074_v56 }
  0xda   :  { %v518_v0 = vpop.permute.xlu1 %517  ;;  %v3328_v11 = vrot.slane %v527_v29, %v3081_v59  ;;  %v421_v9 = vmul.f32 %v408_v18, %v3218_v4  ;;  %v423_v28 = vmul.f32 %v416_v63, %v3218_v4  ;;  %v357_v36 = vadd.f32 %v353_v62, %v329_v42  ;;  %v3364_v51 = vpop.permute.xlu0 %610 }
  0xdb   :  { %4663 = vst [vmem:[#allocation11_spill] sm:$0xff] %v3317_v47  ;;  %4664 = vst [vmem:[#allocation12_spill] sm:$0xff] %v3322_v44  ;;  %v359_v52 = vadd.f32 %v355_v33, %v331_v24  ;;  %v412_v22 = vrot.slane %v3310_v10, %v3076_v58  ;;  %v424_v20 = vmul.f32 %v420_v30, %v3218_v4 }
  0xdc   :  { %4665 = vst [vmem:[#allocation13_spill] sm:$0xff] %v3325_v27  ;;  %4666 = vst [vmem:[#allocation14_spill] sm:$0xff] %v3328_v11  ;;  %v360_v40 = vadd.f32 %v356_v19, %v332_v13  ;;  %v358_v39 = vadd.f32 %v354_v41, %v330_v23  ;;  %v436_v18 = vrot.slane %v3276_v50, %v3090_v8 }
  0xdd   :  { %v444_v63 = vrot.slane %v3279_v37, %v3090_v8  ;;  %v448_v29 = vrot.slane %v3285_v26, %v3090_v8  ;;  %v440_v42 = vrot.slane %v3310_v10, %v3090_v8  ;;  %v525_v24 = vsel %vm521_vm3, %v3244_v38, %v3220_v15 }
  0xde   :  { %v3301_v46 = vpop.permute.xlu1 %582  ;;  %v523_v62 = vsel %vm521_vm3, %v516_v25, %v518_v0  ;;  %v425_v33 = vadd.f32 %v421_v9, %v357_v36  ;;  %v427_v30 = vadd.f32 %v423_v28, %v359_v52  ;;  %v449_v13 = vmul.f32 %v436_v18, %v3163_v57 }
  0xdf   :  { %v522_v41 = vsel %vm521_vm3, %v518_v0, %v3244_v38  ;;  %v422_v19 = vmul.f32 %v412_v22, %v3218_v4  ;;  %v464_v23 = vrot.slane %v3276_v50, %v3074_v56  ;;  %v472_v7 = vrot.slane %v3279_v37, %v3074_v56 }
  0xe0   :  { %v428_v1 = vadd.f32 %v424_v20, %v360_v40  ;;  %v451_v9 = vmul.f32 %v444_v63, %v3163_v57  ;;  %v524_v28 = vsel %vm521_vm3, %v3220_v15, %v516_v25  ;;  %v3373_v38 = vmul.f32 %v3322_v44, %v525_v24 }
  0xe1   :  { %v3376_v4 = vmul.f32 %v3325_v27, %v523_v62  ;;  %v476_v0 = vrot.slane %v3285_v26, %v3074_v56  ;;  %v450_v36 = vmul.f32 %v440_v42, %v3163_v57  ;;  %v452_v52 = vmul.f32 %v448_v29, %v3163_v57  ;;  %v3394_v57 = vpop.permute.xlu0 %694 }
  0xe2   :  { %v3383_v22 = vmul.f32 %v3328_v11, %v522_v41  ;;  %v468_v20 = vrot.slane %v3310_v10, %v3074_v56  ;;  %v453_v15 = vadd.f32 %v449_v13, %v425_v33  ;;  %v455_v25 = vadd.f32 %v451_v9, %v427_v30 }
  0xe3   :  { %v3332_v55 = vpop.permute.xlu1 %638  ;;  %v684_v40 = vrot.slane %v2913_v2, %v3076_v58  ;;  %v426_v18 = vadd.f32 %v422_v19, %v358_v39  ;;  %v456_v63 = vadd.f32 %v452_v52, %v428_v1  ;;  %v492_v24 = vrot.slane %v3276_v50, %v3081_v59 }
  0xe4   :  { %v3392_v42 = vmul.f32 %v3317_v47, %v524_v28  ;;  %v477_v29 = vmul.f32 %v464_v23, %v3256_v21  ;;  %v479_v62 = vmul.f32 %v472_v7, %v3256_v21  ;;  %v560_v33 = vrot.slane %v3373_v38, %v3076_v58 }
  0xe5   :  { %v568_v30 = vrot.slane %v3376_v4, %v3076_v58  ;;  %v454_v1 = vadd.f32 %v450_v36, %v426_v18  ;;  %v480_v50 = vmul.f32 %v476_v0, %v3256_v21  ;;  %v496_v13 = vrot.slane %v3310_v10, %v3081_v59 }
  0xe6   :  { %v572_v41 = vrot.slane %v3383_v22, %v3076_v58  ;;  %v481_v19 = vadd.f32 %v477_v29, %v453_v15  ;;  %v483_v23 = vadd.f32 %v479_v62, %v455_v25  ;;  %v500_v7 = vrot.slane %v3279_v37, %v3081_v59 }
  0xe7   :  { %v505_v9 = vmul.f32 %v492_v24, %v3201_v35  ;;  %v478_v28 = vmul.f32 %v468_v20, %v3256_v21  ;;  %v504_v36 = vrot.slane %v3285_v26, %v3081_v59  ;;  %v484_v52 = vadd.f32 %v480_v50, %v456_v63  ;;  %v3425_v63 = vpop.permute.xlu0 %777 }
  0xe8   :  { %v3366_v45 = vpop.permute.xlu1 %666  ;;  %v564_v0 = vrot.slane %v3392_v42, %v3076_v58  ;;  %v507_v10 = vmul.f32 %v500_v7, %v3201_v35  ;;  %v573_v18 = vmul.f32 %v560_v33, %v3319_v61  ;;  %v575_v15 = vmul.f32 %v568_v30, %v3319_v61 }
  0xe9   :  { %v672_v37 = vrot.slane %v2915_v3, %v3076_v58  ;;  %v506_v25 = vmul.f32 %v496_v13, %v3201_v35  ;;  %v508_v21 = vmul.f32 %v504_v36, %v3201_v35  ;;  %v482_v20 = vadd.f32 %v478_v28, %v454_v1 }
  0xea   :  { %v576_v26 = vmul.f32 %v572_v41, %v3319_v61  ;;  %v509_v29 = vadd.f32 %v505_v9, %v481_v19  ;;  %v511_v62 = vadd.f32 %v507_v10, %v483_v23  ;;  %v588_v33 = vrot.slane %v3373_v38, %v3090_v8 }
  0xeb   :  { %v596_v30 = vrot.slane %v3376_v4, %v3090_v8  ;;  %v512_v50 = vadd.f32 %v508_v21, %v484_v52  ;;  %v574_v13 = vmul.f32 %v564_v0, %v3319_v61  ;;  %v600_v35 = vrot.slane %v3383_v22, %v3090_v8 }
  0xec   :  { %v592_v1 = vrot.slane %v3392_v42, %v3090_v8  ;;  %v577_v41 = vadd.f32 %v573_v18, %v509_v29  ;;  %v579_v7 = vadd.f32 %v575_v15, %v511_v62  ;;  %v601_v19 = vmul.f32 %v588_v33, %v3301_v46  ;;  %v782_v29 = vpop.permute.xlu0 %781 }
  0xed   :  { %v3402_v39 = vpop.permute.xlu1 %722  ;;  %v704_v23 = vrot.slane %v2926_v5, %v3090_v8  ;;  %v510_v9 = vadd.f32 %v506_v25, %v482_v20  ;;  %v580_v28 = vadd.f32 %v576_v26, %v512_v50  ;;  %v616_v0 = vrot.slane %v3373_v38, %v3074_v56 }
  0xee   :  { %v602_v36 = vmul.f32 %v592_v1, %v3301_v46  ;;  %v624_v10 = vrot.slane %v3376_v4, %v3074_v56  ;;  %v603_v18 = vmul.f32 %v596_v30, %v3301_v46  ;;  %v620_v21 = vrot.slane %v3392_v42, %v3074_v56 }
  0xef   :  { %v578_v25 = vadd.f32 %v574_v13, %v510_v9  ;;  %v628_v20 = vrot.slane %v3383_v22, %v3074_v56  ;;  %v604_v26 = vmul.f32 %v600_v35, %v3301_v46  ;;  %v605_v62 = vadd.f32 %v601_v19, %v577_v41 }
  0xf0   :  { %v607_v33 = vadd.f32 %v603_v18, %v579_v7  ;;  %v700_v50 = vrot.slane %v2915_v3, %v3090_v8  ;;  %v629_v46 = vmul.f32 %v616_v0, %v3364_v51  ;;  %v631_v35 = vmul.f32 %v624_v10, %v3364_v51  ;;  %v784_v30 = vpop.permute.xlu0 %783 }
  0xf1   :  { %v606_v1 = vadd.f32 %v602_v36, %v578_v25  ;;  %v608_v15 = vadd.f32 %v604_v26, %v580_v28  ;;  %v728_v41 = vrot.slane %v2915_v3, %v3074_v56  ;;  %v630_v7 = vmul.f32 %v620_v21, %v3364_v51  ;;  %v791_v26 = vld [vmem:[#allocation5 + $0x5] ss:$8 sm:$0xf] }
  0xf2   :  { %v3427_v24 = vpop.permute.xlu1 %750  ;;  %v644_v19 = vrot.slane %v3373_v38, %v3081_v59  ;;  %v632_v28 = vmul.f32 %v628_v20, %v3364_v51  ;;  %v648_v36 = vrot.slane %v3392_v42, %v3081_v59  ;;  %v656_v0 = vrot.slane %v3383_v22, %v3081_v59 }
  0xf3   :  { %v633_v18 = vadd.f32 %v629_v46, %v605_v62  ;;  %v635_v10 = vadd.f32 %v631_v35, %v607_v33  ;;  %v652_v25 = vrot.slane %v3376_v4, %v3081_v59  ;;  %v634_v9 = vadd.f32 %v630_v7, %v606_v1 }
  0xf4   :  { %v636_v13 = vadd.f32 %v632_v28, %v608_v15  ;;  %v657_v21 = vmul.f32 %v644_v19, %v3332_v55  ;;  %v658_v38 = vmul.f32 %v648_v36, %v3332_v55  ;;  %v760_v42 = vrot.slane %v2926_v5, %v3081_v59 }
  0xf5   :  { %v659_v51 = vmul.f32 %v652_v25, %v3332_v55  ;;  %v764_v22 = vrot.slane %v2931_v6, %v3081_v59  ;;  %v768_v20 = vrot.slane %v2913_v2, %v3081_v59  ;;  %v660_v15 = vmul.f32 %v656_v0, %v3332_v55 }
  0xf6   :  { %v3444_v52 = vpop.permute.xlu1 %779  ;;  %v685_v62 = vmul.f32 %v672_v37, %v3366_v45  ;;  %v4667_v33 = vrot.slane %v2926_v5, %v3076_v58  ;;  %v3504_v46 = vrot.slane %v791_v26, %v3074_v56  ;;  %v4668_v7 = vrot.slane %v2931_v6, %v3076_v58 }
  0xf7   :  { %v663_v35 = vadd.f32 %v659_v51, %v635_v10  ;;  %v786_v55 = vsel %vm785_vm4, %v782_v29, %v784_v30  ;;  %v3513_v28 = vrot.slane %v791_v26, %v3090_v8  ;;  %v661_v37 = vadd.f32 %v657_v21, %v633_v18 }
  0xf8   :  { %v686_v1 = vmul.f32 %v4667_v33, %v3366_v45  ;;  %v687_v19 = vmul.f32 %v4668_v7, %v3366_v45  ;;  %v662_v36 = vadd.f32 %v658_v38, %v634_v9  ;;  %v664_v0 = vadd.f32 %v660_v15, %v636_v13 }
  0xf9   :  { %4669 = vst [vmem:[#allocation15_spill] sm:$0xff] %v3513_v28  ;;  %v688_v25 = vmul.f32 %v684_v40, %v3366_v45  ;;  %v713_v10 = vmul.f32 %v700_v50, %v3394_v57  ;;  %v714_v51 = vmul.f32 %v704_v23, %v3394_v57  ;;  %v3522_v33 = vrot.slane %v791_v26, %v3081_v59  ;;  %v943_v40 = vld [vmem:[#allocation5 + $0x6] ss:$8 sm:$0xf] }
  0xfa   :  { %v3466_v61 = vpop.permute.xlu1 %818  ;;  %v787_v7 = vsel %vm785_vm4, %v3444_v52, %v782_v29  ;;  %v690_v27 = vadd.f32 %v686_v1, %v662_v36  ;;  %v689_v18 = vadd.f32 %v685_v62, %v661_v37  ;;  %v789_v13 = vsel %vm785_vm4, %v784_v30, %v3425_v63 }
  0xfb   :  { %v3531_v9 = vmul.f32 %v3504_v46, %v786_v55  ;;  %v691_v23 = vadd.f32 %v687_v19, %v663_v35  ;;  %v4670_v50 = vrot.slane %v2931_v6, %v3090_v8  ;;  %v756_v29 = vrot.slane %v2915_v3, %v3081_v59 }
  0xfc   :  { %v3542_v38 = vrot.slane %v791_v26, %v3076_v58  ;;  %v692_v15 = vadd.f32 %v688_v25, %v664_v0  ;;  %v4672_v30 = vrot.slane %v2913_v2, %v3090_v8  ;;  %v788_v1 = vsel %vm785_vm4, %v3425_v63, %v3444_v52 }
  0xfd   :  { %v715_v21 = vmul.f32 %v4670_v50, %v3394_v57  ;;  %v3553_v35 = vmul.f32 %v3513_v28, %v787_v7  ;;  %v3556_v19 = vmul.f32 %v3522_v33, %v789_v13  ;;  %v3559_v3 = vrot.slane %v943_v40, %v3076_v58 }
  0xfe   :  { %4671 = vst [vmem:[#allocation16_spill] sm:$0xff] %v3542_v38  ;;  %v716_v62 = vmul.f32 %v4672_v30, %v3394_v57  ;;  %v3562_v26 = vrot.slane %v943_v40, %v3090_v8  ;;  %v3565_v55 = vrot.slane %v943_v40, %v3074_v56  ;;  %v717_v57 = vadd.f32 %v713_v10, %v689_v18 }
  0xff   :  { %v3492_v4 = vpop.permute.xlu1 %846  ;;  %4673 = vst [vmem:[#allocation17_spill] sm:$0xff] %v3559_v3  ;;  %v718_v37 = vadd.f32 %v714_v51, %v690_v27  ;;  %v832_v63 = vrot.slane %v3531_v9, %v3076_v58  ;;  %v3571_v36 = vrot.slane %v943_v40, %v3081_v59  ;;  %v719_v0 = vadd.f32 %v715_v21, %v691_v23 }
 0x100   :  { %4674 = vst [vmem:[#allocation18_spill] sm:$0xff] %v3562_v26  ;;  %4675 = vst [vmem:[#allocation19_spill] sm:$0xff] %v3565_v55  ;;  %v741_v25 = vmul.f32 %v728_v41, %v3402_v39  ;;  %v4677_v7 = vrot.slane %v2926_v5, %v3074_v56  ;;  %v3579_v10 = vmul.f32 %v3542_v38, %v788_v1 }
 0x101   :  { %4676 = vst [vmem:[#allocation20_spill] sm:$0xff] %v3571_v36  ;;  %v720_v27 = vadd.f32 %v716_v62, %v692_v15  ;;  %v4678_v51 = vrot.slane %v2931_v6, %v3074_v56  ;;  %v4679_v40 = vrot.slane %v2913_v2, %v3074_v56  ;;  %v828_v41 = vrot.slane %v3553_v35, %v3076_v58  ;;  %v875_v15 = vpop.permute.xlu0 %874 }
 0x102   :  { %v742_v13 = vmul.f32 %v4677_v7, %v3402_v39  ;;  %v769_v5 = vmul.f32 %v756_v29, %v3427_v24  ;;  %v836_v50 = vrot.slane %v3556_v19, %v3076_v58  ;;  %v888_v21 = vrot.slane %v3531_v9, %v3074_v56 }
 0x103   :  { %v743_v18 = vmul.f32 %v4678_v51, %v3402_v39  ;;  %v744_v23 = vmul.f32 %v4679_v40, %v3402_v39  ;;  %v892_v6 = vrot.slane %v3556_v19, %v3074_v56  ;;  %v770_v30 = vmul.f32 %v760_v42, %v3427_v24 }
 0x104   :  { %v3533_v45 = vpop.permute.xlu1 %902  ;;  %v771_v2 = vmul.f32 %v764_v22, %v3427_v24  ;;  %v772_v39 = vmul.f32 %v768_v20, %v3427_v24  ;;  %v860_v62 = vrot.slane %v3531_v9, %v3090_v8  ;;  %v745_v1 = vadd.f32 %v741_v25, %v717_v57 }
 0x105   :  { %v746_v7 = vadd.f32 %v742_v13, %v718_v37  ;;  %v824_v51 = vrot.slane %v3579_v10, %v3076_v58  ;;  %v864_v40 = vrot.slane %v3556_v19, %v3090_v8  ;;  %v747_v28 = vadd.f32 %v743_v18, %v719_v0  ;;  %v932_v37 = vpop.permute.xlu0 %931 }
 0x106   :  { %v748_v38 = vadd.f32 %v744_v23, %v720_v27  ;;  %v838_v42 = vmul.f32 %v828_v41, %v3466_v61  ;;  %v856_v22 = vrot.slane %v3553_v35, %v3090_v8  ;;  %v773_v24 = vadd.f32 %v769_v5, %v745_v1 }
 0x107   :  { %v839_v20 = vmul.f32 %v832_v63, %v3466_v61  ;;  %v895_v11 = vmul.f32 %v888_v21, %v875_v15  ;;  %v916_v57 = vrot.slane %v3531_v9, %v3081_v59  ;;  %v774_v25 = vadd.f32 %v770_v30, %v746_v7 }
 0x108   :  { %v930_v52 = vpop.permute.xlu1 %929  ;;  %v775_v13 = vadd.f32 %v771_v2, %v747_v28  ;;  %v776_v44 = vadd.f32 %v772_v39, %v748_v38  ;;  %v866_v47 = vmul.f32 %v856_v22, %v3492_v4  ;;  %v837_v27 = vmul.f32 %v824_v51, %v3466_v61 }
 0x109   :  { %v852_v18 = vrot.slane %v3579_v10, %v3090_v8  ;;  %v867_v23 = vmul.f32 %v860_v62, %v3492_v4  ;;  %v840_v41 = vmul.f32 %v836_v50, %v3466_v61  ;;  %v842_v9 = vadd.f32 %v838_v42, %v774_v25  ;;  %v971_v42 = vpop.permute.xlu0 %970 }
 0x10a   :  { %v884_v28 = vrot.slane %v3553_v35, %v3074_v56  ;;  %v843_v5 = vadd.f32 %v839_v20, %v775_v13  ;;  %v880_v21 = vrot.slane %v3579_v10, %v3074_v56  ;;  %v940_v2 = vsel %vm937_vm5, %v930_v52, %v932_v37 }
 0x10b   :  { %v865_v30 = vmul.f32 %v852_v18, %v3492_v4  ;;  %v868_v39 = vmul.f32 %v864_v40, %v3492_v4  ;;  %v870_v62 = vadd.f32 %v866_v47, %v842_v9  ;;  %v896_v7 = vmul.f32 %v892_v6, %v875_v15 }
 0x10c   :  { %v934_v29 = vpop.permute.xlu1 %933  ;;  %v871_v51 = vadd.f32 %v867_v23, %v843_v5  ;;  %v844_v20 = vadd.f32 %v840_v41, %v776_v44  ;;  %v920_v47 = vrot.slane %v3556_v19, %v3081_v59  ;;  %v3644_v4 = vmul.f32 %v3559_v3, %v940_v2 }
 0x10d   :  { %v939_v63 = vsel %vm937_vm5, %v932_v37, %v934_v29  ;;  %v894_v37 = vmul.f32 %v884_v28, %v875_v15  ;;  %v893_v40 = vmul.f32 %v880_v21, %v875_v15  ;;  %v908_v44 = vrot.slane %v3579_v10, %v3081_v59  ;;  %v1027_v9 = vpop.permute.xlu0 %1026 }
 0x10e   :  { %v3632_v61 = vmul.f32 %v3562_v26, %v939_v63  ;;  %v872_v13 = vadd.f32 %v868_v39, %v844_v20  ;;  %v923_v15 = vmul.f32 %v916_v57, %v3533_v45  ;;  %v976_v63 = vrot.slane %v3644_v4, %v3076_v58 }
 0x10f   :  { %v921_v41 = vmul.f32 %v908_v44, %v3533_v45  ;;  %v924_v2 = vmul.f32 %v920_v47, %v3533_v45  ;;  %v1032_v20 = vrot.slane %v3644_v4, %v3074_v56 }
 0x110   :  { %v936_v0 = vpop.permute.xlu1 %935  ;;  %v980_v19 = vrot.slane %v3632_v61, %v3076_v58 }
 0x111   :  { %v938_v38 = vsel %vm937_vm5, %v934_v29, %v936_v0  ;;  %v941_v50 = vsel %vm937_vm5, %v936_v0, %v930_v52  ;;  %v841_v29 = vadd.f32 %v837_v27, %v773_v24  ;;  %v912_v52 = vrot.slane %v3553_v35, %v3081_v59  ;;  %v1095_v24 = vld [vmem:[#allocation5 + $0x7] ss:$8 sm:$0xf] }
 0x112   :  { %v3639_v22 = vmul.f32 %v3565_v55, %v938_v38  ;;  %v3649_v6 = vmul.f32 %v3571_v36, %v941_v50  ;;  %v898_v0 = vadd.f32 %v894_v37, %v870_v62  ;;  %v899_v27 = vadd.f32 %v895_v11, %v871_v51 }
 0x113   :  { %v869_v25 = vadd.f32 %v865_v30, %v841_v29  ;;  %v922_v18 = vmul.f32 %v912_v52, %v3533_v45  ;;  %v3665_v10 = vrot.slane %v1095_v24, %v3076_v58  ;;  %v3671_v28 = vrot.slane %v1095_v24, %v3090_v8  ;;  %v1084_v52 = vpop.permute.xlu0 %1083 }
 0x114   :  { %v3636_v1 = vpop.permute.xlu1 %998  ;;  %v984_v35 = vrot.slane %v3639_v22, %v3076_v58  ;;  %v988_v57 = vrot.slane %v3649_v6, %v3076_v58  ;;  %v900_v38 = vadd.f32 %v896_v7, %v872_v13  ;;  %v990_v5 = vmul.f32 %v980_v19, %v971_v42 }
 0x115   :  { %4680 = vst [vmem:[#allocation21_spill] sm:$0xff] %v3665_v10  ;;  %v897_v11 = vadd.f32 %v893_v40, %v869_v25  ;;  %4681 = vst [vmem:[#allocation22_spill] sm:$0xff] %v3671_v28  ;;  %v3674_v21 = vrot.slane %v1095_v24, %v3074_v56  ;;  %v3677_v30 = vrot.slane %v1095_v24, %v3081_v59 }
 0x116   :  { %v926_v39 = vadd.f32 %v922_v18, %v898_v0  ;;  %v927_v62 = vadd.f32 %v923_v15, %v899_v27  ;;  %v991_v50 = vmul.f32 %v984_v35, %v971_v42  ;;  %v989_v51 = vmul.f32 %v976_v63, %v971_v42 }
 0x117   :  { %4682 = vst [vmem:[#allocation23_spill] sm:$0xff] %v3674_v21  ;;  %4683 = vst [vmem:[#allocation24_spill] sm:$0xff] %v3677_v30  ;;  %v1004_v7 = vrot.slane %v3644_v4, %v3090_v8  ;;  %v1008_v37 = vrot.slane %v3632_v61, %v3090_v8  ;;  %v925_v40 = vadd.f32 %v921_v41, %v897_v11 }
 0x118   :  { %v1036_v25 = vrot.slane %v3632_v61, %v3074_v56  ;;  %v1012_v45 = vrot.slane %v3639_v22, %v3090_v8  ;;  %v992_v47 = vmul.f32 %v988_v57, %v971_v42  ;;  %v994_v24 = vadd.f32 %v990_v5, %v926_v39 }
 0x119   :  { %v3659_v23 = vpop.permute.xlu1 %1054  ;;  %v1017_v13 = vmul.f32 %v1004_v7, %v3636_v1  ;;  %v1018_v0 = vmul.f32 %v1008_v37, %v3636_v1  ;;  %v928_v19 = vadd.f32 %v924_v2, %v900_v38  ;;  %v1016_v27 = vrot.slane %v3649_v6, %v3090_v8 }
 0x11a   :  { %v995_v18 = vadd.f32 %v991_v50, %v927_v62  ;;  %v1060_v15 = vrot.slane %v3644_v4, %v3081_v59  ;;  %v993_v63 = vadd.f32 %v989_v51, %v925_v40  ;;  %v1045_v42 = vmul.f32 %v1032_v20, %v1027_v9 }
 0x11b   :  { %v1040_v41 = vrot.slane %v3639_v22, %v3074_v56  ;;  %v996_v57 = vadd.f32 %v992_v47, %v928_v19  ;;  %v1019_v5 = vmul.f32 %v1012_v45, %v3636_v1  ;;  %v1046_v39 = vmul.f32 %v1036_v25, %v1027_v9 }
 0x11c   :  { %v1021_v4 = vadd.f32 %v1017_v13, %v993_v63  ;;  %v1022_v62 = vadd.f32 %v1018_v0, %v994_v24  ;;  %v1064_v50 = vrot.slane %v3632_v61, %v3081_v59  ;;  %v1044_v51 = vrot.slane %v3649_v6, %v3074_v56 }
 0x11d   :  { %v1082_v29 = vpop.permute.xlu1 %1081  ;;  %v1020_v20 = vmul.f32 %v1016_v27, %v3636_v1  ;;  %v1023_v7 = vadd.f32 %v1019_v5, %v995_v18  ;;  %v1068_v37 = vrot.slane %v3639_v22, %v3081_v59  ;;  %v1047_v45 = vmul.f32 %v1040_v41, %v1027_v9  ;;  %v1123_v1 = vpop.permute.xlu0 %1122 }
 0x11e   :  { %v1092_v44 = vsel %vm1089_vm6, %v1082_v29, %v1084_v52  ;;  %v1050_v0 = vadd.f32 %v1046_v39, %v1022_v62  ;;  %v1074_v19 = vmul.f32 %v1064_v50, %v3659_v23  ;;  %v1049_v27 = vadd.f32 %v1045_v42, %v1021_v4 }
 0x11f   :  { %v3704_v38 = vmul.f32 %v3665_v10, %v1092_v44  ;;  %v1073_v44 = vmul.f32 %v1060_v15, %v3659_v23  ;;  %v1048_v18 = vmul.f32 %v1044_v51, %v1027_v9 }
 0x120   :  { %v1078_v4 = vadd.f32 %v1074_v19, %v1050_v0 }
 0x121   :  { %v1086_v35 = vpop.permute.xlu1 %1085  ;;  %v1128_v24 = vrot.slane %v3704_v38, %v3076_v58  ;;  %v1156_v9 = vrot.slane %v3704_v38, %v3090_v8  ;;  %v1077_v50 = vadd.f32 %v1073_v44, %v1049_v27 }
 0x122   :  { %v1091_v11 = vsel %vm1089_vm6, %v1084_v52, %v1086_v35  ;;  %v1024_v52 = vadd.f32 %v1020_v20, %v996_v57  ;;  %v1075_v57 = vmul.f32 %v1068_v37, %v3659_v23 }
 0x123   :  { %v3707_v2 = vmul.f32 %v3671_v28, %v1091_v11  ;;  %v1072_v11 = vrot.slane %v3649_v6, %v3081_v59  ;;  %v1141_v15 = vmul.f32 %v1128_v24, %v1123_v1 }
 0x124   :  { %v1052_v39 = vadd.f32 %v1048_v18, %v1024_v52 }
 0x125   :  { %v1088_v40 = vpop.permute.xlu1 %1087  ;;  %v1132_v47 = vrot.slane %v3707_v2, %v3076_v58  ;;  %v1076_v42 = vmul.f32 %v1072_v11, %v3659_v23  ;;  %v1160_v51 = vrot.slane %v3707_v2, %v3090_v8  ;;  %v1145_v24 = vadd.f32 %v1141_v15, %v1077_v50 }
 0x126   :  { %v1090_v25 = vsel %vm1089_vm6, %v1086_v35, %v1088_v40  ;;  %v1093_v61 = vsel %vm1089_vm6, %v1088_v40, %v1082_v29  ;;  %v1051_v35 = vadd.f32 %v1047_v45, %v1023_v7  ;;  %v1179_v7 = vpop.permute.xlu0 %1178  ;;  %v1247_v45 = vld [vmem:[#allocation5 + $0x20] ss:$8 sm:$0xf]  ;;  %v1188_v19 = vrot.slane %v3707_v2, %v3074_v56 }
 0x127   :  { %v3725_v13 = vmul.f32 %v3674_v21, %v1090_v25  ;;  %v3728_v22 = vmul.f32 %v3677_v30, %v1093_v61  ;;  %v1142_v5 = vmul.f32 %v1132_v47, %v1123_v1  ;;  %v1184_v47 = vrot.slane %v3704_v38, %v3074_v56 }
 0x128   :  { %v1079_v20 = vadd.f32 %v1075_v57, %v1051_v35  ;;  %v1080_v23 = vadd.f32 %v1076_v42, %v1052_v39  ;;  %v3759_v39 = vrot.slane %v1247_v45, %v3090_v8  ;;  %v1212_v50 = vrot.slane %v3704_v38, %v3081_v59 }
 0x129   :  { %v1136_v29 = vrot.slane %v3725_v13, %v3076_v58  ;;  %v1140_v63 = vrot.slane %v3728_v22, %v3076_v58  ;;  %v1151_v41 = vpop.permute.xlu1 %1150  ;;  %v1164_v6 = vrot.slane %v3725_v13, %v3090_v8  ;;  %v1146_v25 = vadd.f32 %v1142_v5, %v1078_v4 }
 0x12a   :  { %v1169_v40 = vmul.f32 %v1156_v9, %v1151_v41  ;;  %v1170_v61 = vmul.f32 %v1160_v51, %v1151_v41  ;;  %v1168_v0 = vrot.slane %v3728_v22, %v3090_v8  ;;  %v1192_v27 = vrot.slane %v3725_v13, %v3074_v56  ;;  %4685 = vst [vmem:[#allocation26_spill] sm:$0xff] %v3759_v39 }
 0x12b   :  { %v1143_v62 = vmul.f32 %v1136_v29, %v1123_v1  ;;  %v1144_v37 = vmul.f32 %v1140_v63, %v1123_v1  ;;  %v3754_v1 = vrot.slane %v1247_v45, %v3076_v58  ;;  %v1171_v35 = vmul.f32 %v1164_v6, %v1151_v41  ;;  %v1236_v63 = vpop.permute.xlu0 %1235 }
 0x12c   :  { %v1173_v29 = vadd.f32 %v1169_v40, %v1145_v24  ;;  %v1197_v11 = vmul.f32 %v1184_v47, %v1179_v7  ;;  %v1174_v57 = vadd.f32 %v1170_v61, %v1146_v25  ;;  %v1196_v15 = vrot.slane %v3728_v22, %v3074_v56 }
 0x12d   :  { %v1147_v44 = vadd.f32 %v1143_v62, %v1079_v20  ;;  %4684 = vst [vmem:[#allocation25_spill] sm:$0xff] %v3754_v1  ;;  %v1148_v18 = vadd.f32 %v1144_v37, %v1080_v23  ;;  %v1172_v62 = vmul.f32 %v1168_v0, %v1151_v41  ;;  %v1198_v4 = vmul.f32 %v1188_v19, %v1179_v7 }
 0x12e   :  { %v1207_v52 = vpop.permute.xlu1 %1206  ;;  %v1216_v51 = vrot.slane %v3707_v2, %v3081_v59  ;;  %v1220_v37 = vrot.slane %v3725_v13, %v3081_v59  ;;  %v1199_v40 = vmul.f32 %v1192_v27, %v1179_v7  ;;  %v1201_v41 = vadd.f32 %v1197_v11, %v1173_v29 }
 0x12f   :  { %v1175_v9 = vadd.f32 %v1171_v35, %v1147_v44  ;;  %v1176_v6 = vadd.f32 %v1172_v62, %v1148_v18  ;;  %v1202_v47 = vadd.f32 %v1198_v4, %v1174_v57  ;;  %v1225_v25 = vmul.f32 %v1212_v50, %v1207_v52  ;;  %v1275_v44 = vpop.permute.xlu0 %1274 }
 0x130   :  { %v1226_v61 = vmul.f32 %v1216_v51, %v1207_v52  ;;  %v1224_v38 = vrot.slane %v3728_v22, %v3081_v59  ;;  %v1200_v2 = vmul.f32 %v1196_v15, %v1179_v7  ;;  %v3782_v27 = vrot.slane %v1247_v45, %v3074_v56 }
 0x131   :  { %v1203_v0 = vadd.f32 %v1199_v40, %v1175_v9  ;;  %v3785_v18 = vrot.slane %v1247_v45, %v3081_v59  ;;  %v1227_v29 = vmul.f32 %v1220_v37, %v1207_v52  ;;  %v1229_v62 = vadd.f32 %v1225_v25, %v1201_v41 }
 0x132   :  { %v1234_v5 = vpop.permute.xlu1 %1233  ;;  %4686 = vst [vmem:[#allocation27_spill] sm:$0xff] %v3782_v27  ;;  %v1204_v35 = vadd.f32 %v1200_v2, %v1176_v6  ;;  %v1228_v11 = vmul.f32 %v1224_v38, %v1207_v52  ;;  %v1230_v57 = vadd.f32 %v1226_v61, %v1202_v47 }
 0x133   :  { %v1244_v42 = vsel %vm1241_vm7, %v1234_v5, %v1236_v63  ;;  %4687 = vst [vmem:[#allocation28_spill] sm:$0xff] %v3785_v18  ;;  %v1231_v9 = vadd.f32 %v1227_v29, %v1203_v0  ;;  %v1331_v37 = vpop.permute.xlu0 %1330 }
 0x134   :  { %v3770_v20 = vmul.f32 %v3754_v1, %v1244_v42  ;;  %v1232_v6 = vadd.f32 %v1228_v11, %v1204_v35 }
 0x136   :  { %v1280_v23 = vrot.slane %v3770_v20, %v3076_v58  ;;  %v1238_v24 = vpop.permute.xlu1 %1237  ;;  %v1308_v40 = vrot.slane %v3770_v20, %v3090_v8  ;;  %v1364_v47 = vrot.slane %v3770_v20, %v3081_v59 }
 0x137   :  { %v1243_v19 = vsel %vm1241_vm7, %v1236_v63, %v1238_v24  ;;  %v1336_v63 = vrot.slane %v3770_v20, %v3074_v56 }
 0x138   :  { %v1270_v13 = vmul.f32 %v3759_v39, %v1243_v19  ;;  %v1293_v22 = vmul.f32 %v1280_v23, %v1275_v44 }
 0x139   :  { %v1349_v35 = vmul.f32 %v1336_v63, %v1331_v37 }
 0x13a   :  { %v1284_v7 = vrot.slane %v1270_v13, %v3076_v58  ;;  %v1240_v15 = vpop.permute.xlu1 %1239  ;;  %v1340_v4 = vrot.slane %v1270_v13, %v3074_v56  ;;  %v1312_v41 = vrot.slane %v1270_v13, %v3090_v8  ;;  %v1297_v25 = vadd.f32 %v1293_v22, %v1229_v62 }
 0x13b   :  { %v1242_v42 = vsel %vm1241_vm7, %v1238_v24, %v1240_v15  ;;  %v1245_v45 = vsel %vm1241_vm7, %v1240_v15, %v1234_v5 }
 0x13c   :  { %v1271_v52 = vmul.f32 %v3782_v27, %v1242_v42  ;;  %v1272_v50 = vmul.f32 %v3785_v18, %v1245_v45  ;;  %v1294_v51 = vmul.f32 %v1284_v7, %v1275_v44  ;;  %v1350_v29 = vmul.f32 %v1340_v4, %v1331_v37 }
 0x13d   :  { %v1368_v18 = vrot.slane %v1270_v13, %v3081_v59 }
 0x13e   :  { %v1288_v5 = vrot.slane %v1271_v52, %v3076_v58  ;;  %v1292_v61 = vrot.slane %v1272_v50, %v3076_v58  ;;  %v1316_v23 = vrot.slane %v1271_v52, %v3090_v8  ;;  %v1303_v24 = vpop.permute.xlu1 %1302  ;;  %v1320_v38 = vrot.slane %v1272_v50, %v3090_v8 }
 0x13f   :  { %v1298_v2 = vadd.f32 %v1294_v51, %v1230_v57  ;;  %v1321_v0 = vmul.f32 %v1308_v40, %v1303_v24  ;;  %v1322_v19 = vmul.f32 %v1312_v41, %v1303_v24  ;;  %v1344_v20 = vrot.slane %v1271_v52, %v3074_v56 }
 0x140   :  { %v1295_v11 = vmul.f32 %v1288_v5, %v1275_v44  ;;  %v1296_v7 = vmul.f32 %v1292_v61, %v1275_v44  ;;  %v1348_v62 = vrot.slane %v1272_v50, %v3074_v56  ;;  %v1323_v45 = vmul.f32 %v1316_v23, %v1303_v24 }
 0x141   :  { %v1325_v15 = vadd.f32 %v1321_v0, %v1297_v25  ;;  %v1326_v42 = vadd.f32 %v1322_v19, %v1298_v2  ;;  %v1324_v39 = vmul.f32 %v1320_v38, %v1303_v24  ;;  %v1372_v57 = vrot.slane %v1271_v52, %v3081_v59 }
 0x142   :  { %v1299_v22 = vadd.f32 %v1295_v11, %v1231_v9  ;;  %v1300_v27 = vadd.f32 %v1296_v7, %v1232_v6  ;;  %v1351_v25 = vmul.f32 %v1344_v20, %v1331_v37  ;;  %v1352_v61 = vmul.f32 %v1348_v62, %v1331_v37 }
 0x143   :  { %v1359_v51 = vpop.permute.xlu1 %1358  ;;  %v1353_v40 = vadd.f32 %v1349_v35, %v1325_v15  ;;  %v1354_v63 = vadd.f32 %v1350_v29, %v1326_v42  ;;  %v1376_v2 = vrot.slane %v1272_v50, %v3081_v59  ;;  %v4689_v50 = vmov 2  }
 0x144   :  { %v1327_v4 = vadd.f32 %v1323_v45, %v1299_v22  ;;  %v1377_v41 = vmul.f32 %v1364_v47, %v1359_v51  ;;  %v1378_v44 = vmul.f32 %v1368_v18, %v1359_v51  ;;  %v1328_v5 = vadd.f32 %v1324_v39, %v1300_v27  ;;  %v1386_v18 = vld [vmem:[%s4596_s4] sm:$0xff] }
 0x145   :  { %v1379_v0 = vmul.f32 %v1372_v57, %v1359_v51  ;;  %v1380_v6 = vmul.f32 %v1376_v2, %v1359_v51  ;;  %v3817_v39 = vld [vmem:[%s4594_s2] sm:$0xff]  ;;  %v4688_v27 = vmov 1   ;;  %v4690_v37 = vmov 4  }
 0x146   :  { %v1355_v9 = vadd.f32 %v1351_v25, %v1327_v4  ;;  %v1381_v23 = vadd.f32 %v1377_v41, %v1353_v40  ;;  %v1382_v19 = vadd.f32 %v1378_v44, %v1354_v63  ;;  %v1356_v13 = vadd.f32 %v1352_v61, %v1328_v5 }
 0x147   :  { %v4691_v47 = vmov 5   ;;  %v4692_v29 = vmov 7   ;;  %v4693_v7 = vmov 9   ;;  %v4694_v15 = vmov 11  }
 0x148   :  { %v1383_v24 = vadd.f32 %v1379_v0, %v1355_v9  ;;  %v1387_v38 = vadd.f32 %v1382_v19, %v1381_v23  ;;  %v1384_v52 = vadd.f32 %v1380_v6, %v1356_v13  ;;  %v4695_v42 = vmov 13  }
 0x149   :  { %v4696_v20 = vmov 15   ;;  %v4697_v62 = vmov 16   ;;  %v4698_v22 = vmov 18   ;;  %v4699_v45 = vmov 19  }
 0x14a   :  { %v1388_v11 = vadd.f32 %v1387_v38, %v1383_v24  ;;  %v4700_v57 = vmov 20   ;;  %v4701_v51 = vmov 21   ;;  %v4702_v40 = vmov 23  }
 0x14b   :  { %v4703_v63 = vmov 25   ;;  %v4704_v4 = vmov 27   ;;  %v4705_v41 = vmov 29  }
 0x14c   :  { %v1389_v35 = vadd.f32 %v1388_v11, %v1384_v52 }
 0x14e   :  { %1390 = vadd.xlane.f32.xlu1 %v1389_v35 }
 0x15f   :  { %1421 = vperm.xlu1 %2709, %v1386_v18  }
 0x163   :  { %1451 = vperm.xlu1 %2709, %v3817_v39  }
 0x167   :  { %2710 = vset.pattern.permute.xlu1 %v4688_v27  ;;  %v4706_v27 = vmov 6  }
 0x168   :  { %1479 = vperm.xlu1 %2710, %v3817_v39  }
 0x16c   :  { %2711 = vset.pattern.permute.xlu1 %v4689_v50  ;;  %v4707_v50 = vmov 0  }
 0x16d   :  { %1507 = vperm.xlu1 %2711, %v3817_v39  }
 0x171   :  { %2713 = vset.pattern.permute.xlu1 %v4690_v37 }
 0x172   :  { %1579 = vperm.xlu1 %2713, %v3817_v39  }
 0x176   :  { %2714 = vset.pattern.permute.xlu1 %v4691_v47 }
 0x177   :  { %1607 = vperm.xlu1 %2714, %v3817_v39  }
 0x17b   :  { %2716 = vset.pattern.permute.xlu1 %v4692_v29  ;;  %v4708_v29 = vmov 8  }
 0x17c   :  { %1663 = vperm.xlu1 %2716, %v3817_v39  }
 0x180   :  { %2719 = vset.pattern.permute.xlu1 %v4693_v7  ;;  %v4709_v7 = vmov 10  }
 0x181   :  { %1735 = vperm.xlu1 %2719, %v3817_v39  }
 0x185   :  { %2721 = vset.pattern.permute.xlu1 %v4694_v15  ;;  %v4710_v15 = vmov 12  }
 0x186   :  { %1791 = vperm.xlu1 %2721, %v3817_v39  }
 0x18a   :  { %2723 = vset.pattern.permute.xlu1 %v4695_v42  ;;  %v4711_v42 = vmov 14  }
 0x18b   :  { %1863 = vperm.xlu1 %2723, %v3817_v39  }
 0x18f   :  { %2725 = vset.pattern.permute.xlu1 %v4696_v20  ;;  %v4712_v20 = vmov 17  }
 0x190   :  { %1919 = vperm.xlu1 %2725, %v3817_v39  }
 0x194   :  { %2726 = vset.pattern.permute.xlu1 %v4697_v62  ;;  %v4713_v62 = vmov 22  }
 0x195   :  { %1947 = vperm.xlu1 %2726, %v3817_v39  }
 0x199   :  { %2728 = vset.pattern.permute.xlu1 %v4698_v22  ;;  %v4714_v22 = vmov 24  }
 0x19a   :  { %2003 = vperm.xlu1 %2728, %v3817_v39  }
 0x19e   :  { %2729 = vset.pattern.permute.xlu1 %v4699_v45  ;;  %v4715_v45 = vmov 26  }
 0x19f   :  { %2031 = vperm.xlu1 %2729, %v3817_v39  }
 0x1a3   :  { %2730 = vset.pattern.permute.xlu1 %v4700_v57  ;;  %v4716_v57 = vmov 28  }
 0x1a4   :  { %2075 = vperm.xlu1 %2730, %v3817_v39  }
 0x1a8   :  { %2731 = vset.pattern.permute.xlu1 %v4701_v51 }
 0x1a9   :  { %2103 = vperm.xlu1 %2731, %v3817_v39  }
 0x1ad   :  { %2733 = vset.pattern.permute.xlu1 %v4702_v40 }
 0x1ae   :  { %2159 = vperm.xlu1 %2733, %v3817_v39  }
 0x1b2   :  { %2735 = vset.pattern.permute.xlu1 %v4703_v63 }
 0x1b3   :  { %2231 = vperm.xlu1 %2735, %v3817_v39  }
 0x1b7   :  { %2737 = vset.pattern.permute.xlu1 %v4704_v4 }
 0x1b8   :  { %2287 = vperm.xlu1 %2737, %v3817_v39  }
 0x1bc   :  { %2739 = vset.pattern.permute.xlu1 %v4705_v41 }
 0x1d7   :  { %v1391_v44 = vpop.xlane.xlu1 %1390 }
 0x1d8   :  { %v1392_v25 = vmul.f32 0.001953125, %v1391_v44 }
 0x1da   :  { %v1393_v5 = vsub.f32 %v1381_v23, %v1392_v25  ;;  %v1394_v61 = vsub.f32 %v1382_v19, %v1392_v25  ;;  %v1395_v2 = vsub.f32 %v1383_v24, %v1392_v25  ;;  %v1396_v0 = vsub.f32 %v1384_v52, %v1392_v25  ;;  %v1385_v52 = vld [vmem:[%s4595_s3] sm:$0xff]  ;;  %s2869_s3 = smov [#allocation7]  }
 0x1db   :  { %v1422_v51 = vpop.permute.xlu1 %1421  ;;  %s2614_s20 = sshll.u32 %s2869_s3, 4  ;;  %s2615_s20 = int_to_ptr.vmem [resolvable:$true] %s2614_s20 }
 0x1dc   :  { %v1397_v9 = vmul.f32 %v1393_v5, %v1393_v5  ;;  %v1398_v13 = vmul.f32 %v1394_v61, %v1394_v61  ;;  %v1399_v6 = vmul.f32 %v1395_v2, %v1395_v2  ;;  %v1400_v11 = vmul.f32 %v1396_v0, %v1396_v0  ;;  %s2795_s21 = scalar_lea.vmem %s2615_s20, 512  ;;  %p2800_p11 = scmp.lt.s32.totalorder %s2615_s20, %s2615_s20 }
 0x1dd   :  { %p2796_p10 = scmp.ne.s32.totalorder %s2615_s20, %s2795_s21  ;;  %p2801_p12 = scmp.lt.s32.totalorder %s2795_s21, %s2795_s21 }
 0x1de   :  { %v1401_v38 = vadd.f32 %v1398_v13, %v1397_v9 }
 0x1df   :  { %v3879_v40 = vpop.permute.xlu1 %1451  ;;  %p2802_p13 = por %p2801_p12, %p2800_p11 }
 0x1e0   :  { %v1402_v35 = vadd.f32 %v1401_v38, %v1399_v6 }
 0x1e1   :  { %p2803_p0 = pnand %p2802_p13, %p2796_p10 }
 0x1e2   :  { %v1403_v18 = vadd.f32 %v1402_v35, %v1400_v11 }
 0x1e3   :  { %v3881_v63 = vpop.permute.xlu1 %1479 }
 0x1e4   :  { %1404 = vadd.xlane.f32.xlu0 %v1403_v18 }
 0x1e8   :  { %v3883_v4 = vpop.permute.xlu1 %1507 }
 0x1ed   :  { %v3885_v41 = vpop.permute.xlu1 %1579 }
 0x1f2   :  { %v3887_v44 = vpop.permute.xlu1 %1607 }
 0x1f7   :  { %v3889_v25 = vpop.permute.xlu1 %1663 }
 0x1fa   :  { %1535 = vperm.xlu0 %2712, %v3817_v39  }
 0x1fc   :  { %v3891_v9 = vpop.permute.xlu1 %1735 }
 0x1fe   :  { %2715 = vset.pattern.permute.xlu0 %v4706_v27 }
 0x1ff   :  { %1635 = vperm.xlu0 %2715, %v3817_v39  }
 0x201   :  { %v3893_v13 = vpop.permute.xlu1 %1791 }
 0x203   :  { %2717 = vset.pattern.permute.xlu0 %v4707_v50 }
 0x206   :  { %v3895_v6 = vpop.permute.xlu1 %1863 }
 0x207   :  { %4717 = vst [vmem:[#allocation29_spill] sm:$0xff] %v3895_v6 }
 0x20b   :  { %v3899_v11 = vpop.permute.xlu1 %1919 }
 0x20c   :  { %4718 = vst [vmem:[#allocation30_spill] sm:$0xff] %v3899_v11 }
 0x210   :  { %v3903_v18 = vpop.permute.xlu1 %1947 }
 0x26d   :  { %v1405_v23 = vpop.xlane.xlu0 %1404 }
 0x26e   :  { %v1406_v19 = vmul.f32 0.001953125, %v1405_v23 }
 0x270   :  { %v1407_v24 = vadd.f32 1e-05, %v1406_v19 }
 0x272   :  { %2747 = vrsqrt.f32 %v1407_v24 }
 0x275   :  { %v3897_v38 = vpop.permute.xlu0 %1535 }
 0x27a   :  { %v3901_v35 = vpop.permute.xlu0 %1635 }
 0x27f   :  { %v2748_v37 = vpop.eup %2747 }
 0x280   :  { %v1409_v47 = vmul.f32 %v2748_v37, %v1385_v52 }
 0x282   :  { %1412 = vperm.xlu0 %2717, %v1409_v47  }
 0x286   :  { %2718 = vset.pattern.permute.xlu0 %v4708_v29  ;;  %v3905_v29 = vpop.permute.xlu1 %2003 }
 0x287   :  { %1707 = vperm.xlu0 %2718, %v3817_v39  }
 0x28b   :  { %2720 = vset.pattern.permute.xlu0 %v4709_v7 }
 0x28c   :  { %1763 = vperm.xlu0 %2720, %v3817_v39  }
 0x290   :  { %2722 = vset.pattern.permute.xlu0 %v4710_v15 }
 0x291   :  { %1835 = vperm.xlu0 %2722, %v3817_v39  }
 0x295   :  { %2724 = vset.pattern.permute.xlu0 %v4711_v42 }
 0x296   :  { %1891 = vperm.xlu0 %2724, %v3817_v39  }
 0x29a   :  { %2727 = vset.pattern.permute.xlu0 %v4712_v20 }
 0x29b   :  { %1975 = vperm.xlu0 %2727, %v3817_v39  }
 0x29f   :  { %2732 = vset.pattern.permute.xlu0 %v4713_v62  ;;  %v4720_v62 = vmov 30  }
 0x2a0   :  { %2131 = vperm.xlu0 %2732, %v3817_v39  }
 0x2a4   :  { %2734 = vset.pattern.permute.xlu0 %v4714_v22  ;;  %v4721_v22 = vmov 31  }
 0x2a5   :  { %2203 = vperm.xlu0 %2734, %v3817_v39  }
 0x2a9   :  { %2736 = vset.pattern.permute.xlu0 %v4715_v45  ;;  %v4722_v45 = vmov 32  }
 0x2aa   :  { %2259 = vperm.xlu0 %2736, %v3817_v39  }
 0x2ae   :  { %2738 = vset.pattern.permute.xlu0 %v4716_v57  ;;  %v4723_v57 = vmov 34  }
 0x2fd   :  { %v1413_v27 = vpop.permute.xlu0 %1412 }
 0x2fe   :  { %v1415_v50 = vmul.f32 %v1413_v27, %v1393_v5  ;;  %v1416_v23 = vmul.f32 %v1413_v27, %v1394_v61  ;;  %v1417_v19 = vmul.f32 %v1413_v27, %v1395_v2  ;;  %v1418_v24 = vmul.f32 %v1413_v27, %v1396_v0  ;;  %v3919_v61 = vpop.permute.xlu1 %2031 }
 0x2ff   :  { %v4725_v27 = vmov 33  }
 0x300   :  { %v1424_v52 = vadd.f32 %v1422_v51, %v1415_v50  ;;  %v1425_v37 = vadd.f32 %v1422_v51, %v1416_v23  ;;  %v1427_v47 = vadd.f32 %v1422_v51, %v1418_v24  ;;  %v1426_v7 = vadd.f32 %v1422_v51, %v1417_v19 }
 0x301   :  { %v4724_v51 = vmov 35  }
 0x302   :  { %v3907_v15 = vmax.f32 %v1424_v52, 0.0  ;;  %v3909_v42 = vmax.f32 %v1427_v47, 0.0  ;;  %v3911_v20 = vmax.f32 %v1425_v37, 0.0  ;;  %v3917_v5 = vmax.f32 %v1426_v7, 0.0  ;;  %v3984_v50 = vpop.permute.xlu0 %1707  ;;  %v4000_v24 = vpop.permute.xlu1 %2075 }
 0x304   :  { %1568 = vrot.lane.b32.xlu0 %v3909_v42, %s2830_s1  ;;  %1433 = vrot.lane.b32.xlu1 %v3907_v15, %s2827_s0  ;;  %v2041_v2 = vrot.slane %v3911_v20, %v3081_v59  ;;  %v1953_v1 = vrot.slane %v3907_v15, %v3076_v58  ;;  %v1957_v30 = vrot.slane %v3911_v20, %v3076_v58 }
 0x305   :  { %v1965_v21 = vrot.slane %v3909_v42, %v3076_v58  ;;  %v2009_v10 = vrot.slane %v3907_v15, %v3074_v56 }
 0x306   :  { %v3928_v0 = vmul.f32 %v2041_v2, %v3919_v61  ;;  %v4006_v37 = vpop.permute.xlu1 %2103  ;;  %v4053_v26 = vmul.f32 %v1957_v30, %v3903_v18 }
 0x307   :  { %v3990_v23 = vpop.permute.xlu0 %1763  ;;  %v4071_v30 = vmul.f32 %v2009_v10, %v3905_v29 }
 0x308   :  { %1566 = vrot.lane.b32.xlu0 %v3917_v5, %s2830_s1  ;;  %1435 = vrot.lane.b32.xlu1 %v3911_v20, %s2827_s0  ;;  %4719 = vst [vmem:[#allocation31_spill] sm:$0xff] %v3928_v0  ;;  %4735 = vst [vmem:[#allocation41_spill] sm:$0xff] %v4053_v26  ;;  %v4059_v0 = vmul.f32 %v1965_v21, %v3903_v18  ;;  %v2045_v21 = vrot.slane %v3917_v5, %v3081_v59 }
 0x309   :  { %4738 = vst [vmem:[#allocation44_spill] sm:$0xff] %v4071_v30 }
 0x30a   :  { %v4016_v2 = vpop.permute.xlu1 %2159  ;;  %4737 = vst [vmem:[#allocation43_spill] sm:$0xff] %v4059_v0 }
 0x30b   :  { %4729 = vst [vmem:[#allocation35_spill] sm:$0xff] %v4016_v2  ;;  %v2037_v2 = vrot.slane %v3907_v15, %v3081_v59 }
 0x30c   :  { %1692 = vrot.lane.b32.xlu0 %v3911_v20, %s2834_s10  ;;  %1439 = vrot.lane.b32.xlu1 %v3909_v42, %s2827_s0  ;;  %v3993_v19 = vpop.permute.xlu0 %1835 }
 0x30d   :  { %4726 = vst [vmem:[#allocation32_spill] sm:$0xff] %v3993_v19 }
 0x310   :  { %2331 = vperm.xlu0 %2738, %v3817_v39   ;;  %1437 = vrot.lane.b32.xlu1 %v3917_v5, %s2827_s0 }
 0x311   :  { %v4002_v52 = vpop.permute.xlu0 %1891 }
 0x312   :  { %4727 = vst [vmem:[#allocation33_spill] sm:$0xff] %v4002_v52 }
 0x314   :  { %1820 = vrot.lane.b32.xlu0 %v3911_v20, %s2839_s11  ;;  %1562 = vrot.lane.b32.xlu1 %v3907_v15, %s2830_s1 }
 0x315   :  { %2740 = vset.pattern.permute.xlu0 %v4720_v62 }
 0x316   :  { %v4008_v47 = vpop.permute.xlu0 %1975 }
 0x318   :  { %2058 = vrot.lane.b32.xlu0 %v3907_v15, %s2845_s12  ;;  %1564 = vrot.lane.b32.xlu1 %v3911_v20, %s2830_s1 }
 0x31b   :  { %v4012_v7 = vpop.permute.xlu0 %2131 }
 0x31c   :  { %2062 = vrot.lane.b32.xlu0 %v3917_v5, %s2845_s12  ;;  %1690 = vrot.lane.b32.xlu1 %v3907_v15, %s2834_s10  ;;  %4728 = vst [vmem:[#allocation34_spill] sm:$0xff] %v4012_v7 }
 0x320   :  { %2064 = vrot.lane.b32.xlu0 %v3909_v42, %s2845_s12  ;;  %2359 = vperm.xlu1 %2739, %v3817_v39   ;;  %v4019_v62 = vpop.permute.xlu0 %2203 }
 0x321   :  { %4730 = vst [vmem:[#allocation36_spill] sm:$0xff] %v4019_v62  ;;  %v4050_v62 = vmul.f32 %v1953_v1, %v3903_v18 }
 0x323   :  { %4734 = vst [vmem:[#allocation40_spill] sm:$0xff] %v4050_v62 }
 0x324   :  { %2387 = vperm.xlu0 %2740, %v3817_v39   ;;  %1696 = vrot.lane.b32.xlu1 %v3909_v42, %s2834_s10 }
 0x325   :  { %2741 = vset.pattern.permute.xlu1 %v4721_v22  ;;  %v4021_v22 = vpop.permute.xlu1 %2231 }
 0x326   :  { %4731 = vst [vmem:[#allocation37_spill] sm:$0xff] %v4021_v22  ;;  %v2021_v22 = vrot.slane %v3909_v42, %v3074_v56 }
 0x328   :  { %2188 = vrot.lane.b32.xlu0 %v3911_v20, %s2848_s13  ;;  %1694 = vrot.lane.b32.xlu1 %v3917_v5, %s2834_s10  ;;  %v4084_v0 = vmul.f32 %v2021_v22, %v3905_v29 }
 0x329   :  { %2742 = vset.pattern.permute.xlu0 %v4722_v45  ;;  %v4023_v45 = vpop.permute.xlu0 %2259 }
 0x32a   :  { %4732 = vst [vmem:[#allocation38_spill] sm:$0xff] %v4023_v45  ;;  %v2017_v45 = vrot.slane %v3917_v5, %v3074_v56  ;;  %4741 = vst [vmem:[#allocation47_spill] sm:$0xff] %v4084_v0 }
 0x32c   :  { %2316 = vrot.lane.b32.xlu0 %v3911_v20, %s2853_s14  ;;  %1818 = vrot.lane.b32.xlu1 %v3907_v15, %s2839_s11 }
 0x330   :  { %2459 = vperm.xlu0 %2742, %v3817_v39   ;;  %1824 = vrot.lane.b32.xlu1 %v3909_v42, %s2839_s11 }
 0x334   :  { %2444 = vrot.lane.b32.xlu0 %v3911_v20, %s2858_s15  ;;  %1822 = vrot.lane.b32.xlu1 %v3917_v5, %s2839_s11 }
 0x335   :  { %2744 = vset.pattern.permute.xlu0 %v4723_v57  ;;  %v4025_v57 = vpop.permute.xlu1 %2287 }
 0x336   :  { %4733 = vst [vmem:[#allocation39_spill] sm:$0xff] %v4025_v57  ;;  %v2013_v57 = vrot.slane %v3911_v20, %v3074_v56 }
 0x338   :  { %2515 = vperm.xlu0 %2744, %v3817_v39   ;;  %2060 = vrot.lane.b32.xlu1 %v3911_v20, %s2845_s12 }
 0x33c   :  { %2746 = vset.pattern.permute.xlu0 %v4724_v51  ;;  %2415 = vperm.xlu1 %2741, %v3817_v39  }
 0x340   :  { %2186 = vrot.lane.b32.xlu1 %v3907_v15, %s2848_s13 }
 0x341   :  { %2743 = vset.pattern.permute.xlu1 %v4725_v27 }
 0x344   :  { %2190 = vrot.lane.b32.xlu1 %v3917_v5, %s2848_s13 }
 0x348   :  { %2192 = vrot.lane.b32.xlu1 %v3909_v42, %s2848_s13 }
 0x34c   :  { %2314 = vrot.lane.b32.xlu1 %v3907_v15, %s2853_s14 }
 0x350   :  { %2487 = vperm.xlu1 %2743, %v3817_v39  }
 0x354   :  { %2318 = vrot.lane.b32.xlu1 %v3917_v5, %s2853_s14 }
 0x355   :  { %2745 = vset.pattern.permute.xlu1 %v4724_v51 }
 0x358   :  { %2320 = vrot.lane.b32.xlu1 %v3909_v42, %s2853_s14 }
 0x35c   :  { %2442 = vrot.lane.b32.xlu1 %v3907_v15, %s2858_s15 }
 0x360   :  { %2446 = vrot.lane.b32.xlu1 %v3917_v5, %s2858_s15 }
 0x364   :  { %2448 = vrot.lane.b32.xlu1 %v3909_v42, %s2858_s15 }
 0x368   :  { %2543 = vperm.xlu1 %2745, %v3817_v39   ;;  %v1961_v39 = vrot.slane %v3917_v5, %v3076_v58 }
 0x36a   :  { %v4056_v3 = vmul.f32 %v1961_v39, %v3903_v18  ;;  %v4074_v39 = vmul.f32 %v2013_v57, %v3905_v29  ;;  %v2049_v18 = vrot.slane %v3909_v42, %v3081_v59  ;;  %v4108_v57 = vmul.f32 %v2045_v21, %v3919_v61 }
 0x36c   :  { %4736 = vst [vmem:[#allocation42_spill] sm:$0xff] %v4056_v3  ;;  %4739 = vst [vmem:[#allocation45_spill] sm:$0xff] %v4074_v39  ;;  %v4081_v3 = vmul.f32 %v2017_v45, %v3905_v29  ;;  %v4100_v29 = vmul.f32 %v2037_v2, %v3919_v61 }
 0x36d   :  { %4743 = vst [vmem:[#allocation49_spill] sm:$0xff] %v4108_v57 }
 0x36e   :  { %4740 = vst [vmem:[#allocation46_spill] sm:$0xff] %v4081_v3  ;;  %4742 = vst [vmem:[#allocation48_spill] sm:$0xff] %v4100_v29 }
 0x376   :  { %v4027_v51 = vpop.permute.xlu0 %1568  ;;  %v1434_v27 = vpop.permute.xlu1 %1433 }
 0x37a   :  { %v1436_v28 = vpop.permute.xlu1 %1435  ;;  %v4041_v36 = vpop.permute.xlu0 %1566 }
 0x37b   :  { %v1443_v55 = vsel %vm65_vm0, %v1434_v27, %v1436_v28  ;;  %v1570_v11 = vsel %vm217_vm1, %v4041_v36, %v4027_v51 }
 0x37c   :  { %v4068_v1 = vmul.f32 %v1443_v55, %v3105_v48  ;;  %v1981_v48 = vrot.slane %v3907_v15, %v3090_v8  ;;  %v4095_v30 = vmul.f32 %v1570_v11, %v3142_v16  ;;  %v4111_v16 = vmul.f32 %v2049_v18, %v3919_v61 }
 0x37e   :  { %v1440_v62 = vpop.permute.xlu1 %1439  ;;  %v1461_v15 = vrot.slane %v4068_v1, %v3076_v58  ;;  %v1489_v22 = vrot.slane %v4068_v1, %v3090_v8  ;;  %4744 = vst [vmem:[#allocation50_spill] sm:$0xff] %v4111_v16  ;;  %v1517_v3 = vrot.slane %v4068_v1, %v3074_v56  ;;  %v1597_v61 = vrot.slane %v4095_v30, %v3076_v58 }
 0x37f   :  { %v1444_v45 = vsel %vm65_vm0, %v1440_v62, %v1434_v27  ;;  %v4118_v27 = vmul.f32 %v1981_v48, %v4008_v47 }
 0x380   :  { %v1445_v10 = vmul.f32 %v1444_v45, %v3096_v54  ;;  %v1471_v48 = vmul.f32 %v1461_v15, %v3879_v40  ;;  %v4132_v45 = vpop.permute.xlu0 %1692  ;;  %v1545_v15 = vrot.slane %v4068_v1, %v3081_v59 }
 0x381   :  { %4745 = vst [vmem:[#allocation51_spill] sm:$0xff] %v4118_v27 }
 0x382   :  { %v1438_v55 = vpop.permute.xlu1 %1437  ;;  %v1457_v54 = vrot.slane %v1445_v10, %v3076_v58  ;;  %v1485_v21 = vrot.slane %v1445_v10, %v3090_v8  ;;  %v1513_v29 = vrot.slane %v1445_v10, %v3074_v56  ;;  %v1541_v52 = vrot.slane %v1445_v10, %v3081_v59 }
 0x383   :  { %v1441_v11 = vsel %vm65_vm0, %v1438_v55, %v1440_v62  ;;  %v1442_v2 = vsel %vm65_vm0, %v1436_v28, %v1438_v55  ;;  %v1499_v55 = vmul.f32 %v1489_v22, %v3881_v63 }
 0x384   :  { %v1447_v62 = vmul.f32 %v1442_v2, %v3084_v60  ;;  %v1448_v28 = vmul.f32 %v1441_v11, %v3093_v49  ;;  %v1470_v16 = vmul.f32 %v1457_v54, %v3879_v40  ;;  %v1498_v57 = vmul.f32 %v1485_v21, %v3881_v63 }
 0x385   :  { %v1527_v49 = vmul.f32 %v1517_v3, %v3883_v4  ;;  %v1503_v26 = vadd.f32 %v1499_v55, %v1471_v48  ;;  %v1526_v7 = vmul.f32 %v1513_v29, %v3883_v4 }
 0x386   :  { %v1563_v0 = vpop.permute.xlu1 %1562  ;;  %v1465_v27 = vrot.slane %v1447_v62, %v3076_v58  ;;  %v1469_v18 = vrot.slane %v1448_v28, %v3076_v58  ;;  %v1493_v60 = vrot.slane %v1447_v62, %v3090_v8  ;;  %v1497_v22 = vrot.slane %v1448_v28, %v3090_v8 }
 0x387   :  { %v1525_v11 = vrot.slane %v1448_v28, %v3074_v56  ;;  %v1502_v2 = vadd.f32 %v1498_v57, %v1470_v16  ;;  %v1521_v3 = vrot.slane %v1447_v62, %v3074_v56  ;;  %v1553_v16 = vrot.slane %v1448_v28, %v3081_v59 }
 0x388   :  { %v1472_v54 = vmul.f32 %v1465_v27, %v3879_v40  ;;  %v1473_v21 = vmul.f32 %v1469_v18, %v3879_v40  ;;  %v1500_v39 = vmul.f32 %v1493_v60, %v3881_v63  ;;  %v1501_v6 = vmul.f32 %v1497_v22, %v3881_v63 }
 0x389   :  { %v1529_v57 = vmul.f32 %v1525_v11, %v3883_v4  ;;  %v1573_v40 = vsel %vm217_vm1, %v4027_v51, %v1563_v0  ;;  %v1530_v48 = vadd.f32 %v1526_v7, %v1502_v2  ;;  %v1549_v29 = vrot.slane %v1447_v62, %v3081_v59 }
 0x38a   :  { %v1565_v19 = vpop.permute.xlu1 %1564  ;;  %v1504_v27 = vadd.f32 %v1500_v39, %v1472_v54  ;;  %v1505_v18 = vadd.f32 %v1501_v6, %v1473_v21  ;;  %v4160_v10 = vmul.f32 %v1573_v40, %v3126_v43  ;;  %v1528_v51 = vmul.f32 %v1521_v3, %v3883_v4 }
 0x38b   :  { %v4151_v1 = vpop.permute.xlu0 %2331  ;;  %v1571_v63 = vsel %vm217_vm1, %v1565_v19, %v4041_v36  ;;  %v1572_v55 = vsel %vm217_vm1, %v1563_v0, %v1565_v19  ;;  %v1557_v6 = vmul.f32 %v1553_v16, %v3897_v38  ;;  %v1531_v36 = vadd.f32 %v1527_v49, %v1503_v26 }
 0x38c   :  { %v4169_v28 = vmul.f32 %v1571_v63, %v3132_v32  ;;  %v1533_v39 = vadd.f32 %v1529_v57, %v1505_v18  ;;  %v1585_v43 = vrot.slane %v4160_v10, %v3076_v58  ;;  %v1554_v7 = vmul.f32 %v1541_v52, %v3897_v38 }
 0x38d   :  { %v1575_v62 = vmul.f32 %v1572_v55, %v3129_v34  ;;  %v1555_v32 = vmul.f32 %v1545_v15, %v3897_v38  ;;  %v1532_v19 = vadd.f32 %v1528_v51, %v1504_v27  ;;  %v1613_v2 = vrot.slane %v4160_v10, %v3090_v8 }
 0x38e   :  { %v1593_v0 = vrot.slane %v4169_v28, %v3076_v58  ;;  %v1561_v4 = vadd.f32 %v1557_v6, %v1533_v39  ;;  %v1598_v22 = vmul.f32 %v1585_v43, %v3885_v41  ;;  %v1558_v11 = vadd.f32 %v1554_v7, %v1530_v48  ;;  %v4196_v27 = vpop.permute.xlu1 %1690 }
 0x38f   :  { %v4175_v60 = vpop.permute.xlu0 %1820  ;;  %v1589_v54 = vrot.slane %v1575_v62, %v3076_v58  ;;  %v1617_v26 = vrot.slane %v1575_v62, %v3090_v8  ;;  %v1601_v52 = vmul.f32 %v1597_v61, %v3885_v41  ;;  %v1653_v34 = vrot.slane %v4095_v30, %v3074_v56 }
 0x390   :  { %v1556_v49 = vmul.f32 %v1549_v29, %v3897_v38  ;;  %v1600_v15 = vmul.f32 %v1593_v0, %v3885_v41  ;;  %v1559_v3 = vadd.f32 %v1555_v32, %v1531_v36  ;;  %v1602_v57 = vadd.f32 %v1598_v22, %v1558_v11 }
 0x391   :  { %v1599_v16 = vmul.f32 %v1589_v54, %v3885_v41  ;;  %v1645_v40 = vrot.slane %v1575_v62, %v3074_v56  ;;  %v1605_v63 = vadd.f32 %v1601_v52, %v1561_v4  ;;  %v1641_v61 = vrot.slane %v4160_v10, %v3074_v56 }
 0x392   :  { %v1560_v18 = vadd.f32 %v1556_v49, %v1532_v19  ;;  %v1621_v38 = vrot.slane %v4169_v28, %v3090_v8  ;;  %v1626_v48 = vmul.f32 %v1613_v2, %v3887_v44  ;;  %v1627_v55 = vmul.f32 %v1617_v26, %v3887_v44 }
 0x393   :  { %v4192_v21 = vpop.permute.xlu0 %2058  ;;  %v1603_v29 = vadd.f32 %v1599_v16, %v1559_v3  ;;  %v1673_v51 = vrot.slane %v1575_v62, %v3081_v59  ;;  %v4746_v41 = vrot.slane %v4095_v30, %v3090_v8  ;;  %v1649_v43 = vrot.slane %v4169_v28, %v3074_v56 }
 0x394   :  { %v1604_v6 = vadd.f32 %v1600_v15, %v1560_v18  ;;  %v1700_v36 = vsel %vm369_vm2, %v4196_v27, %v4132_v45  ;;  %v1630_v0 = vadd.f32 %v1626_v48, %v1602_v57  ;;  %v1655_v62 = vmul.f32 %v1645_v40, %v3901_v35 }
 0x395   :  { %v1629_v39 = vmul.f32 %v4746_v41, %v3887_v44  ;;  %v1631_v32 = vadd.f32 %v1627_v55, %v1603_v29  ;;  %v1703_v19 = vmul.f32 %v1700_v36, %v3273_v31  ;;  %v1681_v4 = vrot.slane %v4095_v30, %v3081_v59 }
 0x396   :  { %v1654_v11 = vmul.f32 %v1641_v61, %v3901_v35  ;;  %v1628_v2 = vmul.f32 %v1621_v38, %v3887_v44  ;;  %v1683_v26 = vmul.f32 %v1673_v51, %v3889_v25  ;;  %v1657_v15 = vmul.f32 %v1653_v34, %v3901_v35 }
 0x397   :  { %v4215_v7 = vpop.permute.xlu0 %2062  ;;  %v1633_v22 = vadd.f32 %v1629_v39, %v1605_v63  ;;  %v1659_v54 = vadd.f32 %v1655_v62, %v1631_v32  ;;  %v1717_v52 = vrot.slane %v1703_v19, %v3076_v58  ;;  %v1745_v49 = vrot.slane %v1703_v19, %v3090_v8 }
 0x398   :  { %v1669_v31 = vrot.slane %v4160_v10, %v3081_v59  ;;  %v1632_v3 = vadd.f32 %v1628_v2, %v1604_v6  ;;  %v1656_v30 = vmul.f32 %v1649_v43, %v3901_v35  ;;  %v1658_v16 = vadd.f32 %v1654_v11, %v1630_v0 }
 0x399   :  { %v1677_v44 = vrot.slane %v4169_v28, %v3081_v59  ;;  %v1687_v40 = vadd.f32 %v1683_v26, %v1659_v54  ;;  %v1727_v18 = vmul.f32 %v1717_v52, %v3984_v50  ;;  %v1773_v61 = vrot.slane %v1703_v19, %v3074_v56 }
 0x39a   :  { %v1661_v10 = vadd.f32 %v1657_v15, %v1633_v22  ;;  %v1755_v48 = vmul.f32 %v1745_v49, %v3891_v9  ;;  %v4747_v55 = vrot.slane %v3911_v20, %v3090_v8  ;;  %v1682_v41 = vmul.f32 %v1669_v31, %v3889_v25 }
 0x39b   :  { %v2065_v57 = vpop.permute.xlu0 %2064  ;;  %v4233_v63 = vpop.permute.xlu1 %2359  ;;  %v1731_v38 = vadd.f32 %v1727_v18, %v1687_v40  ;;  %v1660_v39 = vadd.f32 %v1656_v30, %v1632_v3  ;;  %v1801_v6 = vrot.slane %v1703_v19, %v3081_v59  ;;  %v4748_v43 = vrot.slane %v3917_v5, %v3090_v8 }
 0x39c   :  { %v2066_v34 = vsel %vm785_vm4, %v4215_v7, %v2065_v57  ;;  %v2069_v35 = vsel %vm785_vm4, %v2065_v57, %v4192_v21  ;;  %v4253_v51 = vmul.f32 %v4747_v55, %v4008_v47  ;;  %v4749_v32 = vrot.slane %v3909_v42, %v3090_v8 }
 0x39d   :  { %v4244_v28 = vmul.f32 %v2066_v34, %v3504_v46  ;;  %v4247_v29 = vmul.f32 %v2069_v35, %v3522_v33  ;;  %v4261_v46 = vmul.f32 %v4748_v43, %v4008_v47  ;;  %v1685_v33 = vmul.f32 %v1681_v4, %v3889_v25  ;;  %v4750_v34 = vld [vmem:[#allocation34_spill] sm:$0xff] }
 0x39e   :  { %v1759_v36 = vadd.f32 %v1755_v48, %v1731_v38  ;;  %v4270_v62 = vmul.f32 %v4749_v32, %v4008_v47  ;;  %v1686_v19 = vadd.f32 %v1682_v41, %v1658_v16  ;;  %v1684_v22 = vmul.f32 %v1677_v44, %v3889_v25 }
 0x39f   :  { %v2089_v0 = vrot.slane %v4244_v28, %v3076_v58  ;;  %v1697_v20 = vpop.permute.xlu1 %1696  ;;  %v2093_v5 = vrot.slane %v4247_v29, %v3076_v58  ;;  %v1783_v11 = vmul.f32 %v1773_v61, %v3990_v23  ;;  %v2117_v4 = vrot.slane %v4244_v28, %v3090_v8 }
 0x3a0   :  { %v2121_v2 = vrot.slane %v4247_v29, %v3090_v8  ;;  %v1689_v54 = vadd.f32 %v1685_v33, %v1661_v10  ;;  %v1688_v26 = vadd.f32 %v1684_v22, %v1660_v39  ;;  %v1811_v42 = vmul.f32 %v1801_v6, %v3893_v13 }
 0x3a1   :  { %v2145_v47 = vrot.slane %v4244_v28, %v3074_v56  ;;  %v2149_v25 = vrot.slane %v4247_v29, %v3074_v56  ;;  %v1787_v52 = vadd.f32 %v1783_v11, %v1759_v36  ;;  %v4286_v49 = vmul.f32 %v2089_v0, %v4000_v24 }
 0x3a2   :  { %v2173_v15 = vrot.slane %v4244_v28, %v3081_v59  ;;  %v1701_v31 = vsel %vm369_vm2, %v1697_v20, %v4196_v27  ;;  %v4294_v30 = vmul.f32 %v2093_v5, %v4000_v24  ;;  %v4303_v40 = vmul.f32 %v2117_v4, %v4006_v37  ;;  %v4768_v28 = vld [vmem:[#allocation44_spill] sm:$0xff] }
 0x3a3   :  { %v1695_v3 = vpop.permute.xlu1 %1694  ;;  %v1702_v57 = vmul.f32 %v1701_v31, %v3224_v14  ;;  %v4306_v18 = vmul.f32 %v2121_v2, %v4006_v37  ;;  %v4311_v35 = vmul.f32 %v2145_v47, %v4750_v34  ;;  %v4314_v14 = vmul.f32 %v2149_v25, %v4750_v34 }
 0x3a4   :  { %v1698_v16 = vsel %vm369_vm2, %v1695_v3, %v1697_v20  ;;  %v1699_v44 = vsel %vm369_vm2, %v4132_v45, %v1695_v3 }
 0x3a5   :  { %v1704_v27 = vmul.f32 %v1699_v44, %v3227_v12  ;;  %v1705_v61 = vmul.f32 %v1698_v16, %v3230_v17  ;;  %v1713_v10 = vrot.slane %v1702_v57, %v3076_v58  ;;  %v1741_v45 = vrot.slane %v1702_v57, %v3090_v8 }
 0x3a6   :  { %v2177_v17 = vrot.slane %v4247_v29, %v3081_v59  ;;  %v1769_v6 = vrot.slane %v1702_v57, %v3074_v56  ;;  %v1797_v43 = vrot.slane %v1702_v57, %v3081_v59 }
 0x3a7   :  { %v1721_v38 = vrot.slane %v1704_v27, %v3076_v58  ;;  %v1725_v48 = vrot.slane %v1705_v61, %v3076_v58  ;;  %v1749_v55 = vrot.slane %v1704_v27, %v3090_v8  ;;  %v1753_v12 = vrot.slane %v1705_v61, %v3090_v8  ;;  %v1819_v41 = vpop.permute.xlu1 %1818 }
 0x3a8   :  { %v1726_v39 = vmul.f32 %v1713_v10, %v3984_v50  ;;  %v1754_v33 = vmul.f32 %v1741_v45, %v3891_v9  ;;  %v1777_v22 = vrot.slane %v1704_v27, %v3074_v56  ;;  %v1781_v5 = vrot.slane %v1705_v61, %v3074_v56 }
 0x3a9   :  { %v1728_v36 = vmul.f32 %v1721_v38, %v3984_v50  ;;  %v1729_v0 = vmul.f32 %v1725_v48, %v3984_v50  ;;  %v1756_v20 = vmul.f32 %v1749_v55, %v3891_v9  ;;  %v1805_v11 = vrot.slane %v1704_v27, %v3081_v59 }
 0x3aa   :  { %v1730_v32 = vadd.f32 %v1726_v39, %v1686_v19  ;;  %v1757_v47 = vmul.f32 %v1753_v12, %v3891_v9  ;;  %v1828_v25 = vsel %vm521_vm3, %v1819_v41, %v4175_v60  ;;  %v1782_v50 = vmul.f32 %v1769_v6, %v3990_v23 }
 0x3ab   :  { %v1732_v4 = vadd.f32 %v1728_v36, %v1688_v26  ;;  %v1733_v2 = vadd.f32 %v1729_v0, %v1689_v54  ;;  %v1825_v31 = vpop.permute.xlu1 %1824  ;;  %v1784_v19 = vmul.f32 %v1777_v22, %v3990_v23  ;;  %v1809_v57 = vrot.slane %v1705_v61, %v3081_v59  ;;  %v4751_v26 = vld [vmem:[#allocation11_spill] sm:$0xff]  ;;  %v4752_v36 = vld [vmem:[#allocation12_spill] sm:$0xff] }
 0x3ac   :  { %v1758_v3 = vadd.f32 %v1754_v33, %v1730_v32  ;;  %v1785_v27 = vmul.f32 %v1781_v5, %v3990_v23  ;;  %v1831_v54 = vmul.f32 %v1828_v25, %v4751_v26  ;;  %v1810_v9 = vmul.f32 %v1797_v43, %v3893_v13  ;;  %v4753_v32 = vld [vmem:[#allocation32_spill] sm:$0xff] }
 0x3ad   :  { %v1760_v16 = vadd.f32 %v1756_v20, %v1732_v4  ;;  %v1761_v44 = vadd.f32 %v1757_v47, %v1733_v2  ;;  %v1812_v45 = vmul.f32 %v1805_v11, %v3893_v13  ;;  %v1829_v38 = vsel %vm521_vm3, %v1825_v31, %v1819_v41  ;;  %v4754_v11 = vld [vmem:[#allocation29_spill] sm:$0xff] }
 0x3ae   :  { %v1786_v10 = vadd.f32 %v1782_v50, %v1758_v3  ;;  %v1845_v12 = vrot.slane %v1831_v54, %v3076_v58  ;;  %v1873_v61 = vrot.slane %v1831_v54, %v3090_v8  ;;  %v1815_v6 = vadd.f32 %v1811_v42, %v1787_v52  ;;  %v4755_v50 = vld [vmem:[#allocation33_spill] sm:$0xff] }
 0x3af   :  { %v1788_v48 = vadd.f32 %v1784_v19, %v1760_v16  ;;  %v1789_v55 = vadd.f32 %v1785_v27, %v1761_v44  ;;  %v1823_v39 = vpop.permute.xlu1 %1822  ;;  %v1813_v23 = vmul.f32 %v1809_v57, %v3893_v13  ;;  %v1901_v33 = vrot.slane %v1831_v54, %v3074_v56  ;;  %v4756_v44 = vld [vmem:[#allocation14_spill] sm:$0xff] }
 0x3b0   :  { %v1830_v0 = vmul.f32 %v1829_v38, %v4752_v36  ;;  %v1814_v43 = vadd.f32 %v1810_v9, %v1786_v10  ;;  %v1855_v22 = vmul.f32 %v1845_v12, %v4753_v32  ;;  %v1929_v41 = vrot.slane %v1831_v54, %v3081_v59  ;;  %v4757_v54 = vld [vmem:[#allocation30_spill] sm:$0xff] }
 0x3b1   :  { %v1816_v20 = vadd.f32 %v1812_v45, %v1788_v48  ;;  %v1817_v5 = vadd.f32 %v1813_v23, %v1789_v55  ;;  %v1883_v4 = vmul.f32 %v1873_v61, %v4754_v11  ;;  %v1826_v25 = vsel %vm521_vm3, %v1823_v39, %v1825_v31  ;;  %v4758_v45 = vld [vmem:[#allocation13_spill] sm:$0xff] }
 0x3b2   :  { %v1841_v2 = vrot.slane %v1830_v0, %v3076_v58  ;;  %v1869_v47 = vrot.slane %v1830_v0, %v3090_v8  ;;  %v1859_v42 = vadd.f32 %v1855_v22, %v1815_v6  ;;  %v1897_v13 = vrot.slane %v1830_v0, %v3074_v56 }
 0x3b3   :  { %v1925_v52 = vrot.slane %v1830_v0, %v3081_v59  ;;  %v2061_v3 = vpop.permute.xlu1 %2060  ;;  %v1911_v19 = vmul.f32 %v1901_v33, %v4755_v50  ;;  %v1827_v16 = vsel %vm521_vm3, %v4175_v60, %v1823_v39  ;;  %v1833_v27 = vmul.f32 %v1826_v25, %v4756_v44 }
 0x3b4   :  { %v1854_v57 = vmul.f32 %v1841_v2, %v4753_v32  ;;  %v1887_v26 = vadd.f32 %v1883_v4, %v1859_v42  ;;  %v1939_v10 = vmul.f32 %v1929_v41, %v4757_v54  ;;  %v1882_v9 = vmul.f32 %v1869_v47, %v4754_v11  ;;  %v4384_v47 = vpop.permute.xlu0 %2387 }
 0x3b5   :  { %v1832_v38 = vmul.f32 %v1827_v16, %v4758_v45  ;;  %v1910_v31 = vmul.f32 %v1897_v13, %v4755_v50  ;;  %v1853_v55 = vrot.slane %v1833_v27, %v3076_v58  ;;  %v1881_v12 = vrot.slane %v1833_v27, %v3090_v8 }
 0x3b6   :  { %v1858_v48 = vadd.f32 %v1854_v57, %v1814_v43  ;;  %v1915_v61 = vadd.f32 %v1911_v19, %v1887_v26  ;;  %v1938_v6 = vmul.f32 %v1925_v52, %v4757_v54  ;;  %v1909_v43 = vrot.slane %v1833_v27, %v3074_v56  ;;  %v4759_v19 = vld [vmem:[#allocation41_spill] sm:$0xff] }
 0x3b7   :  { %v1849_v60 = vrot.slane %v1832_v38, %v3076_v58  ;;  %v1877_v39 = vrot.slane %v1832_v38, %v3090_v8  ;;  %v4376_v23 = vpop.permute.xlu1 %2415  ;;  %v1857_v36 = vmul.f32 %v1853_v55, %v4753_v32  ;;  %v1905_v0 = vrot.slane %v1832_v38, %v3074_v56 }
 0x3b8   :  { %v1886_v33 = vadd.f32 %v1882_v9, %v1858_v48  ;;  %v1943_v22 = vadd.f32 %v1939_v10, %v1915_v61  ;;  %v1885_v2 = vmul.f32 %v1881_v12, %v4754_v11  ;;  %v1933_v52 = vrot.slane %v1832_v38, %v3081_v59  ;;  %v4761_v48 = vld [vmem:[#allocation15_spill] sm:$0xff] }
 0x3b9   :  { %v1856_v41 = vmul.f32 %v1849_v60, %v4753_v32  ;;  %v1884_v4 = vmul.f32 %v1877_v39, %v4754_v11  ;;  %v1861_v13 = vadd.f32 %v1857_v36, %v1817_v5  ;;  %v1937_v25 = vrot.slane %v1833_v27, %v3081_v59 }
 0x3ba   :  { %v1914_v42 = vadd.f32 %v1910_v31, %v1886_v33  ;;  %v1971_v57 = vadd.f32 %v4759_v19, %v1943_v22  ;;  %v2067_v44 = vsel %vm785_vm4, %v2061_v3, %v4215_v7  ;;  %v2068_v32 = vsel %vm785_vm4, %v4192_v21, %v2061_v3  ;;  %v4762_v7 = vld [vmem:[#allocation40_spill] sm:$0xff]  ;;  %v4764_v33 = vld [vmem:[#allocation35_spill] sm:$0xff] }
 0x3bb   :  { %v1860_v16 = vadd.f32 %v1856_v41, %v1816_v20  ;;  %v4395_v11 = vpop.permute.xlu1 %2186  ;;  %v1889_v10 = vadd.f32 %v1885_v2, %v1861_v13  ;;  %v1912_v5 = vmul.f32 %v1905_v0, %v4755_v50  ;;  %v1913_v9 = vmul.f32 %v1909_v43, %v4755_v50  ;;  %v4760_v20 = vld [vmem:[#allocation16_spill] sm:$0xff]  ;;  %v2189_v0 = vpop.permute.xlu0 %2188  ;;  %v4765_v43 = vld [vmem:[#allocation51_spill] sm:$0xff] }
 0x3bc   :  { %v1942_v26 = vadd.f32 %v1938_v6, %v1914_v42  ;;  %v1999_v27 = vadd.f32 %v4253_v51, %v1971_v57  ;;  %v2070_v38 = vmul.f32 %v2068_v32, %v4760_v20  ;;  %v2071_v31 = vmul.f32 %v2067_v44, %v4761_v48  ;;  %v4763_v6 = vld [vmem:[#allocation45_spill] sm:$0xff]  ;;  %v4766_v2 = vld [vmem:[#allocation31_spill] sm:$0xff]  ;;  %v4769_v44 = vld [vmem:[#allocation42_spill] sm:$0xff] }
 0x3bd   :  { %v1888_v45 = vadd.f32 %v1884_v4, %v1860_v16  ;;  %v1917_v12 = vadd.f32 %v1913_v9, %v1889_v10  ;;  %v1940_v21 = vmul.f32 %v1933_v52, %v4757_v54  ;;  %v1941_v3 = vmul.f32 %v1937_v25, %v4757_v54  ;;  %v4767_v25 = vld [vmem:[#allocation43_spill] sm:$0xff] }
 0x3be   :  { %v1970_v55 = vadd.f32 %v4762_v7, %v1942_v26  ;;  %v2027_v60 = vadd.f32 %v4763_v6, %v1999_v27  ;;  %v2081_v39 = vrot.slane %v2070_v38, %v3076_v58  ;;  %v2085_v50 = vrot.slane %v2071_v31, %v3076_v58 }
 0x3bf   :  { %v1916_v61 = vadd.f32 %v1912_v5, %v1888_v45  ;;  %v2191_v51 = vpop.permute.xlu1 %2190  ;;  %v4412_v36 = vmul.f32 %v2173_v15, %v4764_v33  ;;  %v1945_v41 = vadd.f32 %v1941_v3, %v1917_v12  ;;  %v2113_v54 = vrot.slane %v2071_v31, %v3090_v8  ;;  %v4770_v45 = vld [vmem:[#allocation48_spill] sm:$0xff] }
 0x3c0   :  { %v1998_v22 = vadd.f32 %v4765_v43, %v1970_v55  ;;  %v2055_v42 = vadd.f32 %v4766_v2, %v2027_v60  ;;  %v2095_v13 = vmul.f32 %v2085_v50, %v4000_v24  ;;  %v2196_v52 = vsel %vm937_vm5, %v4395_v11, %v2189_v0  ;;  %v4773_v43 = vld [vmem:[#allocation17_spill] sm:$0xff] }
 0x3c1   :  { %v1944_v4 = vadd.f32 %v1940_v21, %v1916_v61  ;;  %v1973_v19 = vadd.f32 %v4767_v25, %v1945_v41  ;;  %v2094_v57 = vmul.f32 %v2081_v39, %v4000_v24  ;;  %v2109_v16 = vrot.slane %v2070_v38, %v3090_v8  ;;  %v4771_v61 = vld [vmem:[#allocation47_spill] sm:$0xff]  ;;  %v4772_v39 = vld [vmem:[#allocation46_spill] sm:$0xff]  ;;  %v4775_v2 = vld [vmem:[#allocation49_spill] sm:$0xff] }
 0x3c2   :  { %v2026_v15 = vadd.f32 %v4768_v28, %v1998_v22  ;;  %v2099_v26 = vadd.f32 %v2095_v13, %v2055_v42  ;;  %v2123_v10 = vmul.f32 %v2113_v54, %v4006_v37  ;;  %v2141_v5 = vrot.slane %v2071_v31, %v3074_v56  ;;  %v4776_v25 = vld [vmem:[#allocation50_spill] sm:$0xff] }
 0x3c3   :  { %v1972_v32 = vadd.f32 %v4769_v44, %v1944_v4  ;;  %v2193_v9 = vpop.permute.xlu1 %2192  ;;  %v2001_v27 = vadd.f32 %v4270_v62, %v1973_v19  ;;  %v2137_v48 = vrot.slane %v2070_v38, %v3074_v56  ;;  %v2169_v7 = vrot.slane %v2071_v31, %v3081_v59 }
 0x3c4   :  { %v2054_v20 = vadd.f32 %v4770_v45, %v2026_v15  ;;  %v2127_v55 = vadd.f32 %v2123_v10, %v2099_v26  ;;  %v2151_v12 = vmul.f32 %v2141_v5, %v4750_v34  ;;  %v2165_v21 = vrot.slane %v2070_v38, %v3081_v59  ;;  %v4777_v26 = vld [vmem:[#allocation36_spill] sm:$0xff]  ;;  %v4778_v5 = vld [vmem:[#allocation37_spill] sm:$0xff] }
 0x3c5   :  { %v2000_v24 = vadd.f32 %v4261_v46, %v1972_v32  ;;  %v2181_v3 = vmul.f32 %v2177_v17, %v4764_v33  ;;  %v2029_v62 = vadd.f32 %v4771_v61, %v2001_v27  ;;  %v2122_v60 = vmul.f32 %v2109_v16, %v4006_v37  ;;  %v4774_v17 = vld [vmem:[#allocation18_spill] sm:$0xff] }
 0x3c6   :  { %v2098_v6 = vadd.f32 %v2094_v57, %v2054_v20  ;;  %v2155_v31 = vadd.f32 %v2151_v12, %v2127_v55  ;;  %v2198_v46 = vmul.f32 %v2196_v52, %v4773_v43  ;;  %v2195_v22 = vsel %vm937_vm5, %v2189_v0, %v2191_v51  ;;  %v4779_v61 = vld [vmem:[#allocation38_spill] sm:$0xff] }
 0x3c7   :  { %v2028_v50 = vadd.f32 %v4772_v39, %v2000_v24  ;;  %v4445_v41 = vpop.permute.xlu1 %2314  ;;  %v2150_v54 = vmul.f32 %v2137_v48, %v4750_v34  ;;  %v2179_v29 = vmul.f32 %v2169_v7, %v4764_v33  ;;  %v2199_v4 = vmul.f32 %v2195_v22, %v4774_v17  ;;  %v4782_v22 = vld [vmem:[#allocation39_spill] sm:$0xff] }
 0x3c8   :  { %v2126_v38 = vadd.f32 %v2122_v60, %v2098_v6  ;;  %v2178_v37 = vmul.f32 %v2165_v21, %v4764_v33  ;;  %v2209_v13 = vrot.slane %v2198_v46, %v3076_v58  ;;  %v2237_v52 = vrot.slane %v2198_v46, %v3090_v8  ;;  %v4780_v60 = vld [vmem:[#allocation19_spill] sm:$0xff] }
 0x3c9   :  { %v2056_v42 = vadd.f32 %v4775_v2, %v2028_v50  ;;  %v2057_v19 = vadd.f32 %v4776_v25, %v2029_v62  ;;  %v2183_v28 = vadd.f32 %v2179_v29, %v2155_v31  ;;  %v2213_v15 = vrot.slane %v2199_v4, %v3076_v58  ;;  %v4781_v50 = vld [vmem:[#allocation20_spill] sm:$0xff] }
 0x3ca   :  { %v2154_v0 = vadd.f32 %v2150_v54, %v2126_v38  ;;  %v2265_v34 = vrot.slane %v2198_v46, %v3074_v56  ;;  %v2293_v57 = vrot.slane %v2198_v46, %v3081_v59  ;;  %v2241_v16 = vrot.slane %v2199_v4, %v3090_v8 }
 0x3cb   :  { %v2194_v44 = vsel %vm937_vm5, %v2191_v51, %v2193_v9  ;;  %v4461_v33 = vpop.permute.xlu1 %2487  ;;  %v2222_v10 = vmul.f32 %v2209_v13, %v4777_v26  ;;  %v2250_v27 = vmul.f32 %v2237_v52, %v4778_v5  ;;  %v2223_v45 = vmul.f32 %v2213_v15, %v4777_v26 }
 0x3cc   :  { %v2182_v32 = vadd.f32 %v2178_v37, %v2154_v0  ;;  %v2251_v20 = vmul.f32 %v2241_v16, %v4778_v5  ;;  %v2269_v48 = vrot.slane %v2199_v4, %v3074_v56  ;;  %v2297_v7 = vrot.slane %v2199_v4, %v3081_v59 }
 0x3cd   :  { %v2100_v24 = vadd.f32 %v4286_v49, %v2056_v42  ;;  %v2227_v12 = vadd.f32 %v2223_v45, %v2183_v28  ;;  %v2101_v51 = vadd.f32 %v4294_v30, %v2057_v19  ;;  %v2197_v21 = vsel %vm937_vm5, %v2193_v9, %v4395_v11 }
 0x3ce   :  { %v2226_v55 = vadd.f32 %v2222_v10, %v2182_v32  ;;  %v2278_v62 = vmul.f32 %v2265_v34, %v4779_v61  ;;  %v2200_v39 = vmul.f32 %v2194_v44, %v4780_v60  ;;  %v2201_v31 = vmul.f32 %v2197_v21, %v4781_v50  ;;  %v4783_v44 = vld [vmem:[#allocation21_spill] sm:$0xff]  ;;  %v4784_v21 = vld [vmem:[#allocation22_spill] sm:$0xff] }
 0x3cf   :  { %v2128_v6 = vadd.f32 %v4303_v40, %v2100_v24  ;;  %v2319_v43 = vpop.permute.xlu1 %2318  ;;  %v2306_v49 = vmul.f32 %v2293_v57, %v4782_v22  ;;  %v2255_v38 = vadd.f32 %v2251_v20, %v2227_v12  ;;  %v2129_v54 = vadd.f32 %v4306_v18, %v2101_v51  ;;  %v2317_v40 = vpop.permute.xlu0 %2316 }
 0x3d0   :  { %v2254_v46 = vadd.f32 %v2250_v27, %v2226_v55  ;;  %v2217_v29 = vrot.slane %v2200_v39, %v3076_v58  ;;  %v2221_v11 = vrot.slane %v2201_v31, %v3076_v58  ;;  %v2245_v9 = vrot.slane %v2200_v39, %v3090_v8 }
 0x3d1   :  { %v2156_v30 = vadd.f32 %v4311_v35, %v2128_v6  ;;  %v2279_v17 = vmul.f32 %v2269_v48, %v4779_v61  ;;  %v2307_v4 = vmul.f32 %v2297_v7, %v4782_v22  ;;  %v2157_v2 = vadd.f32 %v4314_v14, %v2129_v54 }
 0x3d2   :  { %v2249_v42 = vrot.slane %v2201_v31, %v3090_v8  ;;  %v2282_v37 = vadd.f32 %v2278_v62, %v2254_v46  ;;  %v2224_v35 = vmul.f32 %v2217_v29, %v4777_v26  ;;  %v2324_v13 = vsel %vm1089_vm6, %v4445_v41, %v2317_v40 }
 0x3d3   :  { %v2184_v18 = vadd.f32 %v4412_v36, %v2156_v30  ;;  %v2321_v52 = vpop.permute.xlu1 %2320  ;;  %v2283_v25 = vadd.f32 %v2279_v17, %v2255_v38  ;;  %v2185_v19 = vadd.f32 %v2181_v3, %v2157_v2  ;;  %v2225_v0 = vmul.f32 %v2221_v11, %v4777_v26  ;;  %v4521_v11 = vpop.permute.xlu0 %2459 }
 0x3d4   :  { %v2252_v28 = vmul.f32 %v2245_v9, %v4778_v5  ;;  %v2273_v14 = vrot.slane %v2200_v39, %v3074_v56  ;;  %v2277_v34 = vrot.slane %v2201_v31, %v3074_v56  ;;  %v2301_v36 = vrot.slane %v2200_v39, %v3081_v59 }
 0x3d5   :  { %v2228_v15 = vadd.f32 %v2224_v35, %v2184_v18  ;;  %v2229_v57 = vadd.f32 %v2225_v0, %v2185_v19  ;;  %v2253_v16 = vmul.f32 %v2249_v42, %v4778_v5  ;;  %v2326_v32 = vmul.f32 %v2324_v13, %v4783_v44 }
 0x3d6   :  { %v2323_v10 = vsel %vm1089_vm6, %v2317_v40, %v2319_v43  ;;  %v2310_v3 = vadd.f32 %v2306_v49, %v2282_v37  ;;  %v2280_v26 = vmul.f32 %v2273_v14, %v4779_v61  ;;  %v2305_v45 = vrot.slane %v2201_v31, %v3081_v59  ;;  %v4786_v37 = vld [vmem:[#allocation24_spill] sm:$0xff] }
 0x3d7   :  { %v2256_v27 = vadd.f32 %v2252_v28, %v2228_v15  ;;  %v2311_v20 = vadd.f32 %v2307_v4, %v2283_v25  ;;  %v2257_v48 = vadd.f32 %v2253_v16, %v2229_v57  ;;  %v2337_v7 = vrot.slane %v2326_v32, %v3076_v58  ;;  %v4506_v55 = vpop.permute.xlu1 %2442 }
 0x3d8   :  { %v2365_v24 = vrot.slane %v2326_v32, %v3090_v8  ;;  %v2281_v5 = vmul.f32 %v2277_v34, %v4779_v61  ;;  %v2308_v51 = vmul.f32 %v2301_v36, %v4782_v22  ;;  %v2327_v62 = vmul.f32 %v2323_v10, %v4784_v21  ;;  %v4787_v21 = vld [vmem:[#allocation25_spill] sm:$0xff] }
 0x3d9   :  { %v2284_v12 = vadd.f32 %v2280_v26, %v2256_v27  ;;  %v2350_v6 = vmul.f32 %v2337_v7, %v4151_v1  ;;  %v2393_v60 = vrot.slane %v2326_v32, %v3074_v56  ;;  %v2421_v39 = vrot.slane %v2326_v32, %v3081_v59 }
 0x3da   :  { %v2322_v50 = vsel %vm1089_vm6, %v2319_v43, %v2321_v52  ;;  %v2285_v31 = vadd.f32 %v2281_v5, %v2257_v48  ;;  %v2309_v46 = vmul.f32 %v2305_v45, %v4782_v22  ;;  %v2378_v49 = vmul.f32 %v2365_v24, %v4233_v63  ;;  %v4785_v22 = vld [vmem:[#allocation23_spill] sm:$0xff] }
 0x3db   :  { %v2341_v61 = vrot.slane %v2327_v62, %v3076_v58  ;;  %v2312_v38 = vadd.f32 %v2308_v51, %v2284_v12  ;;  %v2354_v54 = vadd.f32 %v2350_v6, %v2310_v3  ;;  %v2369_v30 = vrot.slane %v2327_v62, %v3090_v8  ;;  %v2447_v35 = vpop.permute.xlu1 %2446  ;;  %v2445_v3 = vpop.permute.xlu0 %2444  ;;  %v4788_v6 = vld [vmem:[#allocation26_spill] sm:$0xff] }
 0x3dc   :  { %v2397_v29 = vrot.slane %v2327_v62, %v3074_v56  ;;  %v2425_v40 = vrot.slane %v2327_v62, %v3081_v59  ;;  %v2325_v43 = vsel %vm1089_vm6, %v2321_v52, %v4445_v41  ;;  %v2328_v17 = vmul.f32 %v2322_v50, %v4785_v22 }
 0x3dd   :  { %v2351_v9 = vmul.f32 %v2341_v61, %v4151_v1  ;;  %v2382_v4 = vadd.f32 %v2378_v49, %v2354_v54  ;;  %v2406_v2 = vmul.f32 %v2393_v60, %v4384_v47  ;;  %v2434_v42 = vmul.f32 %v2421_v39, %v4376_v23 }
 0x3de   :  { %v2329_v18 = vmul.f32 %v2325_v43, %v4786_v37  ;;  %v2379_v25 = vmul.f32 %v2369_v30, %v4233_v63  ;;  %v2345_v19 = vrot.slane %v2328_v17, %v3076_v58  ;;  %v2373_v0 = vrot.slane %v2328_v17, %v3090_v8 }
 0x3df   :  { %v2355_v13 = vadd.f32 %v2351_v9, %v2311_v20  ;;  %v2313_v28 = vadd.f32 %v2309_v46, %v2285_v31  ;;  %v2401_v15 = vrot.slane %v2328_v17, %v3074_v56  ;;  %v2407_v34 = vmul.f32 %v2397_v29, %v4384_v47  ;;  %v2449_v5 = vpop.permute.xlu1 %2448 }
 0x3e0   :  { %v2349_v41 = vrot.slane %v2329_v18, %v3076_v58  ;;  %v2377_v52 = vrot.slane %v2329_v18, %v3090_v8  ;;  %v2435_v36 = vmul.f32 %v2425_v40, %v4376_v23  ;;  %v2352_v57 = vmul.f32 %v2345_v19, %v4151_v1  ;;  %v2516_v40 = vpop.permute.xlu0 %2515  ;;  %v4790_v19 = vld [vmem:[#allocation28_spill] sm:$0xff] }
 0x3e1   :  { %v2383_v14 = vadd.f32 %v2379_v25, %v2355_v13  ;;  %v2410_v16 = vadd.f32 %v2406_v2, %v2382_v4  ;;  %v2405_v32 = vrot.slane %v2329_v18, %v3074_v56  ;;  %v2429_v10 = vrot.slane %v2328_v17, %v3081_v59  ;;  %v4789_v13 = vld [vmem:[#allocation27_spill] sm:$0xff] }
 0x3e2   :  { %v2353_v44 = vmul.f32 %v2349_v41, %v4151_v1  ;;  %v2356_v27 = vadd.f32 %v2352_v57, %v2312_v38  ;;  %v2380_v26 = vmul.f32 %v2373_v0, %v4233_v63  ;;  %v2381_v45 = vmul.f32 %v2377_v52, %v4233_v63 }
 0x3e3   :  { %v2433_v20 = vrot.slane %v2329_v18, %v3081_v59  ;;  %v2408_v7 = vmul.f32 %v2401_v15, %v4384_v47  ;;  %v2452_v24 = vsel %vm1241_vm7, %v4506_v55, %v2445_v3  ;;  %v2451_v1 = vsel %vm1241_vm7, %v2445_v3, %v2447_v35 }
 0x3e4   :  { %v2357_v48 = vadd.f32 %v2353_v44, %v2313_v28  ;;  %v2411_v12 = vadd.f32 %v2407_v34, %v2383_v14  ;;  %v2384_v51 = vadd.f32 %v2380_v26, %v2356_v27  ;;  %v2454_v62 = vmul.f32 %v2452_v24, %v4787_v21 }
 0x3e5   :  { %v2455_v60 = vmul.f32 %v2451_v1, %v4788_v6  ;;  %v2409_v39 = vmul.f32 %v2405_v32, %v4384_v47  ;;  %v2436_v50 = vmul.f32 %v2429_v10, %v4376_v23  ;;  %v2437_v31 = vmul.f32 %v2433_v20, %v4376_v23 }
 0x3e6   :  { %v2385_v63 = vadd.f32 %v2381_v45, %v2357_v48  ;;  %v2465_v46 = vrot.slane %v2454_v62, %v3076_v58  ;;  %v2493_v49 = vrot.slane %v2454_v62, %v3090_v8  ;;  %v2450_v38 = vsel %vm1241_vm7, %v2447_v35, %v2449_v5 }
 0x3e7   :  { %v2469_v61 = vrot.slane %v2455_v60, %v3076_v58  ;;  %v2412_v54 = vadd.f32 %v2408_v7, %v2384_v51  ;;  %v2497_v30 = vrot.slane %v2455_v60, %v3090_v8  ;;  %v2521_v29 = vrot.slane %v2454_v62, %v3074_v56 }
 0x3e8   :  { %v2525_v47 = vrot.slane %v2455_v60, %v3074_v56  ;;  %v2478_v9 = vmul.f32 %v2465_v46, %v4521_v11  ;;  %v2438_v43 = vadd.f32 %v2434_v42, %v2410_v16  ;;  %v2439_v22 = vadd.f32 %v2435_v36, %v2411_v12  ;;  %v2544_v16 = vpop.permute.xlu1 %2543 }
 0x3e9   :  { %v2479_v23 = vmul.f32 %v2469_v61, %v4521_v11  ;;  %v2413_v17 = vadd.f32 %v2409_v39, %v2385_v63  ;;  %v2506_v4 = vmul.f32 %v2493_v49, %v4461_v33  ;;  %v2507_v2 = vmul.f32 %v2497_v30, %v4461_v33 }
 0x3ea   :  { %v2453_v37 = vsel %vm1241_vm7, %v2449_v5, %v4506_v55  ;;  %v2482_v18 = vadd.f32 %v2478_v9, %v2438_v43  ;;  %v2456_v25 = vmul.f32 %v2450_v38, %v4789_v13  ;;  %v2440_v28 = vadd.f32 %v2436_v50, %v2412_v54 }
 0x3eb   :  { %v2483_v35 = vadd.f32 %v2479_v23, %v2439_v22  ;;  %v2457_v0 = vmul.f32 %v2453_v37, %v4790_v19  ;;  %v2534_v41 = vmul.f32 %v2521_v29, %v2516_v40  ;;  %v2535_v52 = vmul.f32 %v2525_v47, %v2516_v40 }
 0x3ec   :  { %v2549_v42 = vrot.slane %v2454_v62, %v3081_v59  ;;  %v2510_v15 = vadd.f32 %v2506_v4, %v2482_v18  ;;  %v2473_v34 = vrot.slane %v2456_v25, %v3076_v58  ;;  %v2501_v53 = vrot.slane %v2456_v25, %v3090_v8 }
 0x3ed   :  { %v2511_v14 = vadd.f32 %v2507_v2, %v2483_v35  ;;  %v2477_v36 = vrot.slane %v2457_v0, %v3076_v58  ;;  %v2505_v55 = vrot.slane %v2457_v0, %v3090_v8  ;;  %v2553_v57 = vrot.slane %v2455_v60, %v3081_v59 }
 0x3ee   :  { %v2441_v44 = vadd.f32 %v2437_v31, %v2413_v17  ;;  %v2480_v10 = vmul.f32 %v2473_v34, %v4521_v11  ;;  %v2529_v27 = vrot.slane %v2456_v25, %v3074_v56  ;;  %v2538_v26 = vadd.f32 %v2534_v41, %v2510_v15  ;;  %v2752_v41 = vld [vmem:[#allocation2 + $0x8] sm:$0xff] }
 0x3ef   :  { %v2539_v32 = vadd.f32 %v2535_v52, %v2511_v14  ;;  %v2481_v3 = vmul.f32 %v2477_v36, %v4521_v11  ;;  %v2508_v45 = vmul.f32 %v2501_v53, %v4461_v33  ;;  %v2533_v58 = vrot.slane %v2457_v0, %v3074_v56  ;;  %v2754_v14 = vld [vmem:[#allocation2 + $0x18] sm:$0xff] }
 0x3f0   :  { %v2557_v20 = vrot.slane %v2456_v25, %v3081_v59  ;;  %v2484_v48 = vadd.f32 %v2480_v10, %v2440_v28  ;;  %v2562_v8 = vmul.f32 %v2549_v42, %v2544_v16  ;;  %v2563_v7 = vmul.f32 %v2553_v57, %v2544_v16  ;;  %v2753_v42 = vld [vmem:[#allocation2 + $0x10] sm:$0xff] }
 0x3f1   :  { %v2485_v24 = vadd.f32 %v2481_v3, %v2441_v44  ;;  %v2509_v1 = vmul.f32 %v2505_v55, %v4461_v33  ;;  %v2536_v12 = vmul.f32 %v2529_v27, %v2516_v40  ;;  %v2561_v51 = vrot.slane %v2457_v0, %v3081_v59  ;;  %v2751_v0 = vld [vmem:[#allocation2] sm:$0xff] }
 0x3f2   :  { %v2512_v5 = vadd.f32 %v2508_v45, %v2484_v48  ;;  %v2567_v11 = vadd.f32 %v2563_v7, %v2539_v32  ;;  %v2537_v62 = vmul.f32 %v2533_v58, %v2516_v40  ;;  %v2564_v60 = vmul.f32 %v2557_v20, %v2544_v16 }
 0x3f3   :  { %v2513_v21 = vadd.f32 %v2509_v1, %v2485_v24  ;;  %v2566_v63 = vadd.f32 %v2562_v8, %v2538_v26  ;;  %v2565_v56 = vmul.f32 %v2561_v51, %v2544_v16 }
 0x3f4   :  { %v2540_v6 = vadd.f32 %v2536_v12, %v2512_v5 }
 0x3f5   :  { %v2541_v39 = vadd.f32 %v2537_v62, %v2513_v21  ;;  %v2570_v31 = vadd.f32 %v2567_v11, %v2566_v63 }
 0x3f6   :  { %v2568_v50 = vadd.f32 %v2564_v60, %v2540_v6 }
 0x3f7   :  { %v2569_v46 = vadd.f32 %v2565_v56, %v2541_v39 }
 0x3f8   :  { %v2571_v49 = vadd.f32 %v2570_v31, %v2568_v50 }
 0x3fa   :  { %v2572_v61 = vadd.f32 %v2571_v49, %v2569_v46 }
 0x3fc   :  { %2573 = vadd.xlane.f32.xlu1 %v2572_v61 }
 0x485   :  { %v2574_v38 = vpop.xlane.xlu1 %2573 }
 0x486   :  { %v2575_v33 = vmul.f32 0.001953125, %v2574_v38 }
 0x488   :  { %v2576_v54 = vsub.f32 %v2566_v63, %v2575_v33  ;;  %v2577_v30 = vsub.f32 %v2567_v11, %v2575_v33  ;;  %v2578_v29 = vsub.f32 %v2568_v50, %v2575_v33  ;;  %v2579_v59 = vsub.f32 %v2569_v46, %v2575_v33 }
 0x48a   :  { %v2580_v47 = vmul.f32 %v2576_v54, %v2576_v54  ;;  %v2581_v9 = vmul.f32 %v2577_v30, %v2577_v30  ;;  %v2582_v23 = vmul.f32 %v2578_v29, %v2578_v29  ;;  %v2583_v43 = vmul.f32 %v2579_v59, %v2579_v59 }
 0x48c   :  { %v2584_v40 = vadd.f32 %v2581_v9, %v2580_v47 }
 0x48e   :  { %v2585_v22 = vadd.f32 %v2584_v40, %v2582_v23 }
 0x490   :  { %v2586_v17 = vadd.f32 %v2585_v22, %v2583_v43 }
 0x492   :  { %2587 = vadd.xlane.f32.xlu0 %v2586_v17 }
 0x51b   :  { %v2588_v4 = vpop.xlane.xlu0 %2587 }
 0x51c   :  { %v2589_v2 = vmul.f32 0.001953125, %v2588_v4 }
 0x51e   :  { %v2590_v37 = vadd.f32 1e-05, %v2589_v2 }
 0x520   :  { %2749 = vrsqrt.f32 %v2590_v37 }
 0x52d   :  { %v2750_v18 = vpop.eup %2749 }
 0x52e   :  { %v2592_v35 = vmul.f32 %v2750_v18, %v2576_v54  ;;  %v2593_v13 = vmul.f32 %v2750_v18, %v2577_v30  ;;  %v2594_v25 = vmul.f32 %v2750_v18, %v2578_v29  ;;  %v2595_v19 = vmul.f32 %v2750_v18, %v2579_v59 }
 0x530   :  { %v2596_v28 = vadd.f32 %v2751_v0, %v2592_v35  ;;  %v2597_v52 = vadd.f32 %v2752_v41, %v2593_v13  ;;  %v2598_v15 = vadd.f32 %v2753_v42, %v2594_v25  ;;  %v2599_v34 = vadd.f32 %v2754_v14, %v2595_v19 }
 0x532   :  { %v2600_v36 = vmax.f32 %v2596_v28, 0.0  ;;  %v2601_v53 = vmax.f32 %v2597_v52, 0.0  ;;  %v2602_v55 = vmax.f32 %v2598_v15, 0.0  ;;  %v2603_v57 = vmax.f32 %v2599_v34, 0.0 }
 0x534   :  { %2604 = vst [vmem:[#allocation7] sm:$0xff] %v2600_v36  ;;  %2605 = vst [vmem:[#allocation7 + $0x8] sm:$0xff] %v2601_v53 }
 0x535   :  { %2606 = vst [vmem:[#allocation7 + $0x10] sm:$0xff] %v2602_v55  ;;  %2607 = vst [vmem:[#allocation7 + $0x18] sm:$0xff] %v2603_v57 }
 0x536   :  { %2806 = shalt.err (!%p2803_p0)
}
 0x537   :  { %2617 = dma.vmem_to_hbm [thread:$0]  %s2615_s20, 512, %s4598_s6, [#allocation4]  }
 0x538   :  { %2819 = dma.done.wait [#allocation4], 512  }
 0x539   :  { %2820 = vsyncadd [#allocation4], 4294966784 }
 0x53a   :  { %2621 = vsyncpa [#allocation3], 1 }
 0x53b   :  { %2622 = vsyncpa [#allocation6], 1 }
 0x53c   :  { %2623 = vsyncpa [#allocation4], 1 }

</bundles_post_ra>
